<compile_context>
chip_gen: v7x
topology: tpu7x:2x2x1
jax: 0.10.0
libtpu: 0.0.40
codegen_flags: <defaults>
</compile_context>

<pallas_src>
import functools

import jax
import jax.numpy as jnp
from jax.experimental import pallas as pl
from jax.experimental.pallas import tpu as pltpu

K = 7                    # conv kernel size
PAD = (K - 1) // 2       # 'same' padding


def _round_up(n, m):
    return ((n + m - 1) // m) * m


def attention_gate_kernel(x_ref, w_ref, t_ref, o_ref, *, R, S):
    """AttentionGate for one batch element.

    x_ref: (1, Cg, R*S) f32 VMEM   gate input, spatial flattened onto lanes
    w_ref: (2, K, K)    f32 SMEM   conv weight (BN scale already folded in)
    t_ref: (1,)         f32 SMEM   folded BN shift
    o_ref: (1, Cg, R*S) f32 VMEM   gated output
    """
    f32 = jnp.float32
    x = x_ref[...]                                   # (1, Cg, RS)

    # ---- ZPool over the channel axis, done lane-dense (sublane reduce) ----
    mx = jnp.max(x, axis=1)                          # (1, RS)
    mn = jnp.mean(x, axis=1)                         # (1, RS)

    # ---- rebuild the tiny pooled maps as zero-padded 2-D (R+2P, SP) tiles ----
    # Row slices + concatenate (instead of a value reshape) keep the lowering
    # simple and only touch the 2 x R x S pooled map.  The zero sublane / lane
    # padding also acts as the conv edge mask, so no per-tap masks are needed.
    SP = _round_up(S + PAD, 128)                     # lane-padded conv width

    def padded_map(flat):                            # flat: (1, RS)
        zrow = jnp.zeros((PAD, S), f32)
        rows = [flat[:, r * S:(r + 1) * S] for r in range(R)]
        m2d = jnp.concatenate([zrow] + rows + [zrow], axis=0)    # (R+2P, S)
        zlane = jnp.zeros((R + 2 * PAD, SP - S), f32)
        return jnp.concatenate([m2d, zlane], axis=1)             # (R+2P, SP)

    maps = (padded_map(mx), padded_map(mn))

    # ---- 7x7 conv, 2 -> 1 channels, stride 1, no bias ----
    # One sublane band per (channel, dy); incremental lane rolls (XLU) give the
    # dx taps; 4 partial accumulators keep the VPU add chains independent.
    partial_accs = []
    for c in range(2):
        mp = maps[c]
        acc_a = jnp.zeros((R, SP), f32)              # centre + left taps
        acc_b = jnp.zeros((R, SP), f32)              # right taps
        for i in range(K):                           # dy = i - PAD
            band = mp[i:i + R, :]                    # (R, SP) sublane band
            acc_a = acc_a + band * w_ref[c, i, PAD]  # dx = 0
            shifted = band
            for j in range(PAD - 1, -1, -1):         # dx = -1, -2, -3
                shifted = pltpu.roll(shifted, shift=1, axis=1)
                acc_a = acc_a + shifted * w_ref[c, i, j]
            shifted = band
            for j in range(PAD + 1, K):              # dx = +1, +2, +3
                shifted = pltpu.roll(shifted, shift=SP - 1, axis=1)
                acc_b = acc_b + shifted * w_ref[c, i, j]
        partial_accs.append(acc_a + acc_b)

    conv = (partial_accs[0] + partial_accs[1])[:, :S]            # (R, S)

    # ---- folded BatchNorm shift (scale folded into w) + sigmoid ----
    # (exact sigmoid; pl.reciprocal(approx=True) would trade ~1e-3 accuracy)
    scale2d = jax.nn.sigmoid(conv + t_ref[0])                    # (R, S)

    # back to the flat, lane-dense spatial view: (1, RS)
    scale = jnp.concatenate([scale2d[r:r + 1, :] for r in range(R)], axis=1)

    # ---- gate the input (broadcast over channels) and store lane-dense ----
    o_ref[...] = x * scale[:, None, :]


def attention_gate(xg, w_scaled, t_shift):
    """xg: (Bg, Cg, R, S) f32; w_scaled = conv_w * bn_scale (2,K,K);
    t_shift = beta - running_mean * bn_scale, shape (1,)."""
    Bg, Cg, R, S = xg.shape
    RS = R * S
    xf = xg.reshape(Bg, Cg, RS)                      # layout-preserving reshape

    grid_spec = pltpu.PrefetchScalarGridSpec(
        num_scalar_prefetch=0,
        grid=(Bg,),                                  # one batch element per step
        in_specs=[
            pl.BlockSpec((1, Cg, RS), lambda b: (b, 0, 0)),
            pl.BlockSpec(memory_space=pltpu.MemorySpace.SMEM),
            pl.BlockSpec(memory_space=pltpu.MemorySpace.SMEM),
        ],
        out_specs=pl.BlockSpec((1, Cg, RS), lambda b: (b, 0, 0)),
    )
    # TODO(synk): for very large channel counts the Cg axis should also be
    # tiled with a two-phase (reduce-then-apply) structure; a single
    # (1, Cg, R*S) block is plenty for these shapes.
    out = pl.pallas_call(
        functools.partial(attention_gate_kernel, R=R, S=S),
        out_shape=jax.ShapeDtypeStruct((Bg, Cg, RS), jnp.float32),
        grid_spec=grid_spec,
        compiler_params=pltpu.CompilerParams(
            dimension_semantics=("parallel",),       # batch steps independent
            vmem_limit_bytes=32 * 1024 * 1024,       # safe on v5e/v6e/v7x
        ),
    )(xf, w_scaled, t_shift)
    return out.reshape(Bg, Cg, R, S)


@jax.jit
def cse_attention(x, cw_w_scaled, cw_shift, hc_w_scaled, hc_shift):
    """CSE_Attention forward: two AttentionGates on permuted views, averaged."""
    # cw gate on x.permute(0, 2, 1, 3): "channels" = H, spatial = (C, W)
    xp1 = jnp.transpose(x, (0, 2, 1, 3))
    y1 = jnp.transpose(attention_gate(xp1, cw_w_scaled, cw_shift), (0, 2, 1, 3))
    # hc gate on x.permute(0, 3, 2, 1): "channels" = W, spatial = (H, C)
    xp2 = jnp.transpose(x, (0, 3, 2, 1))
    y2 = jnp.transpose(attention_gate(xp2, hc_w_scaled, hc_shift), (0, 3, 2, 1))
    return 0.5 * (y1 + y2)


# ----------------------------- pure-JAX reference -----------------------------

def _gate_reference(x, conv_w, bn_s, bn_t):
    mx = jnp.max(x, axis=1, keepdims=True)
    mn = jnp.mean(x, axis=1, keepdims=True)
    comp = jnp.concatenate([mx, mn], axis=1)                     # (B, 2, R, S)
    conv = jax.lax.conv_general_dilated(
        comp, conv_w[None], window_strides=(1, 1),
        padding=[(PAD, PAD), (PAD, PAD)],
        dimension_numbers=("NCHW", "OIHW", "NCHW"),
        precision=jax.lax.Precision.HIGHEST)
    scale = jax.nn.sigmoid(conv * bn_s + bn_t)
    return x * scale


def cse_attention_reference(x, cw_w, cw_s, cw_t, hc_w, hc_s, hc_t):
    xp1 = jnp.transpose(x, (0, 2, 1, 3))
    y1 = jnp.transpose(_gate_reference(xp1, cw_w, cw_s, cw_t), (0, 2, 1, 3))
    xp2 = jnp.transpose(x, (0, 3, 2, 1))
    y2 = jnp.transpose(_gate_reference(xp2, hc_w, hc_s, hc_t), (0, 3, 2, 1))
    return 0.5 * (y1 + y2)


if __name__ == "__main__":
    key = jax.random.PRNGKey(0)
    k_x, k_w1, k_w2 = jax.random.split(key, 3)

    B, C, H, W = 2, 4, 16, 16
    x = jax.random.normal(k_x, (B, C, H, W), dtype=jnp.float32)

    # Conv2d(2, 1, 7, bias=False) weights for the two gates: (1,2,7,7) -> (2,7,7).
    cw_w = jax.random.normal(k_w1, (2, K, K), jnp.float32) / (2 * K * K) ** 0.5
    hc_w = jax.random.normal(k_w2, (2, K, K), jnp.float32) / (2 * K * K) ** 0.5

    # BatchNorm2d(1) eval-mode params for the two gates (deterministic values).
    # TODO(synk): train-mode BN (batch statistics) is not implemented; eval-mode
    # running-stat semantics are folded into the conv weight / shift instead.
    def fold_bn(gamma, beta, mean, var, eps=1e-5):
        s = jnp.float32(gamma) / jnp.sqrt(jnp.float32(var) + eps)
        t = jnp.float32(beta) - jnp.float32(mean) * s
        return s, t

    cw_s, cw_t = fold_bn(1.25, -0.10, 0.05, 0.80)
    hc_s, hc_t = fold_bn(0.90, 0.20, -0.03, 1.10)

    out = cse_attention(
        x,
        cw_w * cw_s, jnp.reshape(cw_t, (1,)).astype(jnp.float32),
        hc_w * hc_s, jnp.reshape(hc_t, (1,)).astype(jnp.float32),
    )
    out = jax.block_until_ready(out)

    ref = cse_attention_reference(x, cw_w, cw_s, cw_t, hc_w, hc_s, hc_t)
    assert out.shape == (B, C, H, W)
    assert jnp.max(jnp.abs(out - ref)) < 1e-4, "mismatch vs reference"

    print("KERNEL_OK")
</pallas_src>

<mosaic_0001>
module attributes {stable_mosaic.version = 11 : i64} {
  func.func @attention_gate_kernel(%arg0: i32, %arg1: memref<1x16x64xf32, #tpu.memory_space<vmem>>, %arg2: memref<2x7x7xf32, #tpu.memory_space<smem>>, %arg3: memref<1xf32, #tpu.memory_space<smem>>, %arg4: memref<1x16x64xf32, #tpu.memory_space<vmem>>) attributes {dimension_semantics = [#tpu.dimension_semantics<parallel>], iteration_bounds = array<i64: 2>, scalar_prefetch = 0 : i64, scratch_operands = 0 : i64, tpu.core_type = #tpu.core_type<tc>, window_params = [{transform_indices = @transform_0, window_bounds = array<i64: 1, 16, 64>}, {transform_indices = @transform_1, window_bounds = array<i64: 2, 7, 7>}, {transform_indices = @transform_2, window_bounds = array<i64: 1>}, {transform_indices = @transform_3, window_bounds = array<i64: 1, 16, 64>}]} {
    %c0 = arith.constant 0 : index
    %c0_0 = arith.constant 0 : index
    %c0_1 = arith.constant 0 : index
    %0 = vector.load %arg1[%c0, %c0_0, %c0_1] : memref<1x16x64xf32, #tpu.memory_space<vmem>>, vector<1x16x64xf32>
    %cst = arith.constant dense<0xFF800000> : vector<1x64xf32>
    %1 = vector.multi_reduction <maximumf>, %0, %cst [1] : vector<1x16x64xf32> to vector<1x64xf32>
    %cst_2 = arith.constant dense<0.000000e+00> : vector<1x64xf32>
    %2 = vector.multi_reduction <add>, %0, %cst_2 [1] : vector<1x16x64xf32> to vector<1x64xf32>
    %cst_3 = arith.constant 1.600000e+01 : f32
    %3 = vector.broadcast %cst_3 : f32 to vector<1x64xf32>
    %4 = arith.divf %2, %3 : vector<1x64xf32>
    %cst_4 = arith.constant 0.000000e+00 : f32
    %5 = vector.broadcast %cst_4 : f32 to vector<3x4xf32>
    %6 = vector.extract_strided_slice %1 {offsets = [0, 0], sizes = [1, 4], strides = [1, 1]} : vector<1x64xf32> to vector<1x4xf32>
    %7 = vector.extract_strided_slice %1 {offsets = [0, 4], sizes = [1, 4], strides = [1, 1]} : vector<1x64xf32> to vector<1x4xf32>
    %8 = vector.extract_strided_slice %1 {offsets = [0, 8], sizes = [1, 4], strides = [1, 1]} : vector<1x64xf32> to vector<1x4xf32>
    %9 = vector.extract_strided_slice %1 {offsets = [0, 12], sizes = [1, 4], strides = [1, 1]} : vector<1x64xf32> to vector<1x4xf32>
    %10 = vector.extract_strided_slice %1 {offsets = [0, 16], sizes = [1, 4], strides = [1, 1]} : vector<1x64xf32> to vector<1x4xf32>
    %11 = vector.extract_strided_slice %1 {offsets = [0, 20], sizes = [1, 4], strides = [1, 1]} : vector<1x64xf32> to vector<1x4xf32>
    %12 = vector.extract_strided_slice %1 {offsets = [0, 24], sizes = [1, 4], strides = [1, 1]} : vector<1x64xf32> to vector<1x4xf32>
    %13 = vector.extract_strided_slice %1 {offsets = [0, 28], sizes = [1, 4], strides = [1, 1]} : vector<1x64xf32> to vector<1x4xf32>
    %14 = vector.extract_strided_slice %1 {offsets = [0, 32], sizes = [1, 4], strides = [1, 1]} : vector<1x64xf32> to vector<1x4xf32>
    %15 = vector.extract_strided_slice %1 {offsets = [0, 36], sizes = [1, 4], strides = [1, 1]} : vector<1x64xf32> to vector<1x4xf32>
    %16 = vector.extract_strided_slice %1 {offsets = [0, 40], sizes = [1, 4], strides = [1, 1]} : vector<1x64xf32> to vector<1x4xf32>
    %17 = vector.extract_strided_slice %1 {offsets = [0, 44], sizes = [1, 4], strides = [1, 1]} : vector<1x64xf32> to vector<1x4xf32>
    %18 = vector.extract_strided_slice %1 {offsets = [0, 48], sizes = [1, 4], strides = [1, 1]} : vector<1x64xf32> to vector<1x4xf32>
    %19 = vector.extract_strided_slice %1 {offsets = [0, 52], sizes = [1, 4], strides = [1, 1]} : vector<1x64xf32> to vector<1x4xf32>
    %20 = vector.extract_strided_slice %1 {offsets = [0, 56], sizes = [1, 4], strides = [1, 1]} : vector<1x64xf32> to vector<1x4xf32>
    %21 = vector.extract_strided_slice %1 {offsets = [0, 60], sizes = [1, 4], strides = [1, 1]} : vector<1x64xf32> to vector<1x4xf32>
    %22 = tpu.concatenate %5, %6, %7, %8, %9, %10, %11, %12, %13, %14, %15, %16, %17, %18, %19, %20 in 0 : vector<3x4xf32>, vector<1x4xf32>, vector<1x4xf32>, vector<1x4xf32>, vector<1x4xf32>, vector<1x4xf32>, vector<1x4xf32>, vector<1x4xf32>, vector<1x4xf32>, vector<1x4xf32>, vector<1x4xf32>, vector<1x4xf32>, vector<1x4xf32>, vector<1x4xf32>, vector<1x4xf32>, vector<1x4xf32> -> vector<18x4xf32>
    %23 = tpu.concatenate %21, %5 in 0 : vector<1x4xf32>, vector<3x4xf32> -> vector<4x4xf32>
    %24 = tpu.concatenate %22, %23 in 0 : vector<18x4xf32>, vector<4x4xf32> -> vector<22x4xf32>
    %cst_5 = arith.constant 0.000000e+00 : f32
    %25 = vector.broadcast %cst_5 : f32 to vector<22x124xf32>
    %26 = tpu.concatenate %24, %25 in 1 : vector<22x4xf32>, vector<22x124xf32> -> vector<22x128xf32>
    %cst_6 = arith.constant 0.000000e+00 : f32
    %27 = vector.broadcast %cst_6 : f32 to vector<3x4xf32>
    %28 = vector.extract_strided_slice %4 {offsets = [0, 0], sizes = [1, 4], strides = [1, 1]} : vector<1x64xf32> to vector<1x4xf32>
    %29 = vector.extract_strided_slice %4 {offsets = [0, 4], sizes = [1, 4], strides = [1, 1]} : vector<1x64xf32> to vector<1x4xf32>
    %30 = vector.extract_strided_slice %4 {offsets = [0, 8], sizes = [1, 4], strides = [1, 1]} : vector<1x64xf32> to vector<1x4xf32>
    %31 = vector.extract_strided_slice %4 {offsets = [0, 12], sizes = [1, 4], strides = [1, 1]} : vector<1x64xf32> to vector<1x4xf32>
    %32 = vector.extract_strided_slice %4 {offsets = [0, 16], sizes = [1, 4], strides = [1, 1]} : vector<1x64xf32> to vector<1x4xf32>
    %33 = vector.extract_strided_slice %4 {offsets = [0, 20], sizes = [1, 4], strides = [1, 1]} : vector<1x64xf32> to vector<1x4xf32>
    %34 = vector.extract_strided_slice %4 {offsets = [0, 24], sizes = [1, 4], strides = [1, 1]} : vector<1x64xf32> to vector<1x4xf32>
    %35 = vector.extract_strided_slice %4 {offsets = [0, 28], sizes = [1, 4], strides = [1, 1]} : vector<1x64xf32> to vector<1x4xf32>
    %36 = vector.extract_strided_slice %4 {offsets = [0, 32], sizes = [1, 4], strides = [1, 1]} : vector<1x64xf32> to vector<1x4xf32>
    %37 = vector.extract_strided_slice %4 {offsets = [0, 36], sizes = [1, 4], strides = [1, 1]} : vector<1x64xf32> to vector<1x4xf32>
    %38 = vector.extract_strided_slice %4 {offsets = [0, 40], sizes = [1, 4], strides = [1, 1]} : vector<1x64xf32> to vector<1x4xf32>
    %39 = vector.extract_strided_slice %4 {offsets = [0, 44], sizes = [1, 4], strides = [1, 1]} : vector<1x64xf32> to vector<1x4xf32>
    %40 = vector.extract_strided_slice %4 {offsets = [0, 48], sizes = [1, 4], strides = [1, 1]} : vector<1x64xf32> to vector<1x4xf32>
    %41 = vector.extract_strided_slice %4 {offsets = [0, 52], sizes = [1, 4], strides = [1, 1]} : vector<1x64xf32> to vector<1x4xf32>
    %42 = vector.extract_strided_slice %4 {offsets = [0, 56], sizes = [1, 4], strides = [1, 1]} : vector<1x64xf32> to vector<1x4xf32>
    %43 = vector.extract_strided_slice %4 {offsets = [0, 60], sizes = [1, 4], strides = [1, 1]} : vector<1x64xf32> to vector<1x4xf32>
    %44 = tpu.concatenate %27, %28, %29, %30, %31, %32, %33, %34, %35, %36, %37, %38, %39, %40, %41, %42 in 0 : vector<3x4xf32>, vector<1x4xf32>, vector<1x4xf32>, vector<1x4xf32>, vector<1x4xf32>, vector<1x4xf32>, vector<1x4xf32>, vector<1x4xf32>, vector<1x4xf32>, vector<1x4xf32>, vector<1x4xf32>, vector<1x4xf32>, vector<1x4xf32>, vector<1x4xf32>, vector<1x4xf32>, vector<1x4xf32> -> vector<18x4xf32>
    %45 = tpu.concatenate %43, %27 in 0 : vector<1x4xf32>, vector<3x4xf32> -> vector<4x4xf32>
    %46 = tpu.concatenate %44, %45 in 0 : vector<18x4xf32>, vector<4x4xf32> -> vector<22x4xf32>
    %cst_7 = arith.constant 0.000000e+00 : f32
    %47 = vector.broadcast %cst_7 : f32 to vector<22x124xf32>
    %48 = tpu.concatenate %46, %47 in 1 : vector<22x4xf32>, vector<22x124xf32> -> vector<22x128xf32>
    %cst_8 = arith.constant 0.000000e+00 : f32
    %49 = vector.broadcast %cst_8 : f32 to vector<16x128xf32>
    %cst_9 = arith.constant 0.000000e+00 : f32
    %50 = vector.broadcast %cst_9 : f32 to vector<16x128xf32>
    %51 = vector.extract_strided_slice %26 {offsets = [0, 0], sizes = [16, 128], strides = [1, 1]} : vector<22x128xf32> to vector<16x128xf32>
    %c0_10 = arith.constant 0 : index
    %c0_11 = arith.constant 0 : index
    %c3 = arith.constant 3 : index
    %52 = memref.load %arg2[%c0_10, %c0_11, %c3] : memref<2x7x7xf32, #tpu.memory_space<smem>>
    %53 = vector.broadcast %52 : f32 to vector<16x128xf32>
    %54 = arith.mulf %51, %53 : vector<16x128xf32>
    %55 = arith.addf %49, %54 : vector<16x128xf32>
    %c1_i32 = arith.constant 1 : i32
    %56 = tpu.dynamic_rotate %51 by %c1_i32 dim 1 : vector<16x128xf32>, i32 -> vector<16x128xf32>
    %c0_12 = arith.constant 0 : index
    %c0_13 = arith.constant 0 : index
    %c2 = arith.constant 2 : index
    %57 = memref.load %arg2[%c0_12, %c0_13, %c2] : memref<2x7x7xf32, #tpu.memory_space<smem>>
    %58 = vector.broadcast %57 : f32 to vector<16x128xf32>
    %59 = arith.mulf %56, %58 : vector<16x128xf32>
    %60 = arith.addf %55, %59 : vector<16x128xf32>
    %c1_i32_14 = arith.constant 1 : i32
    %61 = tpu.dynamic_rotate %56 by %c1_i32_14 dim 1 : vector<16x128xf32>, i32 -> vector<16x128xf32>
    %c0_15 = arith.constant 0 : index
    %c0_16 = arith.constant 0 : index
    %c1 = arith.constant 1 : index
    %62 = memref.load %arg2[%c0_15, %c0_16, %c1] : memref<2x7x7xf32, #tpu.memory_space<smem>>
    %63 = vector.broadcast %62 : f32 to vector<16x128xf32>
    %64 = arith.mulf %61, %63 : vector<16x128xf32>
    %65 = arith.addf %60, %64 : vector<16x128xf32>
    %c1_i32_17 = arith.constant 1 : i32
    %66 = tpu.dynamic_rotate %61 by %c1_i32_17 dim 1 : vector<16x128xf32>, i32 -> vector<16x128xf32>
    %c0_18 = arith.constant 0 : index
    %c0_19 = arith.constant 0 : index
    %c0_20 = arith.constant 0 : index
    %67 = memref.load %arg2[%c0_18, %c0_19, %c0_20] : memref<2x7x7xf32, #tpu.memory_space<smem>>
    %68 = vector.broadcast %67 : f32 to vector<16x128xf32>
    %69 = arith.mulf %66, %68 : vector<16x128xf32>
    %70 = arith.addf %65, %69 : vector<16x128xf32>
    %c127_i32 = arith.constant 127 : i32
    %71 = tpu.dynamic_rotate %51 by %c127_i32 dim 1 : vector<16x128xf32>, i32 -> vector<16x128xf32>
    %c0_21 = arith.constant 0 : index
    %c0_22 = arith.constant 0 : index
    %c4 = arith.constant 4 : index
    %72 = memref.load %arg2[%c0_21, %c0_22, %c4] : memref<2x7x7xf32, #tpu.memory_space<smem>>
    %73 = vector.broadcast %72 : f32 to vector<16x128xf32>
    %74 = arith.mulf %71, %73 : vector<16x128xf32>
    %75 = arith.addf %50, %74 : vector<16x128xf32>
    %c127_i32_23 = arith.constant 127 : i32
    %76 = tpu.dynamic_rotate %71 by %c127_i32_23 dim 1 : vector<16x128xf32>, i32 -> vector<16x128xf32>
    %c0_24 = arith.constant 0 : index
    %c0_25 = arith.constant 0 : index
    %c5 = arith.constant 5 : index
    %77 = memref.load %arg2[%c0_24, %c0_25, %c5] : memref<2x7x7xf32, #tpu.memory_space<smem>>
    %78 = vector.broadcast %77 : f32 to vector<16x128xf32>
    %79 = arith.mulf %76, %78 : vector<16x128xf32>
    %80 = arith.addf %75, %79 : vector<16x128xf32>
    %c127_i32_26 = arith.constant 127 : i32
    %81 = tpu.dynamic_rotate %76 by %c127_i32_26 dim 1 : vector<16x128xf32>, i32 -> vector<16x128xf32>
    %c0_27 = arith.constant 0 : index
    %c0_28 = arith.constant 0 : index
    %c6 = arith.constant 6 : index
    %82 = memref.load %arg2[%c0_27, %c0_28, %c6] : memref<2x7x7xf32, #tpu.memory_space<smem>>
    %83 = vector.broadcast %82 : f32 to vector<16x128xf32>
    %84 = arith.mulf %81, %83 : vector<16x128xf32>
    %85 = arith.addf %80, %84 : vector<16x128xf32>
    %86 = vector.extract_strided_slice %26 {offsets = [1, 0], sizes = [16, 128], strides = [1, 1]} : vector<22x128xf32> to vector<16x128xf32>
    %c0_29 = arith.constant 0 : index
    %c1_30 = arith.constant 1 : index
    %c3_31 = arith.constant 3 : index
    %87 = memref.load %arg2[%c0_29, %c1_30, %c3_31] : memref<2x7x7xf32, #tpu.memory_space<smem>>
    %88 = vector.broadcast %87 : f32 to vector<16x128xf32>
    %89 = arith.mulf %86, %88 : vector<16x128xf32>
    %90 = arith.addf %70, %89 : vector<16x128xf32>
    %c1_i32_32 = arith.constant 1 : i32
    %91 = tpu.dynamic_rotate %86 by %c1_i32_32 dim 1 : vector<16x128xf32>, i32 -> vector<16x128xf32>
    %c0_33 = arith.constant 0 : index
    %c1_34 = arith.constant 1 : index
    %c2_35 = arith.constant 2 : index
    %92 = memref.load %arg2[%c0_33, %c1_34, %c2_35] : memref<2x7x7xf32, #tpu.memory_space<smem>>
    %93 = vector.broadcast %92 : f32 to vector<16x128xf32>
    %94 = arith.mulf %91, %93 : vector<16x128xf32>
    %95 = arith.addf %90, %94 : vector<16x128xf32>
    %c1_i32_36 = arith.constant 1 : i32
    %96 = tpu.dynamic_rotate %91 by %c1_i32_36 dim 1 : vector<16x128xf32>, i32 -> vector<16x128xf32>
    %c0_37 = arith.constant 0 : index
    %c1_38 = arith.constant 1 : index
    %c1_39 = arith.constant 1 : index
    %97 = memref.load %arg2[%c0_37, %c1_38, %c1_39] : memref<2x7x7xf32, #tpu.memory_space<smem>>
    %98 = vector.broadcast %97 : f32 to vector<16x128xf32>
    %99 = arith.mulf %96, %98 : vector<16x128xf32>
    %100 = arith.addf %95, %99 : vector<16x128xf32>
    %c1_i32_40 = arith.constant 1 : i32
    %101 = tpu.dynamic_rotate %96 by %c1_i32_40 dim 1 : vector<16x128xf32>, i32 -> vector<16x128xf32>
    %c0_41 = arith.constant 0 : index
    %c1_42 = arith.constant 1 : index
    %c0_43 = arith.constant 0 : index
    %102 = memref.load %arg2[%c0_41, %c1_42, %c0_43] : memref<2x7x7xf32, #tpu.memory_space<smem>>
    %103 = vector.broadcast %102 : f32 to vector<16x128xf32>
    %104 = arith.mulf %101, %103 : vector<16x128xf32>
    %105 = arith.addf %100, %104 : vector<16x128xf32>
    %c127_i32_44 = arith.constant 127 : i32
    %106 = tpu.dynamic_rotate %86 by %c127_i32_44 dim 1 : vector<16x128xf32>, i32 -> vector<16x128xf32>
    %c0_45 = arith.constant 0 : index
    %c1_46 = arith.constant 1 : index
    %c4_47 = arith.constant 4 : index
    %107 = memref.load %arg2[%c0_45, %c1_46, %c4_47] : memref<2x7x7xf32, #tpu.memory_space<smem>>
    %108 = vector.broadcast %107 : f32 to vector<16x128xf32>
    %109 = arith.mulf %106, %108 : vector<16x128xf32>
    %110 = arith.addf %85, %109 : vector<16x128xf32>
    %c127_i32_48 = arith.constant 127 : i32
    %111 = tpu.dynamic_rotate %106 by %c127_i32_48 dim 1 : vector<16x128xf32>, i32 -> vector<16x128xf32>
    %c0_49 = arith.constant 0 : index
    %c1_50 = arith.constant 1 : index
    %c5_51 = arith.constant 5 : index
    %112 = memref.load %arg2[%c0_49, %c1_50, %c5_51] : memref<2x7x7xf32, #tpu.memory_space<smem>>
    %113 = vector.broadcast %112 : f32 to vector<16x128xf32>
    %114 = arith.mulf %111, %113 : vector<16x128xf32>
    %115 = arith.addf %110, %114 : vector<16x128xf32>
    %c127_i32_52 = arith.constant 127 : i32
    %116 = tpu.dynamic_rotate %111 by %c127_i32_52 dim 1 : vector<16x128xf32>, i32 -> vector<16x128xf32>
    %c0_53 = arith.constant 0 : index
    %c1_54 = arith.constant 1 : index
    %c6_55 = arith.constant 6 : index
    %117 = memref.load %arg2[%c0_53, %c1_54, %c6_55] : memref<2x7x7xf32, #tpu.memory_space<smem>>
    %118 = vector.broadcast %117 : f32 to vector<16x128xf32>
    %119 = arith.mulf %116, %118 : vector<16x128xf32>
    %120 = arith.addf %115, %119 : vector<16x128xf32>
    %121 = vector.extract_strided_slice %26 {offsets = [2, 0], sizes = [16, 128], strides = [1, 1]} : vector<22x128xf32> to vector<16x128xf32>
    %c0_56 = arith.constant 0 : index
    %c2_57 = arith.constant 2 : index
    %c3_58 = arith.constant 3 : index
    %122 = memref.load %arg2[%c0_56, %c2_57, %c3_58] : memref<2x7x7xf32, #tpu.memory_space<smem>>
    %123 = vector.broadcast %122 : f32 to vector<16x128xf32>
    %124 = arith.mulf %121, %123 : vector<16x128xf32>
    %125 = arith.addf %105, %124 : vector<16x128xf32>
    %c1_i32_59 = arith.constant 1 : i32
    %126 = tpu.dynamic_rotate %121 by %c1_i32_59 dim 1 : vector<16x128xf32>, i32 -> vector<16x128xf32>
    %c0_60 = arith.constant 0 : index
    %c2_61 = arith.constant 2 : index
    %c2_62 = arith.constant 2 : index
    %127 = memref.load %arg2[%c0_60, %c2_61, %c2_62] : memref<2x7x7xf32, #tpu.memory_space<smem>>
    %128 = vector.broadcast %127 : f32 to vector<16x128xf32>
    %129 = arith.mulf %126, %128 : vector<16x128xf32>
    %130 = arith.addf %125, %129 : vector<16x128xf32>
    %c1_i32_63 = arith.constant 1 : i32
    %131 = tpu.dynamic_rotate %126 by %c1_i32_63 dim 1 : vector<16x128xf32>, i32 -> vector<16x128xf32>
    %c0_64 = arith.constant 0 : index
    %c2_65 = arith.constant 2 : index
    %c1_66 = arith.constant 1 : index
    %132 = memref.load %arg2[%c0_64, %c2_65, %c1_66] : memref<2x7x7xf32, #tpu.memory_space<smem>>
    %133 = vector.broadcast %132 : f32 to vector<16x128xf32>
    %134 = arith.mulf %131, %133 : vector<16x128xf32>
    %135 = arith.addf %130, %134 : vector<16x128xf32>
    %c1_i32_67 = arith.constant 1 : i32
    %136 = tpu.dynamic_rotate %131 by %c1_i32_67 dim 1 : vector<16x128xf32>, i32 -> vector<16x128xf32>
    %c0_68 = arith.constant 0 : index
    %c2_69 = arith.constant 2 : index
    %c0_70 = arith.constant 0 : index
    %137 = memref.load %arg2[%c0_68, %c2_69, %c0_70] : memref<2x7x7xf32, #tpu.memory_space<smem>>
    %138 = vector.broadcast %137 : f32 to vector<16x128xf32>
    %139 = arith.mulf %136, %138 : vector<16x128xf32>
    %140 = arith.addf %135, %139 : vector<16x128xf32>
    %c127_i32_71 = arith.constant 127 : i32
    %141 = tpu.dynamic_rotate %121 by %c127_i32_71 dim 1 : vector<16x128xf32>, i32 -> vector<16x128xf32>
    %c0_72 = arith.constant 0 : index
    %c2_73 = arith.constant 2 : index
    %c4_74 = arith.constant 4 : index
    %142 = memref.load %arg2[%c0_72, %c2_73, %c4_74] : memref<2x7x7xf32, #tpu.memory_space<smem>>
    %143 = vector.broadcast %142 : f32 to vector<16x128xf32>
    %144 = arith.mulf %141, %143 : vector<16x128xf32>
    %145 = arith.addf %120, %144 : vector<16x128xf32>
    %c127_i32_75 = arith.constant 127 : i32
    %146 = tpu.dynamic_rotate %141 by %c127_i32_75 dim 1 : vector<16x128xf32>, i32 -> vector<16x128xf32>
    %c0_76 = arith.constant 0 : index
    %c2_77 = arith.constant 2 : index
    %c5_78 = arith.constant 5 : index
    %147 = memref.load %arg2[%c0_76, %c2_77, %c5_78] : memref<2x7x7xf32, #tpu.memory_space<smem>>
    %148 = vector.broadcast %147 : f32 to vector<16x128xf32>
    %149 = arith.mulf %146, %148 : vector<16x128xf32>
    %150 = arith.addf %145, %149 : vector<16x128xf32>
    %c127_i32_79 = arith.constant 127 : i32
    %151 = tpu.dynamic_rotate %146 by %c127_i32_79 dim 1 : vector<16x128xf32>, i32 -> vector<16x128xf32>
    %c0_80 = arith.constant 0 : index
    %c2_81 = arith.constant 2 : index
    %c6_82 = arith.constant 6 : index
    %152 = memref.load %arg2[%c0_80, %c2_81, %c6_82] : memref<2x7x7xf32, #tpu.memory_space<smem>>
    %153 = vector.broadcast %152 : f32 to vector<16x128xf32>
    %154 = arith.mulf %151, %153 : vector<16x128xf32>
    %155 = arith.addf %150, %154 : vector<16x128xf32>
    %156 = vector.extract_strided_slice %26 {offsets = [3, 0], sizes = [16, 128], strides = [1, 1]} : vector<22x128xf32> to vector<16x128xf32>
    %c0_83 = arith.constant 0 : index
    %c3_84 = arith.constant 3 : index
    %c3_85 = arith.constant 3 : index
    %157 = memref.load %arg2[%c0_83, %c3_84, %c3_85] : memref<2x7x7xf32, #tpu.memory_space<smem>>
    %158 = vector.broadcast %157 : f32 to vector<16x128xf32>
    %159 = arith.mulf %156, %158 : vector<16x128xf32>
    %160 = arith.addf %140, %159 : vector<16x128xf32>
    %c1_i32_86 = arith.constant 1 : i32
    %161 = tpu.dynamic_rotate %156 by %c1_i32_86 dim 1 : vector<16x128xf32>, i32 -> vector<16x128xf32>
    %c0_87 = arith.constant 0 : index
    %c3_88 = arith.constant 3 : index
    %c2_89 = arith.constant 2 : index
    %162 = memref.load %arg2[%c0_87, %c3_88, %c2_89] : memref<2x7x7xf32, #tpu.memory_space<smem>>
    %163 = vector.broadcast %162 : f32 to vector<16x128xf32>
    %164 = arith.mulf %161, %163 : vector<16x128xf32>
    %165 = arith.addf %160, %164 : vector<16x128xf32>
    %c1_i32_90 = arith.constant 1 : i32
    %166 = tpu.dynamic_rotate %161 by %c1_i32_90 dim 1 : vector<16x128xf32>, i32 -> vector<16x128xf32>
    %c0_91 = arith.constant 0 : index
    %c3_92 = arith.constant 3 : index
    %c1_93 = arith.constant 1 : index
    %167 = memref.load %arg2[%c0_91, %c3_92, %c1_93] : memref<2x7x7xf32, #tpu.memory_space<smem>>
    %168 = vector.broadcast %167 : f32 to vector<16x128xf32>
    %169 = arith.mulf %166, %168 : vector<16x128xf32>
    %170 = arith.addf %165, %169 : vector<16x128xf32>
    %c1_i32_94 = arith.constant 1 : i32
    %171 = tpu.dynamic_rotate %166 by %c1_i32_94 dim 1 : vector<16x128xf32>, i32 -> vector<16x128xf32>
    %c0_95 = arith.constant 0 : index
    %c3_96 = arith.constant 3 : index
    %c0_97 = arith.constant 0 : index
    %172 = memref.load %arg2[%c0_95, %c3_96, %c0_97] : memref<2x7x7xf32, #tpu.memory_space<smem>>
    %173 = vector.broadcast %172 : f32 to vector<16x128xf32>
    %174 = arith.mulf %171, %173 : vector<16x128xf32>
    %175 = arith.addf %170, %174 : vector<16x128xf32>
    %c127_i32_98 = arith.constant 127 : i32
    %176 = tpu.dynamic_rotate %156 by %c127_i32_98 dim 1 : vector<16x128xf32>, i32 -> vector<16x128xf32>
    %c0_99 = arith.constant 0 : index
    %c3_100 = arith.constant 3 : index
    %c4_101 = arith.constant 4 : index
    %177 = memref.load %arg2[%c0_99, %c3_100, %c4_101] : memref<2x7x7xf32, #tpu.memory_space<smem>>
    %178 = vector.broadcast %177 : f32 to vector<16x128xf32>
    %179 = arith.mulf %176, %178 : vector<16x128xf32>
    %180 = arith.addf %155, %179 : vector<16x128xf32>
    %c127_i32_102 = arith.constant 127 : i32
    %181 = tpu.dynamic_rotate %176 by %c127_i32_102 dim 1 : vector<16x128xf32>, i32 -> vector<16x128xf32>
    %c0_103 = arith.constant 0 : index
    %c3_104 = arith.constant 3 : index
    %c5_105 = arith.constant 5 : index
    %182 = memref.load %arg2[%c0_103, %c3_104, %c5_105] : memref<2x7x7xf32, #tpu.memory_space<smem>>
    %183 = vector.broadcast %182 : f32 to vector<16x128xf32>
    %184 = arith.mulf %181, %183 : vector<16x128xf32>
    %185 = arith.addf %180, %184 : vector<16x128xf32>
    %c127_i32_106 = arith.constant 127 : i32
    %186 = tpu.dynamic_rotate %181 by %c127_i32_106 dim 1 : vector<16x128xf32>, i32 -> vector<16x128xf32>
    %c0_107 = arith.constant 0 : index
    %c3_108 = arith.constant 3 : index
    %c6_109 = arith.constant 6 : index
    %187 = memref.load %arg2[%c0_107, %c3_108, %c6_109] : memref<2x7x7xf32, #tpu.memory_space<smem>>
    %188 = vector.broadcast %187 : f32 to vector<16x128xf32>
    %189 = arith.mulf %186, %188 : vector<16x128xf32>
    %190 = arith.addf %185, %189 : vector<16x128xf32>
    %191 = vector.extract_strided_slice %26 {offsets = [4, 0], sizes = [16, 128], strides = [1, 1]} : vector<22x128xf32> to vector<16x128xf32>
    %c0_110 = arith.constant 0 : index
    %c4_111 = arith.constant 4 : index
    %c3_112 = arith.constant 3 : index
    %192 = memref.load %arg2[%c0_110, %c4_111, %c3_112] : memref<2x7x7xf32, #tpu.memory_space<smem>>
    %193 = vector.broadcast %192 : f32 to vector<16x128xf32>
    %194 = arith.mulf %191, %193 : vector<16x128xf32>
    %195 = arith.addf %175, %194 : vector<16x128xf32>
    %c1_i32_113 = arith.constant 1 : i32
    %196 = tpu.dynamic_rotate %191 by %c1_i32_113 dim 1 : vector<16x128xf32>, i32 -> vector<16x128xf32>
    %c0_114 = arith.constant 0 : index
    %c4_115 = arith.constant 4 : index
    %c2_116 = arith.constant 2 : index
    %197 = memref.load %arg2[%c0_114, %c4_115, %c2_116] : memref<2x7x7xf32, #tpu.memory_space<smem>>
    %198 = vector.broadcast %197 : f32 to vector<16x128xf32>
    %199 = arith.mulf %196, %198 : vector<16x128xf32>
    %200 = arith.addf %195, %199 : vector<16x128xf32>
    %c1_i32_117 = arith.constant 1 : i32
    %201 = tpu.dynamic_rotate %196 by %c1_i32_117 dim 1 : vector<16x128xf32>, i32 -> vector<16x128xf32>
    %c0_118 = arith.constant 0 : index
    %c4_119 = arith.constant 4 : index
    %c1_120 = arith.constant 1 : index
    %202 = memref.load %arg2[%c0_118, %c4_119, %c1_120] : memref<2x7x7xf32, #tpu.memory_space<smem>>
    %203 = vector.broadcast %202 : f32 to vector<16x128xf32>
    %204 = arith.mulf %201, %203 : vector<16x128xf32>
    %205 = arith.addf %200, %204 : vector<16x128xf32>
    %c1_i32_121 = arith.constant 1 : i32
    %206 = tpu.dynamic_rotate %201 by %c1_i32_121 dim 1 : vector<16x128xf32>, i32 -> vector<16x128xf32>
    %c0_122 = arith.constant 0 : index
    %c4_123 = arith.constant 4 : index
    %c0_124 = arith.constant 0 : index
    %207 = memref.load %arg2[%c0_122, %c4_123, %c0_124] : memref<2x7x7xf32, #tpu.memory_space<smem>>
    %208 = vector.broadcast %207 : f32 to vector<16x128xf32>
    %209 = arith.mulf %206, %208 : vector<16x128xf32>
    %210 = arith.addf %205, %209 : vector<16x128xf32>
    %c127_i32_125 = arith.constant 127 : i32
    %211 = tpu.dynamic_rotate %191 by %c127_i32_125 dim 1 : vector<16x128xf32>, i32 -> vector<16x128xf32>
    %c0_126 = arith.constant 0 : index
    %c4_127 = arith.constant 4 : index
    %c4_128 = arith.constant 4 : index
    %212 = memref.load %arg2[%c0_126, %c4_127, %c4_128] : memref<2x7x7xf32, #tpu.memory_space<smem>>
    %213 = vector.broadcast %212 : f32 to vector<16x128xf32>
    %214 = arith.mulf %211, %213 : vector<16x128xf32>
    %215 = arith.addf %190, %214 : vector<16x128xf32>
    %c127_i32_129 = arith.constant 127 : i32
    %216 = tpu.dynamic_rotate %211 by %c127_i32_129 dim 1 : vector<16x128xf32>, i32 -> vector<16x128xf32>
    %c0_130 = arith.constant 0 : index
    %c4_131 = arith.constant 4 : index
    %c5_132 = arith.constant 5 : index
    %217 = memref.load %arg2[%c0_130, %c4_131, %c5_132] : memref<2x7x7xf32, #tpu.memory_space<smem>>
    %218 = vector.broadcast %217 : f32 to vector<16x128xf32>
    %219 = arith.mulf %216, %218 : vector<16x128xf32>
    %220 = arith.addf %215, %219 : vector<16x128xf32>
    %c127_i32_133 = arith.constant 127 : i32
    %221 = tpu.dynamic_rotate %216 by %c127_i32_133 dim 1 : vector<16x128xf32>, i32 -> vector<16x128xf32>
    %c0_134 = arith.constant 0 : index
    %c4_135 = arith.constant 4 : index
    %c6_136 = arith.constant 6 : index
    %222 = memref.load %arg2[%c0_134, %c4_135, %c6_136] : memref<2x7x7xf32, #tpu.memory_space<smem>>
    %223 = vector.broadcast %222 : f32 to vector<16x128xf32>
    %224 = arith.mulf %221, %223 : vector<16x128xf32>
    %225 = arith.addf %220, %224 : vector<16x128xf32>
    %226 = vector.extract_strided_slice %26 {offsets = [5, 0], sizes = [16, 128], strides = [1, 1]} : vector<22x128xf32> to vector<16x128xf32>
    %c0_137 = arith.constant 0 : index
    %c5_138 = arith.constant 5 : index
    %c3_139 = arith.constant 3 : index
    %227 = memref.load %arg2[%c0_137, %c5_138, %c3_139] : memref<2x7x7xf32, #tpu.memory_space<smem>>
    %228 = vector.broadcast %227 : f32 to vector<16x128xf32>
    %229 = arith.mulf %226, %228 : vector<16x128xf32>
    %230 = arith.addf %210, %229 : vector<16x128xf32>
    %c1_i32_140 = arith.constant 1 : i32
    %231 = tpu.dynamic_rotate %226 by %c1_i32_140 dim 1 : vector<16x128xf32>, i32 -> vector<16x128xf32>
    %c0_141 = arith.constant 0 : index
    %c5_142 = arith.constant 5 : index
    %c2_143 = arith.constant 2 : index
    %232 = memref.load %arg2[%c0_141, %c5_142, %c2_143] : memref<2x7x7xf32, #tpu.memory_space<smem>>
    %233 = vector.broadcast %232 : f32 to vector<16x128xf32>
    %234 = arith.mulf %231, %233 : vector<16x128xf32>
    %235 = arith.addf %230, %234 : vector<16x128xf32>
    %c1_i32_144 = arith.constant 1 : i32
    %236 = tpu.dynamic_rotate %231 by %c1_i32_144 dim 1 : vector<16x128xf32>, i32 -> vector<16x128xf32>
    %c0_145 = arith.constant 0 : index
    %c5_146 = arith.constant 5 : index
    %c1_147 = arith.constant 1 : index
    %237 = memref.load %arg2[%c0_145, %c5_146, %c1_147] : memref<2x7x7xf32, #tpu.memory_space<smem>>
    %238 = vector.broadcast %237 : f32 to vector<16x128xf32>
    %239 = arith.mulf %236, %238 : vector<16x128xf32>
    %240 = arith.addf %235, %239 : vector<16x128xf32>
    %c1_i32_148 = arith.constant 1 : i32
    %241 = tpu.dynamic_rotate %236 by %c1_i32_148 dim 1 : vector<16x128xf32>, i32 -> vector<16x128xf32>
    %c0_149 = arith.constant 0 : index
    %c5_150 = arith.constant 5 : index
    %c0_151 = arith.constant 0 : index
    %242 = memref.load %arg2[%c0_149, %c5_150, %c0_151] : memref<2x7x7xf32, #tpu.memory_space<smem>>
    %243 = vector.broadcast %242 : f32 to vector<16x128xf32>
    %244 = arith.mulf %241, %243 : vector<16x128xf32>
    %245 = arith.addf %240, %244 : vector<16x128xf32>
    %c127_i32_152 = arith.constant 127 : i32
    %246 = tpu.dynamic_rotate %226 by %c127_i32_152 dim 1 : vector<16x128xf32>, i32 -> vector<16x128xf32>
    %c0_153 = arith.constant 0 : index
    %c5_154 = arith.constant 5 : index
    %c4_155 = arith.constant 4 : index
    %247 = memref.load %arg2[%c0_153, %c5_154, %c4_155] : memref<2x7x7xf32, #tpu.memory_space<smem>>
    %248 = vector.broadcast %247 : f32 to vector<16x128xf32>
    %249 = arith.mulf %246, %248 : vector<16x128xf32>
    %250 = arith.addf %225, %249 : vector<16x128xf32>
    %c127_i32_156 = arith.constant 127 : i32
    %251 = tpu.dynamic_rotate %246 by %c127_i32_156 dim 1 : vector<16x128xf32>, i32 -> vector<16x128xf32>
    %c0_157 = arith.constant 0 : index
    %c5_158 = arith.constant 5 : index
    %c5_159 = arith.constant 5 : index
    %252 = memref.load %arg2[%c0_157, %c5_158, %c5_159] : memref<2x7x7xf32, #tpu.memory_space<smem>>
    %253 = vector.broadcast %252 : f32 to vector<16x128xf32>
    %254 = arith.mulf %251, %253 : vector<16x128xf32>
    %255 = arith.addf %250, %254 : vector<16x128xf32>
    %c127_i32_160 = arith.constant 127 : i32
    %256 = tpu.dynamic_rotate %251 by %c127_i32_160 dim 1 : vector<16x128xf32>, i32 -> vector<16x128xf32>
    %c0_161 = arith.constant 0 : index
    %c5_162 = arith.constant 5 : index
    %c6_163 = arith.constant 6 : index
    %257 = memref.load %arg2[%c0_161, %c5_162, %c6_163] : memref<2x7x7xf32, #tpu.memory_space<smem>>
    %258 = vector.broadcast %257 : f32 to vector<16x128xf32>
    %259 = arith.mulf %256, %258 : vector<16x128xf32>
    %260 = arith.addf %255, %259 : vector<16x128xf32>
    %261 = vector.extract_strided_slice %26 {offsets = [6, 0], sizes = [16, 128], strides = [1, 1]} : vector<22x128xf32> to vector<16x128xf32>
    %c0_164 = arith.constant 0 : index
    %c6_165 = arith.constant 6 : index
    %c3_166 = arith.constant 3 : index
    %262 = memref.load %arg2[%c0_164, %c6_165, %c3_166] : memref<2x7x7xf32, #tpu.memory_space<smem>>
    %263 = vector.broadcast %262 : f32 to vector<16x128xf32>
    %264 = arith.mulf %261, %263 : vector<16x128xf32>
    %265 = arith.addf %245, %264 : vector<16x128xf32>
    %c1_i32_167 = arith.constant 1 : i32
    %266 = tpu.dynamic_rotate %261 by %c1_i32_167 dim 1 : vector<16x128xf32>, i32 -> vector<16x128xf32>
    %c0_168 = arith.constant 0 : index
    %c6_169 = arith.constant 6 : index
    %c2_170 = arith.constant 2 : index
    %267 = memref.load %arg2[%c0_168, %c6_169, %c2_170] : memref<2x7x7xf32, #tpu.memory_space<smem>>
    %268 = vector.broadcast %267 : f32 to vector<16x128xf32>
    %269 = arith.mulf %266, %268 : vector<16x128xf32>
    %270 = arith.addf %265, %269 : vector<16x128xf32>
    %c1_i32_171 = arith.constant 1 : i32
    %271 = tpu.dynamic_rotate %266 by %c1_i32_171 dim 1 : vector<16x128xf32>, i32 -> vector<16x128xf32>
    %c0_172 = arith.constant 0 : index
    %c6_173 = arith.constant 6 : index
    %c1_174 = arith.constant 1 : index
    %272 = memref.load %arg2[%c0_172, %c6_173, %c1_174] : memref<2x7x7xf32, #tpu.memory_space<smem>>
    %273 = vector.broadcast %272 : f32 to vector<16x128xf32>
    %274 = arith.mulf %271, %273 : vector<16x128xf32>
    %275 = arith.addf %270, %274 : vector<16x128xf32>
    %c1_i32_175 = arith.constant 1 : i32
    %276 = tpu.dynamic_rotate %271 by %c1_i32_175 dim 1 : vector<16x128xf32>, i32 -> vector<16x128xf32>
    %c0_176 = arith.constant 0 : index
    %c6_177 = arith.constant 6 : index
    %c0_178 = arith.constant 0 : index
    %277 = memref.load %arg2[%c0_176, %c6_177, %c0_178] : memref<2x7x7xf32, #tpu.memory_space<smem>>
    %278 = vector.broadcast %277 : f32 to vector<16x128xf32>
    %279 = arith.mulf %276, %278 : vector<16x128xf32>
    %280 = arith.addf %275, %279 : vector<16x128xf32>
    %c127_i32_179 = arith.constant 127 : i32
    %281 = tpu.dynamic_rotate %261 by %c127_i32_179 dim 1 : vector<16x128xf32>, i32 -> vector<16x128xf32>
    %c0_180 = arith.constant 0 : index
    %c6_181 = arith.constant 6 : index
    %c4_182 = arith.constant 4 : index
    %282 = memref.load %arg2[%c0_180, %c6_181, %c4_182] : memref<2x7x7xf32, #tpu.memory_space<smem>>
    %283 = vector.broadcast %282 : f32 to vector<16x128xf32>
    %284 = arith.mulf %281, %283 : vector<16x128xf32>
    %285 = arith.addf %260, %284 : vector<16x128xf32>
    %c127_i32_183 = arith.constant 127 : i32
    %286 = tpu.dynamic_rotate %281 by %c127_i32_183 dim 1 : vector<16x128xf32>, i32 -> vector<16x128xf32>
    %c0_184 = arith.constant 0 : index
    %c6_185 = arith.constant 6 : index
    %c5_186 = arith.constant 5 : index
    %287 = memref.load %arg2[%c0_184, %c6_185, %c5_186] : memref<2x7x7xf32, #tpu.memory_space<smem>>
    %288 = vector.broadcast %287 : f32 to vector<16x128xf32>
    %289 = arith.mulf %286, %288 : vector<16x128xf32>
    %290 = arith.addf %285, %289 : vector<16x128xf32>
    %c127_i32_187 = arith.constant 127 : i32
    %291 = tpu.dynamic_rotate %286 by %c127_i32_187 dim 1 : vector<16x128xf32>, i32 -> vector<16x128xf32>
    %c0_188 = arith.constant 0 : index
    %c6_189 = arith.constant 6 : index
    %c6_190 = arith.constant 6 : index
    %292 = memref.load %arg2[%c0_188, %c6_189, %c6_190] : memref<2x7x7xf32, #tpu.memory_space<smem>>
    %293 = vector.broadcast %292 : f32 to vector<16x128xf32>
    %294 = arith.mulf %291, %293 : vector<16x128xf32>
    %295 = arith.addf %290, %294 : vector<16x128xf32>
    %296 = arith.addf %280, %295 : vector<16x128xf32>
    %cst_191 = arith.constant 0.000000e+00 : f32
    %297 = vector.broadcast %cst_191 : f32 to vector<16x128xf32>
    %cst_192 = arith.constant 0.000000e+00 : f32
    %298 = vector.broadcast %cst_192 : f32 to vector<16x128xf32>
    %299 = vector.extract_strided_slice %48 {offsets = [0, 0], sizes = [16, 128], strides = [1, 1]} : vector<22x128xf32> to vector<16x128xf32>
    %c1_193 = arith.constant 1 : index
    %c0_194 = arith.constant 0 : index
    %c3_195 = arith.constant 3 : index
    %300 = memref.load %arg2[%c1_193, %c0_194, %c3_195] : memref<2x7x7xf32, #tpu.memory_space<smem>>
    %301 = vector.broadcast %300 : f32 to vector<16x128xf32>
    %302 = arith.mulf %299, %301 : vector<16x128xf32>
    %303 = arith.addf %297, %302 : vector<16x128xf32>
    %c1_i32_196 = arith.constant 1 : i32
    %304 = tpu.dynamic_rotate %299 by %c1_i32_196 dim 1 : vector<16x128xf32>, i32 -> vector<16x128xf32>
    %c1_197 = arith.constant 1 : index
    %c0_198 = arith.constant 0 : index
    %c2_199 = arith.constant 2 : index
    %305 = memref.load %arg2[%c1_197, %c0_198, %c2_199] : memref<2x7x7xf32, #tpu.memory_space<smem>>
    %306 = vector.broadcast %305 : f32 to vector<16x128xf32>
    %307 = arith.mulf %304, %306 : vector<16x128xf32>
    %308 = arith.addf %303, %307 : vector<16x128xf32>
    %c1_i32_200 = arith.constant 1 : i32
    %309 = tpu.dynamic_rotate %304 by %c1_i32_200 dim 1 : vector<16x128xf32>, i32 -> vector<16x128xf32>
    %c1_201 = arith.constant 1 : index
    %c0_202 = arith.constant 0 : index
    %c1_203 = arith.constant 1 : index
    %310 = memref.load %arg2[%c1_201, %c0_202, %c1_203] : memref<2x7x7xf32, #tpu.memory_space<smem>>
    %311 = vector.broadcast %310 : f32 to vector<16x128xf32>
    %312 = arith.mulf %309, %311 : vector<16x128xf32>
    %313 = arith.addf %308, %312 : vector<16x128xf32>
    %c1_i32_204 = arith.constant 1 : i32
    %314 = tpu.dynamic_rotate %309 by %c1_i32_204 dim 1 : vector<16x128xf32>, i32 -> vector<16x128xf32>
    %c1_205 = arith.constant 1 : index
    %c0_206 = arith.constant 0 : index
    %c0_207 = arith.constant 0 : index
    %315 = memref.load %arg2[%c1_205, %c0_206, %c0_207] : memref<2x7x7xf32, #tpu.memory_space<smem>>
    %316 = vector.broadcast %315 : f32 to vector<16x128xf32>
    %317 = arith.mulf %314, %316 : vector<16x128xf32>
    %318 = arith.addf %313, %317 : vector<16x128xf32>
    %c127_i32_208 = arith.constant 127 : i32
    %319 = tpu.dynamic_rotate %299 by %c127_i32_208 dim 1 : vector<16x128xf32>, i32 -> vector<16x128xf32>
    %c1_209 = arith.constant 1 : index
    %c0_210 = arith.constant 0 : index
    %c4_211 = arith.constant 4 : index
    %320 = memref.load %arg2[%c1_209, %c0_210, %c4_211] : memref<2x7x7xf32, #tpu.memory_space<smem>>
    %321 = vector.broadcast %320 : f32 to vector<16x128xf32>
    %322 = arith.mulf %319, %321 : vector<16x128xf32>
    %323 = arith.addf %298, %322 : vector<16x128xf32>
    %c127_i32_212 = arith.constant 127 : i32
    %324 = tpu.dynamic_rotate %319 by %c127_i32_212 dim 1 : vector<16x128xf32>, i32 -> vector<16x128xf32>
    %c1_213 = arith.constant 1 : index
    %c0_214 = arith.constant 0 : index
    %c5_215 = arith.constant 5 : index
    %325 = memref.load %arg2[%c1_213, %c0_214, %c5_215] : memref<2x7x7xf32, #tpu.memory_space<smem>>
    %326 = vector.broadcast %325 : f32 to vector<16x128xf32>
    %327 = arith.mulf %324, %326 : vector<16x128xf32>
    %328 = arith.addf %323, %327 : vector<16x128xf32>
    %c127_i32_216 = arith.constant 127 : i32
    %329 = tpu.dynamic_rotate %324 by %c127_i32_216 dim 1 : vector<16x128xf32>, i32 -> vector<16x128xf32>
    %c1_217 = arith.constant 1 : index
    %c0_218 = arith.constant 0 : index
    %c6_219 = arith.constant 6 : index
    %330 = memref.load %arg2[%c1_217, %c0_218, %c6_219] : memref<2x7x7xf32, #tpu.memory_space<smem>>
    %331 = vector.broadcast %330 : f32 to vector<16x128xf32>
    %332 = arith.mulf %329, %331 : vector<16x128xf32>
    %333 = arith.addf %328, %332 : vector<16x128xf32>
    %334 = vector.extract_strided_slice %48 {offsets = [1, 0], sizes = [16, 128], strides = [1, 1]} : vector<22x128xf32> to vector<16x128xf32>
    %c1_220 = arith.constant 1 : index
    %c1_221 = arith.constant 1 : index
    %c3_222 = arith.constant 3 : index
    %335 = memref.load %arg2[%c1_220, %c1_221, %c3_222] : memref<2x7x7xf32, #tpu.memory_space<smem>>
    %336 = vector.broadcast %335 : f32 to vector<16x128xf32>
    %337 = arith.mulf %334, %336 : vector<16x128xf32>
    %338 = arith.addf %318, %337 : vector<16x128xf32>
    %c1_i32_223 = arith.constant 1 : i32
    %339 = tpu.dynamic_rotate %334 by %c1_i32_223 dim 1 : vector<16x128xf32>, i32 -> vector<16x128xf32>
    %c1_224 = arith.constant 1 : index
    %c1_225 = arith.constant 1 : index
    %c2_226 = arith.constant 2 : index
    %340 = memref.load %arg2[%c1_224, %c1_225, %c2_226] : memref<2x7x7xf32, #tpu.memory_space<smem>>
    %341 = vector.broadcast %340 : f32 to vector<16x128xf32>
    %342 = arith.mulf %339, %341 : vector<16x128xf32>
    %343 = arith.addf %338, %342 : vector<16x128xf32>
    %c1_i32_227 = arith.constant 1 : i32
    %344 = tpu.dynamic_rotate %339 by %c1_i32_227 dim 1 : vector<16x128xf32>, i32 -> vector<16x128xf32>
    %c1_228 = arith.constant 1 : index
    %c1_229 = arith.constant 1 : index
    %c1_230 = arith.constant 1 : index
    %345 = memref.load %arg2[%c1_228, %c1_229, %c1_230] : memref<2x7x7xf32, #tpu.memory_space<smem>>
    %346 = vector.broadcast %345 : f32 to vector<16x128xf32>
    %347 = arith.mulf %344, %346 : vector<16x128xf32>
    %348 = arith.addf %343, %347 : vector<16x128xf32>
    %c1_i32_231 = arith.constant 1 : i32
    %349 = tpu.dynamic_rotate %344 by %c1_i32_231 dim 1 : vector<16x128xf32>, i32 -> vector<16x128xf32>
    %c1_232 = arith.constant 1 : index
    %c1_233 = arith.constant 1 : index
    %c0_234 = arith.constant 0 : index
    %350 = memref.load %arg2[%c1_232, %c1_233, %c0_234] : memref<2x7x7xf32, #tpu.memory_space<smem>>
    %351 = vector.broadcast %350 : f32 to vector<16x128xf32>
    %352 = arith.mulf %349, %351 : vector<16x128xf32>
    %353 = arith.addf %348, %352 : vector<16x128xf32>
    %c127_i32_235 = arith.constant 127 : i32
    %354 = tpu.dynamic_rotate %334 by %c127_i32_235 dim 1 : vector<16x128xf32>, i32 -> vector<16x128xf32>
    %c1_236 = arith.constant 1 : index
    %c1_237 = arith.constant 1 : index
    %c4_238 = arith.constant 4 : index
    %355 = memref.load %arg2[%c1_236, %c1_237, %c4_238] : memref<2x7x7xf32, #tpu.memory_space<smem>>
    %356 = vector.broadcast %355 : f32 to vector<16x128xf32>
    %357 = arith.mulf %354, %356 : vector<16x128xf32>
    %358 = arith.addf %333, %357 : vector<16x128xf32>
    %c127_i32_239 = arith.constant 127 : i32
    %359 = tpu.dynamic_rotate %354 by %c127_i32_239 dim 1 : vector<16x128xf32>, i32 -> vector<16x128xf32>
    %c1_240 = arith.constant 1 : index
    %c1_241 = arith.constant 1 : index
    %c5_242 = arith.constant 5 : index
    %360 = memref.load %arg2[%c1_240, %c1_241, %c5_242] : memref<2x7x7xf32, #tpu.memory_space<smem>>
    %361 = vector.broadcast %360 : f32 to vector<16x128xf32>
    %362 = arith.mulf %359, %361 : vector<16x128xf32>
    %363 = arith.addf %358, %362 : vector<16x128xf32>
    %c127_i32_243 = arith.constant 127 : i32
    %364 = tpu.dynamic_rotate %359 by %c127_i32_243 dim 1 : vector<16x128xf32>, i32 -> vector<16x128xf32>
    %c1_244 = arith.constant 1 : index
    %c1_245 = arith.constant 1 : index
    %c6_246 = arith.constant 6 : index
    %365 = memref.load %arg2[%c1_244, %c1_245, %c6_246] : memref<2x7x7xf32, #tpu.memory_space<smem>>
    %366 = vector.broadcast %365 : f32 to vector<16x128xf32>
    %367 = arith.mulf %364, %366 : vector<16x128xf32>
    %368 = arith.addf %363, %367 : vector<16x128xf32>
    %369 = vector.extract_strided_slice %48 {offsets = [2, 0], sizes = [16, 128], strides = [1, 1]} : vector<22x128xf32> to vector<16x128xf32>
    %c1_247 = arith.constant 1 : index
    %c2_248 = arith.constant 2 : index
    %c3_249 = arith.constant 3 : index
    %370 = memref.load %arg2[%c1_247, %c2_248, %c3_249] : memref<2x7x7xf32, #tpu.memory_space<smem>>
    %371 = vector.broadcast %370 : f32 to vector<16x128xf32>
    %372 = arith.mulf %369, %371 : vector<16x128xf32>
    %373 = arith.addf %353, %372 : vector<16x128xf32>
    %c1_i32_250 = arith.constant 1 : i32
    %374 = tpu.dynamic_rotate %369 by %c1_i32_250 dim 1 : vector<16x128xf32>, i32 -> vector<16x128xf32>
    %c1_251 = arith.constant 1 : index
    %c2_252 = arith.constant 2 : index
    %c2_253 = arith.constant 2 : index
    %375 = memref.load %arg2[%c1_251, %c2_252, %c2_253] : memref<2x7x7xf32, #tpu.memory_space<smem>>
    %376 = vector.broadcast %375 : f32 to vector<16x128xf32>
    %377 = arith.mulf %374, %376 : vector<16x128xf32>
    %378 = arith.addf %373, %377 : vector<16x128xf32>
    %c1_i32_254 = arith.constant 1 : i32
    %379 = tpu.dynamic_rotate %374 by %c1_i32_254 dim 1 : vector<16x128xf32>, i32 -> vector<16x128xf32>
    %c1_255 = arith.constant 1 : index
    %c2_256 = arith.constant 2 : index
    %c1_257 = arith.constant 1 : index
    %380 = memref.load %arg2[%c1_255, %c2_256, %c1_257] : memref<2x7x7xf32, #tpu.memory_space<smem>>
    %381 = vector.broadcast %380 : f32 to vector<16x128xf32>
    %382 = arith.mulf %379, %381 : vector<16x128xf32>
    %383 = arith.addf %378, %382 : vector<16x128xf32>
    %c1_i32_258 = arith.constant 1 : i32
    %384 = tpu.dynamic_rotate %379 by %c1_i32_258 dim 1 : vector<16x128xf32>, i32 -> vector<16x128xf32>
    %c1_259 = arith.constant 1 : index
    %c2_260 = arith.constant 2 : index
    %c0_261 = arith.constant 0 : index
    %385 = memref.load %arg2[%c1_259, %c2_260, %c0_261] : memref<2x7x7xf32, #tpu.memory_space<smem>>
    %386 = vector.broadcast %385 : f32 to vector<16x128xf32>
    %387 = arith.mulf %384, %386 : vector<16x128xf32>
    %388 = arith.addf %383, %387 : vector<16x128xf32>
    %c127_i32_262 = arith.constant 127 : i32
    %389 = tpu.dynamic_rotate %369 by %c127_i32_262 dim 1 : vector<16x128xf32>, i32 -> vector<16x128xf32>
    %c1_263 = arith.constant 1 : index
    %c2_264 = arith.constant 2 : index
    %c4_265 = arith.constant 4 : index
    %390 = memref.load %arg2[%c1_263, %c2_264, %c4_265] : memref<2x7x7xf32, #tpu.memory_space<smem>>
    %391 = vector.broadcast %390 : f32 to vector<16x128xf32>
    %392 = arith.mulf %389, %391 : vector<16x128xf32>
    %393 = arith.addf %368, %392 : vector<16x128xf32>
    %c127_i32_266 = arith.constant 127 : i32
    %394 = tpu.dynamic_rotate %389 by %c127_i32_266 dim 1 : vector<16x128xf32>, i32 -> vector<16x128xf32>
    %c1_267 = arith.constant 1 : index
    %c2_268 = arith.constant 2 : index
    %c5_269 = arith.constant 5 : index
    %395 = memref.load %arg2[%c1_267, %c2_268, %c5_269] : memref<2x7x7xf32, #tpu.memory_space<smem>>
    %396 = vector.broadcast %395 : f32 to vector<16x128xf32>
    %397 = arith.mulf %394, %396 : vector<16x128xf32>
    %398 = arith.addf %393, %397 : vector<16x128xf32>
    %c127_i32_270 = arith.constant 127 : i32
    %399 = tpu.dynamic_rotate %394 by %c127_i32_270 dim 1 : vector<16x128xf32>, i32 -> vector<16x128xf32>
    %c1_271 = arith.constant 1 : index
    %c2_272 = arith.constant 2 : index
    %c6_273 = arith.constant 6 : index
    %400 = memref.load %arg2[%c1_271, %c2_272, %c6_273] : memref<2x7x7xf32, #tpu.memory_space<smem>>
    %401 = vector.broadcast %400 : f32 to vector<16x128xf32>
    %402 = arith.mulf %399, %401 : vector<16x128xf32>
    %403 = arith.addf %398, %402 : vector<16x128xf32>
    %404 = vector.extract_strided_slice %48 {offsets = [3, 0], sizes = [16, 128], strides = [1, 1]} : vector<22x128xf32> to vector<16x128xf32>
    %c1_274 = arith.constant 1 : index
    %c3_275 = arith.constant 3 : index
    %c3_276 = arith.constant 3 : index
    %405 = memref.load %arg2[%c1_274, %c3_275, %c3_276] : memref<2x7x7xf32, #tpu.memory_space<smem>>
    %406 = vector.broadcast %405 : f32 to vector<16x128xf32>
    %407 = arith.mulf %404, %406 : vector<16x128xf32>
    %408 = arith.addf %388, %407 : vector<16x128xf32>
    %c1_i32_277 = arith.constant 1 : i32
    %409 = tpu.dynamic_rotate %404 by %c1_i32_277 dim 1 : vector<16x128xf32>, i32 -> vector<16x128xf32>
    %c1_278 = arith.constant 1 : index
    %c3_279 = arith.constant 3 : index
    %c2_280 = arith.constant 2 : index
    %410 = memref.load %arg2[%c1_278, %c3_279, %c2_280] : memref<2x7x7xf32, #tpu.memory_space<smem>>
    %411 = vector.broadcast %410 : f32 to vector<16x128xf32>
    %412 = arith.mulf %409, %411 : vector<16x128xf32>
    %413 = arith.addf %408, %412 : vector<16x128xf32>
    %c1_i32_281 = arith.constant 1 : i32
    %414 = tpu.dynamic_rotate %409 by %c1_i32_281 dim 1 : vector<16x128xf32>, i32 -> vector<16x128xf32>
    %c1_282 = arith.constant 1 : index
    %c3_283 = arith.constant 3 : index
    %c1_284 = arith.constant 1 : index
    %415 = memref.load %arg2[%c1_282, %c3_283, %c1_284] : memref<2x7x7xf32, #tpu.memory_space<smem>>
    %416 = vector.broadcast %415 : f32 to vector<16x128xf32>
    %417 = arith.mulf %414, %416 : vector<16x128xf32>
    %418 = arith.addf %413, %417 : vector<16x128xf32>
    %c1_i32_285 = arith.constant 1 : i32
    %419 = tpu.dynamic_rotate %414 by %c1_i32_285 dim 1 : vector<16x128xf32>, i32 -> vector<16x128xf32>
    %c1_286 = arith.constant 1 : index
    %c3_287 = arith.constant 3 : index
    %c0_288 = arith.constant 0 : index
    %420 = memref.load %arg2[%c1_286, %c3_287, %c0_288] : memref<2x7x7xf32, #tpu.memory_space<smem>>
    %421 = vector.broadcast %420 : f32 to vector<16x128xf32>
    %422 = arith.mulf %419, %421 : vector<16x128xf32>
    %423 = arith.addf %418, %422 : vector<16x128xf32>
    %c127_i32_289 = arith.constant 127 : i32
    %424 = tpu.dynamic_rotate %404 by %c127_i32_289 dim 1 : vector<16x128xf32>, i32 -> vector<16x128xf32>
    %c1_290 = arith.constant 1 : index
    %c3_291 = arith.constant 3 : index
    %c4_292 = arith.constant 4 : index
    %425 = memref.load %arg2[%c1_290, %c3_291, %c4_292] : memref<2x7x7xf32, #tpu.memory_space<smem>>
    %426 = vector.broadcast %425 : f32 to vector<16x128xf32>
    %427 = arith.mulf %424, %426 : vector<16x128xf32>
    %428 = arith.addf %403, %427 : vector<16x128xf32>
    %c127_i32_293 = arith.constant 127 : i32
    %429 = tpu.dynamic_rotate %424 by %c127_i32_293 dim 1 : vector<16x128xf32>, i32 -> vector<16x128xf32>
    %c1_294 = arith.constant 1 : index
    %c3_295 = arith.constant 3 : index
    %c5_296 = arith.constant 5 : index
    %430 = memref.load %arg2[%c1_294, %c3_295, %c5_296] : memref<2x7x7xf32, #tpu.memory_space<smem>>
    %431 = vector.broadcast %430 : f32 to vector<16x128xf32>
    %432 = arith.mulf %429, %431 : vector<16x128xf32>
    %433 = arith.addf %428, %432 : vector<16x128xf32>
    %c127_i32_297 = arith.constant 127 : i32
    %434 = tpu.dynamic_rotate %429 by %c127_i32_297 dim 1 : vector<16x128xf32>, i32 -> vector<16x128xf32>
    %c1_298 = arith.constant 1 : index
    %c3_299 = arith.constant 3 : index
    %c6_300 = arith.constant 6 : index
    %435 = memref.load %arg2[%c1_298, %c3_299, %c6_300] : memref<2x7x7xf32, #tpu.memory_space<smem>>
    %436 = vector.broadcast %435 : f32 to vector<16x128xf32>
    %437 = arith.mulf %434, %436 : vector<16x128xf32>
    %438 = arith.addf %433, %437 : vector<16x128xf32>
    %439 = vector.extract_strided_slice %48 {offsets = [4, 0], sizes = [16, 128], strides = [1, 1]} : vector<22x128xf32> to vector<16x128xf32>
    %c1_301 = arith.constant 1 : index
    %c4_302 = arith.constant 4 : index
    %c3_303 = arith.constant 3 : index
    %440 = memref.load %arg2[%c1_301, %c4_302, %c3_303] : memref<2x7x7xf32, #tpu.memory_space<smem>>
    %441 = vector.broadcast %440 : f32 to vector<16x128xf32>
    %442 = arith.mulf %439, %441 : vector<16x128xf32>
    %443 = arith.addf %423, %442 : vector<16x128xf32>
    %c1_i32_304 = arith.constant 1 : i32
    %444 = tpu.dynamic_rotate %439 by %c1_i32_304 dim 1 : vector<16x128xf32>, i32 -> vector<16x128xf32>
    %c1_305 = arith.constant 1 : index
    %c4_306 = arith.constant 4 : index
    %c2_307 = arith.constant 2 : index
    %445 = memref.load %arg2[%c1_305, %c4_306, %c2_307] : memref<2x7x7xf32, #tpu.memory_space<smem>>
    %446 = vector.broadcast %445 : f32 to vector<16x128xf32>
    %447 = arith.mulf %444, %446 : vector<16x128xf32>
    %448 = arith.addf %443, %447 : vector<16x128xf32>
    %c1_i32_308 = arith.constant 1 : i32
    %449 = tpu.dynamic_rotate %444 by %c1_i32_308 dim 1 : vector<16x128xf32>, i32 -> vector<16x128xf32>
    %c1_309 = arith.constant 1 : index
    %c4_310 = arith.constant 4 : index
    %c1_311 = arith.constant 1 : index
    %450 = memref.load %arg2[%c1_309, %c4_310, %c1_311] : memref<2x7x7xf32, #tpu.memory_space<smem>>
    %451 = vector.broadcast %450 : f32 to vector<16x128xf32>
    %452 = arith.mulf %449, %451 : vector<16x128xf32>
    %453 = arith.addf %448, %452 : vector<16x128xf32>
    %c1_i32_312 = arith.constant 1 : i32
    %454 = tpu.dynamic_rotate %449 by %c1_i32_312 dim 1 : vector<16x128xf32>, i32 -> vector<16x128xf32>
    %c1_313 = arith.constant 1 : index
    %c4_314 = arith.constant 4 : index
    %c0_315 = arith.constant 0 : index
    %455 = memref.load %arg2[%c1_313, %c4_314, %c0_315] : memref<2x7x7xf32, #tpu.memory_space<smem>>
    %456 = vector.broadcast %455 : f32 to vector<16x128xf32>
    %457 = arith.mulf %454, %456 : vector<16x128xf32>
    %458 = arith.addf %453, %457 : vector<16x128xf32>
    %c127_i32_316 = arith.constant 127 : i32
    %459 = tpu.dynamic_rotate %439 by %c127_i32_316 dim 1 : vector<16x128xf32>, i32 -> vector<16x128xf32>
    %c1_317 = arith.constant 1 : index
    %c4_318 = arith.constant 4 : index
    %c4_319 = arith.constant 4 : index
    %460 = memref.load %arg2[%c1_317, %c4_318, %c4_319] : memref<2x7x7xf32, #tpu.memory_space<smem>>
    %461 = vector.broadcast %460 : f32 to vector<16x128xf32>
    %462 = arith.mulf %459, %461 : vector<16x128xf32>
    %463 = arith.addf %438, %462 : vector<16x128xf32>
    %c127_i32_320 = arith.constant 127 : i32
    %464 = tpu.dynamic_rotate %459 by %c127_i32_320 dim 1 : vector<16x128xf32>, i32 -> vector<16x128xf32>
    %c1_321 = arith.constant 1 : index
    %c4_322 = arith.constant 4 : index
    %c5_323 = arith.constant 5 : index
    %465 = memref.load %arg2[%c1_321, %c4_322, %c5_323] : memref<2x7x7xf32, #tpu.memory_space<smem>>
    %466 = vector.broadcast %465 : f32 to vector<16x128xf32>
    %467 = arith.mulf %464, %466 : vector<16x128xf32>
    %468 = arith.addf %463, %467 : vector<16x128xf32>
    %c127_i32_324 = arith.constant 127 : i32
    %469 = tpu.dynamic_rotate %464 by %c127_i32_324 dim 1 : vector<16x128xf32>, i32 -> vector<16x128xf32>
    %c1_325 = arith.constant 1 : index
    %c4_326 = arith.constant 4 : index
    %c6_327 = arith.constant 6 : index
    %470 = memref.load %arg2[%c1_325, %c4_326, %c6_327] : memref<2x7x7xf32, #tpu.memory_space<smem>>
    %471 = vector.broadcast %470 : f32 to vector<16x128xf32>
    %472 = arith.mulf %469, %471 : vector<16x128xf32>
    %473 = arith.addf %468, %472 : vector<16x128xf32>
    %474 = vector.extract_strided_slice %48 {offsets = [5, 0], sizes = [16, 128], strides = [1, 1]} : vector<22x128xf32> to vector<16x128xf32>
    %c1_328 = arith.constant 1 : index
    %c5_329 = arith.constant 5 : index
    %c3_330 = arith.constant 3 : index
    %475 = memref.load %arg2[%c1_328, %c5_329, %c3_330] : memref<2x7x7xf32, #tpu.memory_space<smem>>
    %476 = vector.broadcast %475 : f32 to vector<16x128xf32>
    %477 = arith.mulf %474, %476 : vector<16x128xf32>
    %478 = arith.addf %458, %477 : vector<16x128xf32>
    %c1_i32_331 = arith.constant 1 : i32
    %479 = tpu.dynamic_rotate %474 by %c1_i32_331 dim 1 : vector<16x128xf32>, i32 -> vector<16x128xf32>
    %c1_332 = arith.constant 1 : index
    %c5_333 = arith.constant 5 : index
    %c2_334 = arith.constant 2 : index
    %480 = memref.load %arg2[%c1_332, %c5_333, %c2_334] : memref<2x7x7xf32, #tpu.memory_space<smem>>
    %481 = vector.broadcast %480 : f32 to vector<16x128xf32>
    %482 = arith.mulf %479, %481 : vector<16x128xf32>
    %483 = arith.addf %478, %482 : vector<16x128xf32>
    %c1_i32_335 = arith.constant 1 : i32
    %484 = tpu.dynamic_rotate %479 by %c1_i32_335 dim 1 : vector<16x128xf32>, i32 -> vector<16x128xf32>
    %c1_336 = arith.constant 1 : index
    %c5_337 = arith.constant 5 : index
    %c1_338 = arith.constant 1 : index
    %485 = memref.load %arg2[%c1_336, %c5_337, %c1_338] : memref<2x7x7xf32, #tpu.memory_space<smem>>
    %486 = vector.broadcast %485 : f32 to vector<16x128xf32>
    %487 = arith.mulf %484, %486 : vector<16x128xf32>
    %488 = arith.addf %483, %487 : vector<16x128xf32>
    %c1_i32_339 = arith.constant 1 : i32
    %489 = tpu.dynamic_rotate %484 by %c1_i32_339 dim 1 : vector<16x128xf32>, i32 -> vector<16x128xf32>
    %c1_340 = arith.constant 1 : index
    %c5_341 = arith.constant 5 : index
    %c0_342 = arith.constant 0 : index
    %490 = memref.load %arg2[%c1_340, %c5_341, %c0_342] : memref<2x7x7xf32, #tpu.memory_space<smem>>
    %491 = vector.broadcast %490 : f32 to vector<16x128xf32>
    %492 = arith.mulf %489, %491 : vector<16x128xf32>
    %493 = arith.addf %488, %492 : vector<16x128xf32>
    %c127_i32_343 = arith.constant 127 : i32
    %494 = tpu.dynamic_rotate %474 by %c127_i32_343 dim 1 : vector<16x128xf32>, i32 -> vector<16x128xf32>
    %c1_344 = arith.constant 1 : index
    %c5_345 = arith.constant 5 : index
    %c4_346 = arith.constant 4 : index
    %495 = memref.load %arg2[%c1_344, %c5_345, %c4_346] : memref<2x7x7xf32, #tpu.memory_space<smem>>
    %496 = vector.broadcast %495 : f32 to vector<16x128xf32>
    %497 = arith.mulf %494, %496 : vector<16x128xf32>
    %498 = arith.addf %473, %497 : vector<16x128xf32>
    %c127_i32_347 = arith.constant 127 : i32
    %499 = tpu.dynamic_rotate %494 by %c127_i32_347 dim 1 : vector<16x128xf32>, i32 -> vector<16x128xf32>
    %c1_348 = arith.constant 1 : index
    %c5_349 = arith.constant 5 : index
    %c5_350 = arith.constant 5 : index
    %500 = memref.load %arg2[%c1_348, %c5_349, %c5_350] : memref<2x7x7xf32, #tpu.memory_space<smem>>
    %501 = vector.broadcast %500 : f32 to vector<16x128xf32>
    %502 = arith.mulf %499, %501 : vector<16x128xf32>
    %503 = arith.addf %498, %502 : vector<16x128xf32>
    %c127_i32_351 = arith.constant 127 : i32
    %504 = tpu.dynamic_rotate %499 by %c127_i32_351 dim 1 : vector<16x128xf32>, i32 -> vector<16x128xf32>
    %c1_352 = arith.constant 1 : index
    %c5_353 = arith.constant 5 : index
    %c6_354 = arith.constant 6 : index
    %505 = memref.load %arg2[%c1_352, %c5_353, %c6_354] : memref<2x7x7xf32, #tpu.memory_space<smem>>
    %506 = vector.broadcast %505 : f32 to vector<16x128xf32>
    %507 = arith.mulf %504, %506 : vector<16x128xf32>
    %508 = arith.addf %503, %507 : vector<16x128xf32>
    %509 = vector.extract_strided_slice %48 {offsets = [6, 0], sizes = [16, 128], strides = [1, 1]} : vector<22x128xf32> to vector<16x128xf32>
    %c1_355 = arith.constant 1 : index
    %c6_356 = arith.constant 6 : index
    %c3_357 = arith.constant 3 : index
    %510 = memref.load %arg2[%c1_355, %c6_356, %c3_357] : memref<2x7x7xf32, #tpu.memory_space<smem>>
    %511 = vector.broadcast %510 : f32 to vector<16x128xf32>
    %512 = arith.mulf %509, %511 : vector<16x128xf32>
    %513 = arith.addf %493, %512 : vector<16x128xf32>
    %c1_i32_358 = arith.constant 1 : i32
    %514 = tpu.dynamic_rotate %509 by %c1_i32_358 dim 1 : vector<16x128xf32>, i32 -> vector<16x128xf32>
    %c1_359 = arith.constant 1 : index
    %c6_360 = arith.constant 6 : index
    %c2_361 = arith.constant 2 : index
    %515 = memref.load %arg2[%c1_359, %c6_360, %c2_361] : memref<2x7x7xf32, #tpu.memory_space<smem>>
    %516 = vector.broadcast %515 : f32 to vector<16x128xf32>
    %517 = arith.mulf %514, %516 : vector<16x128xf32>
    %518 = arith.addf %513, %517 : vector<16x128xf32>
    %c1_i32_362 = arith.constant 1 : i32
    %519 = tpu.dynamic_rotate %514 by %c1_i32_362 dim 1 : vector<16x128xf32>, i32 -> vector<16x128xf32>
    %c1_363 = arith.constant 1 : index
    %c6_364 = arith.constant 6 : index
    %c1_365 = arith.constant 1 : index
    %520 = memref.load %arg2[%c1_363, %c6_364, %c1_365] : memref<2x7x7xf32, #tpu.memory_space<smem>>
    %521 = vector.broadcast %520 : f32 to vector<16x128xf32>
    %522 = arith.mulf %519, %521 : vector<16x128xf32>
    %523 = arith.addf %518, %522 : vector<16x128xf32>
    %c1_i32_366 = arith.constant 1 : i32
    %524 = tpu.dynamic_rotate %519 by %c1_i32_366 dim 1 : vector<16x128xf32>, i32 -> vector<16x128xf32>
    %c1_367 = arith.constant 1 : index
    %c6_368 = arith.constant 6 : index
    %c0_369 = arith.constant 0 : index
    %525 = memref.load %arg2[%c1_367, %c6_368, %c0_369] : memref<2x7x7xf32, #tpu.memory_space<smem>>
    %526 = vector.broadcast %525 : f32 to vector<16x128xf32>
    %527 = arith.mulf %524, %526 : vector<16x128xf32>
    %528 = arith.addf %523, %527 : vector<16x128xf32>
    %c127_i32_370 = arith.constant 127 : i32
    %529 = tpu.dynamic_rotate %509 by %c127_i32_370 dim 1 : vector<16x128xf32>, i32 -> vector<16x128xf32>
    %c1_371 = arith.constant 1 : index
    %c6_372 = arith.constant 6 : index
    %c4_373 = arith.constant 4 : index
    %530 = memref.load %arg2[%c1_371, %c6_372, %c4_373] : memref<2x7x7xf32, #tpu.memory_space<smem>>
    %531 = vector.broadcast %530 : f32 to vector<16x128xf32>
    %532 = arith.mulf %529, %531 : vector<16x128xf32>
    %533 = arith.addf %508, %532 : vector<16x128xf32>
    %c127_i32_374 = arith.constant 127 : i32
    %534 = tpu.dynamic_rotate %529 by %c127_i32_374 dim 1 : vector<16x128xf32>, i32 -> vector<16x128xf32>
    %c1_375 = arith.constant 1 : index
    %c6_376 = arith.constant 6 : index
    %c5_377 = arith.constant 5 : index
    %535 = memref.load %arg2[%c1_375, %c6_376, %c5_377] : memref<2x7x7xf32, #tpu.memory_space<smem>>
    %536 = vector.broadcast %535 : f32 to vector<16x128xf32>
    %537 = arith.mulf %534, %536 : vector<16x128xf32>
    %538 = arith.addf %533, %537 : vector<16x128xf32>
    %c127_i32_378 = arith.constant 127 : i32
    %539 = tpu.dynamic_rotate %534 by %c127_i32_378 dim 1 : vector<16x128xf32>, i32 -> vector<16x128xf32>
    %c1_379 = arith.constant 1 : index
    %c6_380 = arith.constant 6 : index
    %c6_381 = arith.constant 6 : index
    %540 = memref.load %arg2[%c1_379, %c6_380, %c6_381] : memref<2x7x7xf32, #tpu.memory_space<smem>>
    %541 = vector.broadcast %540 : f32 to vector<16x128xf32>
    %542 = arith.mulf %539, %541 : vector<16x128xf32>
    %543 = arith.addf %538, %542 : vector<16x128xf32>
    %544 = arith.addf %528, %543 : vector<16x128xf32>
    %545 = arith.addf %296, %544 : vector<16x128xf32>
    %546 = vector.extract_strided_slice %545 {offsets = [0, 0], sizes = [16, 4], strides = [1, 1]} : vector<16x128xf32> to vector<16x4xf32>
    %c0_382 = arith.constant 0 : index
    %547 = memref.load %arg3[%c0_382] : memref<1xf32, #tpu.memory_space<smem>>
    %548 = vector.broadcast %547 : f32 to vector<16x4xf32>
    %549 = arith.addf %546, %548 : vector<16x4xf32>
    %550 = arith.negf %549 : vector<16x4xf32>
    %551 = math.exp %550 : vector<16x4xf32>
    %cst_383 = arith.constant 1.000000e+00 : f32
    %552 = vector.broadcast %cst_383 : f32 to vector<16x4xf32>
    %553 = arith.addf %552, %551 : vector<16x4xf32>
    %554 = arith.divf %552, %553 : vector<16x4xf32>
    %555 = vector.extract_strided_slice %554 {offsets = [0, 0], sizes = [1, 4], strides = [1, 1]} : vector<16x4xf32> to vector<1x4xf32>
    %556 = vector.extract_strided_slice %554 {offsets = [1, 0], sizes = [1, 4], strides = [1, 1]} : vector<16x4xf32> to vector<1x4xf32>
    %557 = vector.extract_strided_slice %554 {offsets = [2, 0], sizes = [1, 4], strides = [1, 1]} : vector<16x4xf32> to vector<1x4xf32>
    %558 = vector.extract_strided_slice %554 {offsets = [3, 0], sizes = [1, 4], strides = [1, 1]} : vector<16x4xf32> to vector<1x4xf32>
    %559 = vector.extract_strided_slice %554 {offsets = [4, 0], sizes = [1, 4], strides = [1, 1]} : vector<16x4xf32> to vector<1x4xf32>
    %560 = vector.extract_strided_slice %554 {offsets = [5, 0], sizes = [1, 4], strides = [1, 1]} : vector<16x4xf32> to vector<1x4xf32>
    %561 = vector.extract_strided_slice %554 {offsets = [6, 0], sizes = [1, 4], strides = [1, 1]} : vector<16x4xf32> to vector<1x4xf32>
    %562 = vector.extract_strided_slice %554 {offsets = [7, 0], sizes = [1, 4], strides = [1, 1]} : vector<16x4xf32> to vector<1x4xf32>
    %563 = vector.extract_strided_slice %554 {offsets = [8, 0], sizes = [1, 4], strides = [1, 1]} : vector<16x4xf32> to vector<1x4xf32>
    %564 = vector.extract_strided_slice %554 {offsets = [9, 0], sizes = [1, 4], strides = [1, 1]} : vector<16x4xf32> to vector<1x4xf32>
    %565 = vector.extract_strided_slice %554 {offsets = [10, 0], sizes = [1, 4], strides = [1, 1]} : vector<16x4xf32> to vector<1x4xf32>
    %566 = vector.extract_strided_slice %554 {offsets = [11, 0], sizes = [1, 4], strides = [1, 1]} : vector<16x4xf32> to vector<1x4xf32>
    %567 = vector.extract_strided_slice %554 {offsets = [12, 0], sizes = [1, 4], strides = [1, 1]} : vector<16x4xf32> to vector<1x4xf32>
    %568 = vector.extract_strided_slice %554 {offsets = [13, 0], sizes = [1, 4], strides = [1, 1]} : vector<16x4xf32> to vector<1x4xf32>
    %569 = vector.extract_strided_slice %554 {offsets = [14, 0], sizes = [1, 4], strides = [1, 1]} : vector<16x4xf32> to vector<1x4xf32>
    %570 = vector.extract_strided_slice %554 {offsets = [15, 0], sizes = [1, 4], strides = [1, 1]} : vector<16x4xf32> to vector<1x4xf32>
    %571 = tpu.concatenate %555, %556, %557, %558, %559, %560, %561, %562, %563, %564, %565, %566, %567, %568, %569, %570 in 1 : vector<1x4xf32>, vector<1x4xf32>, vector<1x4xf32>, vector<1x4xf32>, vector<1x4xf32>, vector<1x4xf32>, vector<1x4xf32>, vector<1x4xf32>, vector<1x4xf32>, vector<1x4xf32>, vector<1x4xf32>, vector<1x4xf32>, vector<1x4xf32>, vector<1x4xf32>, vector<1x4xf32>, vector<1x4xf32> -> vector<1x64xf32>
    %572 = vector.shape_cast %571 : vector<1x64xf32> to vector<1x1x64xf32>
    %573 = vector.broadcast %572 : vector<1x1x64xf32> to vector<1x16x64xf32>
    %574 = arith.mulf %0, %573 : vector<1x16x64xf32>
    %c0_384 = arith.constant 0 : index
    %c0_385 = arith.constant 0 : index
    %c0_386 = arith.constant 0 : index
    %575 = vector.load %arg4[%c0_384, %c0_385, %c0_386] : memref<1x16x64xf32, #tpu.memory_space<vmem>>, vector<1x16x64xf32>
    tpu.vector_store %arg4[%c0_384, %c0_385, %c0_386], %574 {strides = array<i32>} : memref<1x16x64xf32, #tpu.memory_space<vmem>>, vector<1x16x64xf32>,
    return
  }
  func.func @transform_0(%arg0: i32) -> (i32, i32, i32) {
    %c0_i32 = arith.constant 0 : i32
    %c0_i32_0 = arith.constant 0 : i32
    %c0_i32_1 = arith.constant 0 : i32
    return %arg0, %c0_i32, %c0_i32_0 : i32, i32, i32
  }
  func.func @transform_1(%arg0: i32) -> (i32, i32, i32) {
    %c0_i32 = arith.constant 0 : i32
    %c0_i32_0 = arith.constant 0 : i32
    %c0_i32_1 = arith.constant 0 : i32
    %c0_i32_2 = arith.constant 0 : i32
    return %c0_i32, %c0_i32_0, %c0_i32_1 : i32, i32, i32
  }
  func.func @transform_2(%arg0: i32) -> i32 {
    %c0_i32 = arith.constant 0 : i32
    %c0_i32_0 = arith.constant 0 : i32
    return %c0_i32 : i32
  }
  func.func @transform_3(%arg0: i32) -> (i32, i32, i32) {
    %c0_i32 = arith.constant 0 : i32
    %c0_i32_0 = arith.constant 0 : i32
    %c0_i32_1 = arith.constant 0 : i32
    return %arg0, %c0_i32, %c0_i32_0 : i32, i32, i32
  }
}

module attributes {stable_mosaic.version = 11 : i64} {
  func.func @attention_gate_kernel(%arg0: i32, %arg1: memref<1x16x64xf32, #tpu.memory_space<vmem>>, %arg2: memref<2x7x7xf32, #tpu.memory_space<smem>>, %arg3: memref<1xf32, #tpu.memory_space<smem>>, %arg4: memref<1x16x64xf32, #tpu.memory_space<vmem>>) attributes {dimension_semantics = [#tpu.dimension_semantics<parallel>], iteration_bounds = array<i64: 2>, scalar_prefetch = 0 : i64, scratch_operands = 0 : i64, tpu.core_type = #tpu.core_type<tc>, window_params = [{transform_indices = @transform_0, window_bounds = array<i64: 1, 16, 64>}, {transform_indices = @transform_1, window_bounds = array<i64: 2, 7, 7>}, {transform_indices = @transform_2, window_bounds = array<i64: 1>}, {transform_indices = @transform_3, window_bounds = array<i64: 1, 16, 64>}]} {
    %c0 = arith.constant 0 : index
    %c0_0 = arith.constant 0 : index
    %c0_1 = arith.constant 0 : index
    %0 = vector.load %arg1[%c0, %c0_0, %c0_1] : memref<1x16x64xf32, #tpu.memory_space<vmem>>, vector<1x16x64xf32>
    %cst = arith.constant dense<0xFF800000> : vector<1x64xf32>
    %1 = vector.multi_reduction <maximumf>, %0, %cst [1] : vector<1x16x64xf32> to vector<1x64xf32>
    %cst_2 = arith.constant dense<0.000000e+00> : vector<1x64xf32>
    %2 = vector.multi_reduction <add>, %0, %cst_2 [1] : vector<1x16x64xf32> to vector<1x64xf32>
    %cst_3 = arith.constant 1.600000e+01 : f32
    %3 = vector.broadcast %cst_3 : f32 to vector<1x64xf32>
    %4 = arith.divf %2, %3 : vector<1x64xf32>
    %cst_4 = arith.constant 0.000000e+00 : f32
    %5 = vector.broadcast %cst_4 : f32 to vector<3x16xf32>
    %6 = vector.extract_strided_slice %1 {offsets = [0, 0], sizes = [1, 16], strides = [1, 1]} : vector<1x64xf32> to vector<1x16xf32>
    %7 = vector.extract_strided_slice %1 {offsets = [0, 16], sizes = [1, 16], strides = [1, 1]} : vector<1x64xf32> to vector<1x16xf32>
    %8 = vector.extract_strided_slice %1 {offsets = [0, 32], sizes = [1, 16], strides = [1, 1]} : vector<1x64xf32> to vector<1x16xf32>
    %9 = vector.extract_strided_slice %1 {offsets = [0, 48], sizes = [1, 16], strides = [1, 1]} : vector<1x64xf32> to vector<1x16xf32>
    %10 = tpu.concatenate %5, %6, %7, %8, %9, %5 in 0 : vector<3x16xf32>, vector<1x16xf32>, vector<1x16xf32>, vector<1x16xf32>, vector<1x16xf32>, vector<3x16xf32> -> vector<10x16xf32>
    %cst_5 = arith.constant 0.000000e+00 : f32
    %11 = vector.broadcast %cst_5 : f32 to vector<10x112xf32>
    %12 = tpu.concatenate %10, %11 in 1 : vector<10x16xf32>, vector<10x112xf32> -> vector<10x128xf32>
    %cst_6 = arith.constant 0.000000e+00 : f32
    %13 = vector.broadcast %cst_6 : f32 to vector<3x16xf32>
    %14 = vector.extract_strided_slice %4 {offsets = [0, 0], sizes = [1, 16], strides = [1, 1]} : vector<1x64xf32> to vector<1x16xf32>
    %15 = vector.extract_strided_slice %4 {offsets = [0, 16], sizes = [1, 16], strides = [1, 1]} : vector<1x64xf32> to vector<1x16xf32>
    %16 = vector.extract_strided_slice %4 {offsets = [0, 32], sizes = [1, 16], strides = [1, 1]} : vector<1x64xf32> to vector<1x16xf32>
    %17 = vector.extract_strided_slice %4 {offsets = [0, 48], sizes = [1, 16], strides = [1, 1]} : vector<1x64xf32> to vector<1x16xf32>
    %18 = tpu.concatenate %13, %14, %15, %16, %17, %13 in 0 : vector<3x16xf32>, vector<1x16xf32>, vector<1x16xf32>, vector<1x16xf32>, vector<1x16xf32>, vector<3x16xf32> -> vector<10x16xf32>
    %cst_7 = arith.constant 0.000000e+00 : f32
    %19 = vector.broadcast %cst_7 : f32 to vector<10x112xf32>
    %20 = tpu.concatenate %18, %19 in 1 : vector<10x16xf32>, vector<10x112xf32> -> vector<10x128xf32>
    %cst_8 = arith.constant 0.000000e+00 : f32
    %21 = vector.broadcast %cst_8 : f32 to vector<4x128xf32>
    %cst_9 = arith.constant 0.000000e+00 : f32
    %22 = vector.broadcast %cst_9 : f32 to vector<4x128xf32>
    %23 = vector.extract_strided_slice %12 {offsets = [0, 0], sizes = [4, 128], strides = [1, 1]} : vector<10x128xf32> to vector<4x128xf32>
    %c0_10 = arith.constant 0 : index
    %c0_11 = arith.constant 0 : index
    %c3 = arith.constant 3 : index
    %24 = memref.load %arg2[%c0_10, %c0_11, %c3] : memref<2x7x7xf32, #tpu.memory_space<smem>>
    %25 = vector.broadcast %24 : f32 to vector<4x128xf32>
    %26 = arith.mulf %23, %25 : vector<4x128xf32>
    %27 = arith.addf %21, %26 : vector<4x128xf32>
    %c1_i32 = arith.constant 1 : i32
    %28 = tpu.dynamic_rotate %23 by %c1_i32 dim 1 : vector<4x128xf32>, i32 -> vector<4x128xf32>
    %c0_12 = arith.constant 0 : index
    %c0_13 = arith.constant 0 : index
    %c2 = arith.constant 2 : index
    %29 = memref.load %arg2[%c0_12, %c0_13, %c2] : memref<2x7x7xf32, #tpu.memory_space<smem>>
    %30 = vector.broadcast %29 : f32 to vector<4x128xf32>
    %31 = arith.mulf %28, %30 : vector<4x128xf32>
    %32 = arith.addf %27, %31 : vector<4x128xf32>
    %c1_i32_14 = arith.constant 1 : i32
    %33 = tpu.dynamic_rotate %28 by %c1_i32_14 dim 1 : vector<4x128xf32>, i32 -> vector<4x128xf32>
    %c0_15 = arith.constant 0 : index
    %c0_16 = arith.constant 0 : index
    %c1 = arith.constant 1 : index
    %34 = memref.load %arg2[%c0_15, %c0_16, %c1] : memref<2x7x7xf32, #tpu.memory_space<smem>>
    %35 = vector.broadcast %34 : f32 to vector<4x128xf32>
    %36 = arith.mulf %33, %35 : vector<4x128xf32>
    %37 = arith.addf %32, %36 : vector<4x128xf32>
    %c1_i32_17 = arith.constant 1 : i32
    %38 = tpu.dynamic_rotate %33 by %c1_i32_17 dim 1 : vector<4x128xf32>, i32 -> vector<4x128xf32>
    %c0_18 = arith.constant 0 : index
    %c0_19 = arith.constant 0 : index
    %c0_20 = arith.constant 0 : index
    %39 = memref.load %arg2[%c0_18, %c0_19, %c0_20] : memref<2x7x7xf32, #tpu.memory_space<smem>>
    %40 = vector.broadcast %39 : f32 to vector<4x128xf32>
    %41 = arith.mulf %38, %40 : vector<4x128xf32>
    %42 = arith.addf %37, %41 : vector<4x128xf32>
    %c127_i32 = arith.constant 127 : i32
    %43 = tpu.dynamic_rotate %23 by %c127_i32 dim 1 : vector<4x128xf32>, i32 -> vector<4x128xf32>
    %c0_21 = arith.constant 0 : index
    %c0_22 = arith.constant 0 : index
    %c4 = arith.constant 4 : index
    %44 = memref.load %arg2[%c0_21, %c0_22, %c4] : memref<2x7x7xf32, #tpu.memory_space<smem>>
    %45 = vector.broadcast %44 : f32 to vector<4x128xf32>
    %46 = arith.mulf %43, %45 : vector<4x128xf32>
    %47 = arith.addf %22, %46 : vector<4x128xf32>
    %c127_i32_23 = arith.constant 127 : i32
    %48 = tpu.dynamic_rotate %43 by %c127_i32_23 dim 1 : vector<4x128xf32>, i32 -> vector<4x128xf32>
    %c0_24 = arith.constant 0 : index
    %c0_25 = arith.constant 0 : index
    %c5 = arith.constant 5 : index
    %49 = memref.load %arg2[%c0_24, %c0_25, %c5] : memref<2x7x7xf32, #tpu.memory_space<smem>>
    %50 = vector.broadcast %49 : f32 to vector<4x128xf32>
    %51 = arith.mulf %48, %50 : vector<4x128xf32>
    %52 = arith.addf %47, %51 : vector<4x128xf32>
    %c127_i32_26 = arith.constant 127 : i32
    %53 = tpu.dynamic_rotate %48 by %c127_i32_26 dim 1 : vector<4x128xf32>, i32 -> vector<4x128xf32>
    %c0_27 = arith.constant 0 : index
    %c0_28 = arith.constant 0 : index
    %c6 = arith.constant 6 : index
    %54 = memref.load %arg2[%c0_27, %c0_28, %c6] : memref<2x7x7xf32, #tpu.memory_space<smem>>
    %55 = vector.broadcast %54 : f32 to vector<4x128xf32>
    %56 = arith.mulf %53, %55 : vector<4x128xf32>
    %57 = arith.addf %52, %56 : vector<4x128xf32>
    %58 = vector.extract_strided_slice %12 {offsets = [1, 0], sizes = [4, 128], strides = [1, 1]} : vector<10x128xf32> to vector<4x128xf32>
    %c0_29 = arith.constant 0 : index
    %c1_30 = arith.constant 1 : index
    %c3_31 = arith.constant 3 : index
    %59 = memref.load %arg2[%c0_29, %c1_30, %c3_31] : memref<2x7x7xf32, #tpu.memory_space<smem>>
    %60 = vector.broadcast %59 : f32 to vector<4x128xf32>
    %61 = arith.mulf %58, %60 : vector<4x128xf32>
    %62 = arith.addf %42, %61 : vector<4x128xf32>
    %c1_i32_32 = arith.constant 1 : i32
    %63 = tpu.dynamic_rotate %58 by %c1_i32_32 dim 1 : vector<4x128xf32>, i32 -> vector<4x128xf32>
    %c0_33 = arith.constant 0 : index
    %c1_34 = arith.constant 1 : index
    %c2_35 = arith.constant 2 : index
    %64 = memref.load %arg2[%c0_33, %c1_34, %c2_35] : memref<2x7x7xf32, #tpu.memory_space<smem>>
    %65 = vector.broadcast %64 : f32 to vector<4x128xf32>
    %66 = arith.mulf %63, %65 : vector<4x128xf32>
    %67 = arith.addf %62, %66 : vector<4x128xf32>
    %c1_i32_36 = arith.constant 1 : i32
    %68 = tpu.dynamic_rotate %63 by %c1_i32_36 dim 1 : vector<4x128xf32>, i32 -> vector<4x128xf32>
    %c0_37 = arith.constant 0 : index
    %c1_38 = arith.constant 1 : index
    %c1_39 = arith.constant 1 : index
    %69 = memref.load %arg2[%c0_37, %c1_38, %c1_39] : memref<2x7x7xf32, #tpu.memory_space<smem>>
    %70 = vector.broadcast %69 : f32 to vector<4x128xf32>
    %71 = arith.mulf %68, %70 : vector<4x128xf32>
    %72 = arith.addf %67, %71 : vector<4x128xf32>
    %c1_i32_40 = arith.constant 1 : i32
    %73 = tpu.dynamic_rotate %68 by %c1_i32_40 dim 1 : vector<4x128xf32>, i32 -> vector<4x128xf32>
    %c0_41 = arith.constant 0 : index
    %c1_42 = arith.constant 1 : index
    %c0_43 = arith.constant 0 : index
    %74 = memref.load %arg2[%c0_41, %c1_42, %c0_43] : memref<2x7x7xf32, #tpu.memory_space<smem>>
    %75 = vector.broadcast %74 : f32 to vector<4x128xf32>
    %76 = arith.mulf %73, %75 : vector<4x128xf32>
    %77 = arith.addf %72, %76 : vector<4x128xf32>
    %c127_i32_44 = arith.constant 127 : i32
    %78 = tpu.dynamic_rotate %58 by %c127_i32_44 dim 1 : vector<4x128xf32>, i32 -> vector<4x128xf32>
    %c0_45 = arith.constant 0 : index
    %c1_46 = arith.constant 1 : index
    %c4_47 = arith.constant 4 : index
    %79 = memref.load %arg2[%c0_45, %c1_46, %c4_47] : memref<2x7x7xf32, #tpu.memory_space<smem>>
    %80 = vector.broadcast %79 : f32 to vector<4x128xf32>
    %81 = arith.mulf %78, %80 : vector<4x128xf32>
    %82 = arith.addf %57, %81 : vector<4x128xf32>
    %c127_i32_48 = arith.constant 127 : i32
    %83 = tpu.dynamic_rotate %78 by %c127_i32_48 dim 1 : vector<4x128xf32>, i32 -> vector<4x128xf32>
    %c0_49 = arith.constant 0 : index
    %c1_50 = arith.constant 1 : index
    %c5_51 = arith.constant 5 : index
    %84 = memref.load %arg2[%c0_49, %c1_50, %c5_51] : memref<2x7x7xf32, #tpu.memory_space<smem>>
    %85 = vector.broadcast %84 : f32 to vector<4x128xf32>
    %86 = arith.mulf %83, %85 : vector<4x128xf32>
    %87 = arith.addf %82, %86 : vector<4x128xf32>
    %c127_i32_52 = arith.constant 127 : i32
    %88 = tpu.dynamic_rotate %83 by %c127_i32_52 dim 1 : vector<4x128xf32>, i32 -> vector<4x128xf32>
    %c0_53 = arith.constant 0 : index
    %c1_54 = arith.constant 1 : index
    %c6_55 = arith.constant 6 : index
    %89 = memref.load %arg2[%c0_53, %c1_54, %c6_55] : memref<2x7x7xf32, #tpu.memory_space<smem>>
    %90 = vector.broadcast %89 : f32 to vector<4x128xf32>
    %91 = arith.mulf %88, %90 : vector<4x128xf32>
    %92 = arith.addf %87, %91 : vector<4x128xf32>
    %93 = vector.extract_strided_slice %12 {offsets = [2, 0], sizes = [4, 128], strides = [1, 1]} : vector<10x128xf32> to vector<4x128xf32>
    %c0_56 = arith.constant 0 : index
    %c2_57 = arith.constant 2 : index
    %c3_58 = arith.constant 3 : index
    %94 = memref.load %arg2[%c0_56, %c2_57, %c3_58] : memref<2x7x7xf32, #tpu.memory_space<smem>>
    %95 = vector.broadcast %94 : f32 to vector<4x128xf32>
    %96 = arith.mulf %93, %95 : vector<4x128xf32>
    %97 = arith.addf %77, %96 : vector<4x128xf32>
    %c1_i32_59 = arith.constant 1 : i32
    %98 = tpu.dynamic_rotate %93 by %c1_i32_59 dim 1 : vector<4x128xf32>, i32 -> vector<4x128xf32>
    %c0_60 = arith.constant 0 : index
    %c2_61 = arith.constant 2 : index
    %c2_62 = arith.constant 2 : index
    %99 = memref.load %arg2[%c0_60, %c2_61, %c2_62] : memref<2x7x7xf32, #tpu.memory_space<smem>>
    %100 = vector.broadcast %99 : f32 to vector<4x128xf32>
    %101 = arith.mulf %98, %100 : vector<4x128xf32>
    %102 = arith.addf %97, %101 : vector<4x128xf32>
    %c1_i32_63 = arith.constant 1 : i32
    %103 = tpu.dynamic_rotate %98 by %c1_i32_63 dim 1 : vector<4x128xf32>, i32 -> vector<4x128xf32>
    %c0_64 = arith.constant 0 : index
    %c2_65 = arith.constant 2 : index
    %c1_66 = arith.constant 1 : index
    %104 = memref.load %arg2[%c0_64, %c2_65, %c1_66] : memref<2x7x7xf32, #tpu.memory_space<smem>>
    %105 = vector.broadcast %104 : f32 to vector<4x128xf32>
    %106 = arith.mulf %103, %105 : vector<4x128xf32>
    %107 = arith.addf %102, %106 : vector<4x128xf32>
    %c1_i32_67 = arith.constant 1 : i32
    %108 = tpu.dynamic_rotate %103 by %c1_i32_67 dim 1 : vector<4x128xf32>, i32 -> vector<4x128xf32>
    %c0_68 = arith.constant 0 : index
    %c2_69 = arith.constant 2 : index
    %c0_70 = arith.constant 0 : index
    %109 = memref.load %arg2[%c0_68, %c2_69, %c0_70] : memref<2x7x7xf32, #tpu.memory_space<smem>>
    %110 = vector.broadcast %109 : f32 to vector<4x128xf32>
    %111 = arith.mulf %108, %110 : vector<4x128xf32>
    %112 = arith.addf %107, %111 : vector<4x128xf32>
    %c127_i32_71 = arith.constant 127 : i32
    %113 = tpu.dynamic_rotate %93 by %c127_i32_71 dim 1 : vector<4x128xf32>, i32 -> vector<4x128xf32>
    %c0_72 = arith.constant 0 : index
    %c2_73 = arith.constant 2 : index
    %c4_74 = arith.constant 4 : index
    %114 = memref.load %arg2[%c0_72, %c2_73, %c4_74] : memref<2x7x7xf32, #tpu.memory_space<smem>>
    %115 = vector.broadcast %114 : f32 to vector<4x128xf32>
    %116 = arith.mulf %113, %115 : vector<4x128xf32>
    %117 = arith.addf %92, %116 : vector<4x128xf32>
    %c127_i32_75 = arith.constant 127 : i32
    %118 = tpu.dynamic_rotate %113 by %c127_i32_75 dim 1 : vector<4x128xf32>, i32 -> vector<4x128xf32>
    %c0_76 = arith.constant 0 : index
    %c2_77 = arith.constant 2 : index
    %c5_78 = arith.constant 5 : index
    %119 = memref.load %arg2[%c0_76, %c2_77, %c5_78] : memref<2x7x7xf32, #tpu.memory_space<smem>>
    %120 = vector.broadcast %119 : f32 to vector<4x128xf32>
    %121 = arith.mulf %118, %120 : vector<4x128xf32>
    %122 = arith.addf %117, %121 : vector<4x128xf32>
    %c127_i32_79 = arith.constant 127 : i32
    %123 = tpu.dynamic_rotate %118 by %c127_i32_79 dim 1 : vector<4x128xf32>, i32 -> vector<4x128xf32>
    %c0_80 = arith.constant 0 : index
    %c2_81 = arith.constant 2 : index
    %c6_82 = arith.constant 6 : index
    %124 = memref.load %arg2[%c0_80, %c2_81, %c6_82] : memref<2x7x7xf32, #tpu.memory_space<smem>>
    %125 = vector.broadcast %124 : f32 to vector<4x128xf32>
    %126 = arith.mulf %123, %125 : vector<4x128xf32>
    %127 = arith.addf %122, %126 : vector<4x128xf32>
    %128 = vector.extract_strided_slice %12 {offsets = [3, 0], sizes = [4, 128], strides = [1, 1]} : vector<10x128xf32> to vector<4x128xf32>
    %c0_83 = arith.constant 0 : index
    %c3_84 = arith.constant 3 : index
    %c3_85 = arith.constant 3 : index
    %129 = memref.load %arg2[%c0_83, %c3_84, %c3_85] : memref<2x7x7xf32, #tpu.memory_space<smem>>
    %130 = vector.broadcast %129 : f32 to vector<4x128xf32>
    %131 = arith.mulf %128, %130 : vector<4x128xf32>
    %132 = arith.addf %112, %131 : vector<4x128xf32>
    %c1_i32_86 = arith.constant 1 : i32
    %133 = tpu.dynamic_rotate %128 by %c1_i32_86 dim 1 : vector<4x128xf32>, i32 -> vector<4x128xf32>
    %c0_87 = arith.constant 0 : index
    %c3_88 = arith.constant 3 : index
    %c2_89 = arith.constant 2 : index
    %134 = memref.load %arg2[%c0_87, %c3_88, %c2_89] : memref<2x7x7xf32, #tpu.memory_space<smem>>
    %135 = vector.broadcast %134 : f32 to vector<4x128xf32>
    %136 = arith.mulf %133, %135 : vector<4x128xf32>
    %137 = arith.addf %132, %136 : vector<4x128xf32>
    %c1_i32_90 = arith.constant 1 : i32
    %138 = tpu.dynamic_rotate %133 by %c1_i32_90 dim 1 : vector<4x128xf32>, i32 -> vector<4x128xf32>
    %c0_91 = arith.constant 0 : index
    %c3_92 = arith.constant 3 : index
    %c1_93 = arith.constant 1 : index
    %139 = memref.load %arg2[%c0_91, %c3_92, %c1_93] : memref<2x7x7xf32, #tpu.memory_space<smem>>
    %140 = vector.broadcast %139 : f32 to vector<4x128xf32>
    %141 = arith.mulf %138, %140 : vector<4x128xf32>
    %142 = arith.addf %137, %141 : vector<4x128xf32>
    %c1_i32_94 = arith.constant 1 : i32
    %143 = tpu.dynamic_rotate %138 by %c1_i32_94 dim 1 : vector<4x128xf32>, i32 -> vector<4x128xf32>
    %c0_95 = arith.constant 0 : index
    %c3_96 = arith.constant 3 : index
    %c0_97 = arith.constant 0 : index
    %144 = memref.load %arg2[%c0_95, %c3_96, %c0_97] : memref<2x7x7xf32, #tpu.memory_space<smem>>
    %145 = vector.broadcast %144 : f32 to vector<4x128xf32>
    %146 = arith.mulf %143, %145 : vector<4x128xf32>
    %147 = arith.addf %142, %146 : vector<4x128xf32>
    %c127_i32_98 = arith.constant 127 : i32
    %148 = tpu.dynamic_rotate %128 by %c127_i32_98 dim 1 : vector<4x128xf32>, i32 -> vector<4x128xf32>
    %c0_99 = arith.constant 0 : index
    %c3_100 = arith.constant 3 : index
    %c4_101 = arith.constant 4 : index
    %149 = memref.load %arg2[%c0_99, %c3_100, %c4_101] : memref<2x7x7xf32, #tpu.memory_space<smem>>
    %150 = vector.broadcast %149 : f32 to vector<4x128xf32>
    %151 = arith.mulf %148, %150 : vector<4x128xf32>
    %152 = arith.addf %127, %151 : vector<4x128xf32>
    %c127_i32_102 = arith.constant 127 : i32
    %153 = tpu.dynamic_rotate %148 by %c127_i32_102 dim 1 : vector<4x128xf32>, i32 -> vector<4x128xf32>
    %c0_103 = arith.constant 0 : index
    %c3_104 = arith.constant 3 : index
    %c5_105 = arith.constant 5 : index
    %154 = memref.load %arg2[%c0_103, %c3_104, %c5_105] : memref<2x7x7xf32, #tpu.memory_space<smem>>
    %155 = vector.broadcast %154 : f32 to vector<4x128xf32>
    %156 = arith.mulf %153, %155 : vector<4x128xf32>
    %157 = arith.addf %152, %156 : vector<4x128xf32>
    %c127_i32_106 = arith.constant 127 : i32
    %158 = tpu.dynamic_rotate %153 by %c127_i32_106 dim 1 : vector<4x128xf32>, i32 -> vector<4x128xf32>
    %c0_107 = arith.constant 0 : index
    %c3_108 = arith.constant 3 : index
    %c6_109 = arith.constant 6 : index
    %159 = memref.load %arg2[%c0_107, %c3_108, %c6_109] : memref<2x7x7xf32, #tpu.memory_space<smem>>
    %160 = vector.broadcast %159 : f32 to vector<4x128xf32>
    %161 = arith.mulf %158, %160 : vector<4x128xf32>
    %162 = arith.addf %157, %161 : vector<4x128xf32>
    %163 = vector.extract_strided_slice %12 {offsets = [4, 0], sizes = [4, 128], strides = [1, 1]} : vector<10x128xf32> to vector<4x128xf32>
    %c0_110 = arith.constant 0 : index
    %c4_111 = arith.constant 4 : index
    %c3_112 = arith.constant 3 : index
    %164 = memref.load %arg2[%c0_110, %c4_111, %c3_112] : memref<2x7x7xf32, #tpu.memory_space<smem>>
    %165 = vector.broadcast %164 : f32 to vector<4x128xf32>
    %166 = arith.mulf %163, %165 : vector<4x128xf32>
    %167 = arith.addf %147, %166 : vector<4x128xf32>
    %c1_i32_113 = arith.constant 1 : i32
    %168 = tpu.dynamic_rotate %163 by %c1_i32_113 dim 1 : vector<4x128xf32>, i32 -> vector<4x128xf32>
    %c0_114 = arith.constant 0 : index
    %c4_115 = arith.constant 4 : index
    %c2_116 = arith.constant 2 : index
    %169 = memref.load %arg2[%c0_114, %c4_115, %c2_116] : memref<2x7x7xf32, #tpu.memory_space<smem>>
    %170 = vector.broadcast %169 : f32 to vector<4x128xf32>
    %171 = arith.mulf %168, %170 : vector<4x128xf32>
    %172 = arith.addf %167, %171 : vector<4x128xf32>
    %c1_i32_117 = arith.constant 1 : i32
    %173 = tpu.dynamic_rotate %168 by %c1_i32_117 dim 1 : vector<4x128xf32>, i32 -> vector<4x128xf32>
    %c0_118 = arith.constant 0 : index
    %c4_119 = arith.constant 4 : index
    %c1_120 = arith.constant 1 : index
    %174 = memref.load %arg2[%c0_118, %c4_119, %c1_120] : memref<2x7x7xf32, #tpu.memory_space<smem>>
    %175 = vector.broadcast %174 : f32 to vector<4x128xf32>
    %176 = arith.mulf %173, %175 : vector<4x128xf32>
    %177 = arith.addf %172, %176 : vector<4x128xf32>
    %c1_i32_121 = arith.constant 1 : i32
    %178 = tpu.dynamic_rotate %173 by %c1_i32_121 dim 1 : vector<4x128xf32>, i32 -> vector<4x128xf32>
    %c0_122 = arith.constant 0 : index
    %c4_123 = arith.constant 4 : index
    %c0_124 = arith.constant 0 : index
    %179 = memref.load %arg2[%c0_122, %c4_123, %c0_124] : memref<2x7x7xf32, #tpu.memory_space<smem>>
    %180 = vector.broadcast %179 : f32 to vector<4x128xf32>
    %181 = arith.mulf %178, %180 : vector<4x128xf32>
    %182 = arith.addf %177, %181 : vector<4x128xf32>
    %c127_i32_125 = arith.constant 127 : i32
    %183 = tpu.dynamic_rotate %163 by %c127_i32_125 dim 1 : vector<4x128xf32>, i32 -> vector<4x128xf32>
    %c0_126 = arith.constant 0 : index
    %c4_127 = arith.constant 4 : index
    %c4_128 = arith.constant 4 : index
    %184 = memref.load %arg2[%c0_126, %c4_127, %c4_128] : memref<2x7x7xf32, #tpu.memory_space<smem>>
    %185 = vector.broadcast %184 : f32 to vector<4x128xf32>
    %186 = arith.mulf %183, %185 : vector<4x128xf32>
    %187 = arith.addf %162, %186 : vector<4x128xf32>
    %c127_i32_129 = arith.constant 127 : i32
    %188 = tpu.dynamic_rotate %183 by %c127_i32_129 dim 1 : vector<4x128xf32>, i32 -> vector<4x128xf32>
    %c0_130 = arith.constant 0 : index
    %c4_131 = arith.constant 4 : index
    %c5_132 = arith.constant 5 : index
    %189 = memref.load %arg2[%c0_130, %c4_131, %c5_132] : memref<2x7x7xf32, #tpu.memory_space<smem>>
    %190 = vector.broadcast %189 : f32 to vector<4x128xf32>
    %191 = arith.mulf %188, %190 : vector<4x128xf32>
    %192 = arith.addf %187, %191 : vector<4x128xf32>
    %c127_i32_133 = arith.constant 127 : i32
    %193 = tpu.dynamic_rotate %188 by %c127_i32_133 dim 1 : vector<4x128xf32>, i32 -> vector<4x128xf32>
    %c0_134 = arith.constant 0 : index
    %c4_135 = arith.constant 4 : index
    %c6_136 = arith.constant 6 : index
    %194 = memref.load %arg2[%c0_134, %c4_135, %c6_136] : memref<2x7x7xf32, #tpu.memory_space<smem>>
    %195 = vector.broadcast %194 : f32 to vector<4x128xf32>
    %196 = arith.mulf %193, %195 : vector<4x128xf32>
    %197 = arith.addf %192, %196 : vector<4x128xf32>
    %198 = vector.extract_strided_slice %12 {offsets = [5, 0], sizes = [4, 128], strides = [1, 1]} : vector<10x128xf32> to vector<4x128xf32>
    %c0_137 = arith.constant 0 : index
    %c5_138 = arith.constant 5 : index
    %c3_139 = arith.constant 3 : index
    %199 = memref.load %arg2[%c0_137, %c5_138, %c3_139] : memref<2x7x7xf32, #tpu.memory_space<smem>>
    %200 = vector.broadcast %199 : f32 to vector<4x128xf32>
    %201 = arith.mulf %198, %200 : vector<4x128xf32>
    %202 = arith.addf %182, %201 : vector<4x128xf32>
    %c1_i32_140 = arith.constant 1 : i32
    %203 = tpu.dynamic_rotate %198 by %c1_i32_140 dim 1 : vector<4x128xf32>, i32 -> vector<4x128xf32>
    %c0_141 = arith.constant 0 : index
    %c5_142 = arith.constant 5 : index
    %c2_143 = arith.constant 2 : index
    %204 = memref.load %arg2[%c0_141, %c5_142, %c2_143] : memref<2x7x7xf32, #tpu.memory_space<smem>>
    %205 = vector.broadcast %204 : f32 to vector<4x128xf32>
    %206 = arith.mulf %203, %205 : vector<4x128xf32>
    %207 = arith.addf %202, %206 : vector<4x128xf32>
    %c1_i32_144 = arith.constant 1 : i32
    %208 = tpu.dynamic_rotate %203 by %c1_i32_144 dim 1 : vector<4x128xf32>, i32 -> vector<4x128xf32>
    %c0_145 = arith.constant 0 : index
    %c5_146 = arith.constant 5 : index
    %c1_147 = arith.constant 1 : index
    %209 = memref.load %arg2[%c0_145, %c5_146, %c1_147] : memref<2x7x7xf32, #tpu.memory_space<smem>>
    %210 = vector.broadcast %209 : f32 to vector<4x128xf32>
    %211 = arith.mulf %208, %210 : vector<4x128xf32>
    %212 = arith.addf %207, %211 : vector<4x128xf32>
    %c1_i32_148 = arith.constant 1 : i32
    %213 = tpu.dynamic_rotate %208 by %c1_i32_148 dim 1 : vector<4x128xf32>, i32 -> vector<4x128xf32>
    %c0_149 = arith.constant 0 : index
    %c5_150 = arith.constant 5 : index
    %c0_151 = arith.constant 0 : index
    %214 = memref.load %arg2[%c0_149, %c5_150, %c0_151] : memref<2x7x7xf32, #tpu.memory_space<smem>>
    %215 = vector.broadcast %214 : f32 to vector<4x128xf32>
    %216 = arith.mulf %213, %215 : vector<4x128xf32>
    %217 = arith.addf %212, %216 : vector<4x128xf32>
    %c127_i32_152 = arith.constant 127 : i32
    %218 = tpu.dynamic_rotate %198 by %c127_i32_152 dim 1 : vector<4x128xf32>, i32 -> vector<4x128xf32>
    %c0_153 = arith.constant 0 : index
    %c5_154 = arith.constant 5 : index
    %c4_155 = arith.constant 4 : index
    %219 = memref.load %arg2[%c0_153, %c5_154, %c4_155] : memref<2x7x7xf32, #tpu.memory_space<smem>>
    %220 = vector.broadcast %219 : f32 to vector<4x128xf32>
    %221 = arith.mulf %218, %220 : vector<4x128xf32>
    %222 = arith.addf %197, %221 : vector<4x128xf32>
    %c127_i32_156 = arith.constant 127 : i32
    %223 = tpu.dynamic_rotate %218 by %c127_i32_156 dim 1 : vector<4x128xf32>, i32 -> vector<4x128xf32>
    %c0_157 = arith.constant 0 : index
    %c5_158 = arith.constant 5 : index
    %c5_159 = arith.constant 5 : index
    %224 = memref.load %arg2[%c0_157, %c5_158, %c5_159] : memref<2x7x7xf32, #tpu.memory_space<smem>>
    %225 = vector.broadcast %224 : f32 to vector<4x128xf32>
    %226 = arith.mulf %223, %225 : vector<4x128xf32>
    %227 = arith.addf %222, %226 : vector<4x128xf32>
    %c127_i32_160 = arith.constant 127 : i32
    %228 = tpu.dynamic_rotate %223 by %c127_i32_160 dim 1 : vector<4x128xf32>, i32 -> vector<4x128xf32>
    %c0_161 = arith.constant 0 : index
    %c5_162 = arith.constant 5 : index
    %c6_163 = arith.constant 6 : index
    %229 = memref.load %arg2[%c0_161, %c5_162, %c6_163] : memref<2x7x7xf32, #tpu.memory_space<smem>>
    %230 = vector.broadcast %229 : f32 to vector<4x128xf32>
    %231 = arith.mulf %228, %230 : vector<4x128xf32>
    %232 = arith.addf %227, %231 : vector<4x128xf32>
    %233 = vector.extract_strided_slice %12 {offsets = [6, 0], sizes = [4, 128], strides = [1, 1]} : vector<10x128xf32> to vector<4x128xf32>
    %c0_164 = arith.constant 0 : index
    %c6_165 = arith.constant 6 : index
    %c3_166 = arith.constant 3 : index
    %234 = memref.load %arg2[%c0_164, %c6_165, %c3_166] : memref<2x7x7xf32, #tpu.memory_space<smem>>
    %235 = vector.broadcast %234 : f32 to vector<4x128xf32>
    %236 = arith.mulf %233, %235 : vector<4x128xf32>
    %237 = arith.addf %217, %236 : vector<4x128xf32>
    %c1_i32_167 = arith.constant 1 : i32
    %238 = tpu.dynamic_rotate %233 by %c1_i32_167 dim 1 : vector<4x128xf32>, i32 -> vector<4x128xf32>
    %c0_168 = arith.constant 0 : index
    %c6_169 = arith.constant 6 : index
    %c2_170 = arith.constant 2 : index
    %239 = memref.load %arg2[%c0_168, %c6_169, %c2_170] : memref<2x7x7xf32, #tpu.memory_space<smem>>
    %240 = vector.broadcast %239 : f32 to vector<4x128xf32>
    %241 = arith.mulf %238, %240 : vector<4x128xf32>
    %242 = arith.addf %237, %241 : vector<4x128xf32>
    %c1_i32_171 = arith.constant 1 : i32
    %243 = tpu.dynamic_rotate %238 by %c1_i32_171 dim 1 : vector<4x128xf32>, i32 -> vector<4x128xf32>
    %c0_172 = arith.constant 0 : index
    %c6_173 = arith.constant 6 : index
    %c1_174 = arith.constant 1 : index
    %244 = memref.load %arg2[%c0_172, %c6_173, %c1_174] : memref<2x7x7xf32, #tpu.memory_space<smem>>
    %245 = vector.broadcast %244 : f32 to vector<4x128xf32>
    %246 = arith.mulf %243, %245 : vector<4x128xf32>
    %247 = arith.addf %242, %246 : vector<4x128xf32>
    %c1_i32_175 = arith.constant 1 : i32
    %248 = tpu.dynamic_rotate %243 by %c1_i32_175 dim 1 : vector<4x128xf32>, i32 -> vector<4x128xf32>
    %c0_176 = arith.constant 0 : index
    %c6_177 = arith.constant 6 : index
    %c0_178 = arith.constant 0 : index
    %249 = memref.load %arg2[%c0_176, %c6_177, %c0_178] : memref<2x7x7xf32, #tpu.memory_space<smem>>
    %250 = vector.broadcast %249 : f32 to vector<4x128xf32>
    %251 = arith.mulf %248, %250 : vector<4x128xf32>
    %252 = arith.addf %247, %251 : vector<4x128xf32>
    %c127_i32_179 = arith.constant 127 : i32
    %253 = tpu.dynamic_rotate %233 by %c127_i32_179 dim 1 : vector<4x128xf32>, i32 -> vector<4x128xf32>
    %c0_180 = arith.constant 0 : index
    %c6_181 = arith.constant 6 : index
    %c4_182 = arith.constant 4 : index
    %254 = memref.load %arg2[%c0_180, %c6_181, %c4_182] : memref<2x7x7xf32, #tpu.memory_space<smem>>
    %255 = vector.broadcast %254 : f32 to vector<4x128xf32>
    %256 = arith.mulf %253, %255 : vector<4x128xf32>
    %257 = arith.addf %232, %256 : vector<4x128xf32>
    %c127_i32_183 = arith.constant 127 : i32
    %258 = tpu.dynamic_rotate %253 by %c127_i32_183 dim 1 : vector<4x128xf32>, i32 -> vector<4x128xf32>
    %c0_184 = arith.constant 0 : index
    %c6_185 = arith.constant 6 : index
    %c5_186 = arith.constant 5 : index
    %259 = memref.load %arg2[%c0_184, %c6_185, %c5_186] : memref<2x7x7xf32, #tpu.memory_space<smem>>
    %260 = vector.broadcast %259 : f32 to vector<4x128xf32>
    %261 = arith.mulf %258, %260 : vector<4x128xf32>
    %262 = arith.addf %257, %261 : vector<4x128xf32>
    %c127_i32_187 = arith.constant 127 : i32
    %263 = tpu.dynamic_rotate %258 by %c127_i32_187 dim 1 : vector<4x128xf32>, i32 -> vector<4x128xf32>
    %c0_188 = arith.constant 0 : index
    %c6_189 = arith.constant 6 : index
    %c6_190 = arith.constant 6 : index
    %264 = memref.load %arg2[%c0_188, %c6_189, %c6_190] : memref<2x7x7xf32, #tpu.memory_space<smem>>
    %265 = vector.broadcast %264 : f32 to vector<4x128xf32>
    %266 = arith.mulf %263, %265 : vector<4x128xf32>
    %267 = arith.addf %262, %266 : vector<4x128xf32>
    %268 = arith.addf %252, %267 : vector<4x128xf32>
    %cst_191 = arith.constant 0.000000e+00 : f32
    %269 = vector.broadcast %cst_191 : f32 to vector<4x128xf32>
    %cst_192 = arith.constant 0.000000e+00 : f32
    %270 = vector.broadcast %cst_192 : f32 to vector<4x128xf32>
    %271 = vector.extract_strided_slice %20 {offsets = [0, 0], sizes = [4, 128], strides = [1, 1]} : vector<10x128xf32> to vector<4x128xf32>
    %c1_193 = arith.constant 1 : index
    %c0_194 = arith.constant 0 : index
    %c3_195 = arith.constant 3 : index
    %272 = memref.load %arg2[%c1_193, %c0_194, %c3_195] : memref<2x7x7xf32, #tpu.memory_space<smem>>
    %273 = vector.broadcast %272 : f32 to vector<4x128xf32>
    %274 = arith.mulf %271, %273 : vector<4x128xf32>
    %275 = arith.addf %269, %274 : vector<4x128xf32>
    %c1_i32_196 = arith.constant 1 : i32
    %276 = tpu.dynamic_rotate %271 by %c1_i32_196 dim 1 : vector<4x128xf32>, i32 -> vector<4x128xf32>
    %c1_197 = arith.constant 1 : index
    %c0_198 = arith.constant 0 : index
    %c2_199 = arith.constant 2 : index
    %277 = memref.load %arg2[%c1_197, %c0_198, %c2_199] : memref<2x7x7xf32, #tpu.memory_space<smem>>
    %278 = vector.broadcast %277 : f32 to vector<4x128xf32>
    %279 = arith.mulf %276, %278 : vector<4x128xf32>
    %280 = arith.addf %275, %279 : vector<4x128xf32>
    %c1_i32_200 = arith.constant 1 : i32
    %281 = tpu.dynamic_rotate %276 by %c1_i32_200 dim 1 : vector<4x128xf32>, i32 -> vector<4x128xf32>
    %c1_201 = arith.constant 1 : index
    %c0_202 = arith.constant 0 : index
    %c1_203 = arith.constant 1 : index
    %282 = memref.load %arg2[%c1_201, %c0_202, %c1_203] : memref<2x7x7xf32, #tpu.memory_space<smem>>
    %283 = vector.broadcast %282 : f32 to vector<4x128xf32>
    %284 = arith.mulf %281, %283 : vector<4x128xf32>
    %285 = arith.addf %280, %284 : vector<4x128xf32>
    %c1_i32_204 = arith.constant 1 : i32
    %286 = tpu.dynamic_rotate %281 by %c1_i32_204 dim 1 : vector<4x128xf32>, i32 -> vector<4x128xf32>
    %c1_205 = arith.constant 1 : index
    %c0_206 = arith.constant 0 : index
    %c0_207 = arith.constant 0 : index
    %287 = memref.load %arg2[%c1_205, %c0_206, %c0_207] : memref<2x7x7xf32, #tpu.memory_space<smem>>
    %288 = vector.broadcast %287 : f32 to vector<4x128xf32>
    %289 = arith.mulf %286, %288 : vector<4x128xf32>
    %290 = arith.addf %285, %289 : vector<4x128xf32>
    %c127_i32_208 = arith.constant 127 : i32
    %291 = tpu.dynamic_rotate %271 by %c127_i32_208 dim 1 : vector<4x128xf32>, i32 -> vector<4x128xf32>
    %c1_209 = arith.constant 1 : index
    %c0_210 = arith.constant 0 : index
    %c4_211 = arith.constant 4 : index
    %292 = memref.load %arg2[%c1_209, %c0_210, %c4_211] : memref<2x7x7xf32, #tpu.memory_space<smem>>
    %293 = vector.broadcast %292 : f32 to vector<4x128xf32>
    %294 = arith.mulf %291, %293 : vector<4x128xf32>
    %295 = arith.addf %270, %294 : vector<4x128xf32>
    %c127_i32_212 = arith.constant 127 : i32
    %296 = tpu.dynamic_rotate %291 by %c127_i32_212 dim 1 : vector<4x128xf32>, i32 -> vector<4x128xf32>
    %c1_213 = arith.constant 1 : index
    %c0_214 = arith.constant 0 : index
    %c5_215 = arith.constant 5 : index
    %297 = memref.load %arg2[%c1_213, %c0_214, %c5_215] : memref<2x7x7xf32, #tpu.memory_space<smem>>
    %298 = vector.broadcast %297 : f32 to vector<4x128xf32>
    %299 = arith.mulf %296, %298 : vector<4x128xf32>
    %300 = arith.addf %295, %299 : vector<4x128xf32>
    %c127_i32_216 = arith.constant 127 : i32
    %301 = tpu.dynamic_rotate %296 by %c127_i32_216 dim 1 : vector<4x128xf32>, i32 -> vector<4x128xf32>
    %c1_217 = arith.constant 1 : index
    %c0_218 = arith.constant 0 : index
    %c6_219 = arith.constant 6 : index
    %302 = memref.load %arg2[%c1_217, %c0_218, %c6_219] : memref<2x7x7xf32, #tpu.memory_space<smem>>
    %303 = vector.broadcast %302 : f32 to vector<4x128xf32>
    %304 = arith.mulf %301, %303 : vector<4x128xf32>
    %305 = arith.addf %300, %304 : vector<4x128xf32>
    %306 = vector.extract_strided_slice %20 {offsets = [1, 0], sizes = [4, 128], strides = [1, 1]} : vector<10x128xf32> to vector<4x128xf32>
    %c1_220 = arith.constant 1 : index
    %c1_221 = arith.constant 1 : index
    %c3_222 = arith.constant 3 : index
    %307 = memref.load %arg2[%c1_220, %c1_221, %c3_222] : memref<2x7x7xf32, #tpu.memory_space<smem>>
    %308 = vector.broadcast %307 : f32 to vector<4x128xf32>
    %309 = arith.mulf %306, %308 : vector<4x128xf32>
    %310 = arith.addf %290, %309 : vector<4x128xf32>
    %c1_i32_223 = arith.constant 1 : i32
    %311 = tpu.dynamic_rotate %306 by %c1_i32_223 dim 1 : vector<4x128xf32>, i32 -> vector<4x128xf32>
    %c1_224 = arith.constant 1 : index
    %c1_225 = arith.constant 1 : index
    %c2_226 = arith.constant 2 : index
    %312 = memref.load %arg2[%c1_224, %c1_225, %c2_226] : memref<2x7x7xf32, #tpu.memory_space<smem>>
    %313 = vector.broadcast %312 : f32 to vector<4x128xf32>
    %314 = arith.mulf %311, %313 : vector<4x128xf32>
    %315 = arith.addf %310, %314 : vector<4x128xf32>
    %c1_i32_227 = arith.constant 1 : i32
    %316 = tpu.dynamic_rotate %311 by %c1_i32_227 dim 1 : vector<4x128xf32>, i32 -> vector<4x128xf32>
    %c1_228 = arith.constant 1 : index
    %c1_229 = arith.constant 1 : index
    %c1_230 = arith.constant 1 : index
    %317 = memref.load %arg2[%c1_228, %c1_229, %c1_230] : memref<2x7x7xf32, #tpu.memory_space<smem>>
    %318 = vector.broadcast %317 : f32 to vector<4x128xf32>
    %319 = arith.mulf %316, %318 : vector<4x128xf32>
    %320 = arith.addf %315, %319 : vector<4x128xf32>
    %c1_i32_231 = arith.constant 1 : i32
    %321 = tpu.dynamic_rotate %316 by %c1_i32_231 dim 1 : vector<4x128xf32>, i32 -> vector<4x128xf32>
    %c1_232 = arith.constant 1 : index
    %c1_233 = arith.constant 1 : index
    %c0_234 = arith.constant 0 : index
    %322 = memref.load %arg2[%c1_232, %c1_233, %c0_234] : memref<2x7x7xf32, #tpu.memory_space<smem>>
    %323 = vector.broadcast %322 : f32 to vector<4x128xf32>
    %324 = arith.mulf %321, %323 : vector<4x128xf32>
    %325 = arith.addf %320, %324 : vector<4x128xf32>
    %c127_i32_235 = arith.constant 127 : i32
    %326 = tpu.dynamic_rotate %306 by %c127_i32_235 dim 1 : vector<4x128xf32>, i32 -> vector<4x128xf32>
    %c1_236 = arith.constant 1 : index
    %c1_237 = arith.constant 1 : index
    %c4_238 = arith.constant 4 : index
    %327 = memref.load %arg2[%c1_236, %c1_237, %c4_238] : memref<2x7x7xf32, #tpu.memory_space<smem>>
    %328 = vector.broadcast %327 : f32 to vector<4x128xf32>
    %329 = arith.mulf %326, %328 : vector<4x128xf32>
    %330 = arith.addf %305, %329 : vector<4x128xf32>
    %c127_i32_239 = arith.constant 127 : i32
    %331 = tpu.dynamic_rotate %326 by %c127_i32_239 dim 1 : vector<4x128xf32>, i32 -> vector<4x128xf32>
    %c1_240 = arith.constant 1 : index
    %c1_241 = arith.constant 1 : index
    %c5_242 = arith.constant 5 : index
    %332 = memref.load %arg2[%c1_240, %c1_241, %c5_242] : memref<2x7x7xf32, #tpu.memory_space<smem>>
    %333 = vector.broadcast %332 : f32 to vector<4x128xf32>
    %334 = arith.mulf %331, %333 : vector<4x128xf32>
    %335 = arith.addf %330, %334 : vector<4x128xf32>
    %c127_i32_243 = arith.constant 127 : i32
    %336 = tpu.dynamic_rotate %331 by %c127_i32_243 dim 1 : vector<4x128xf32>, i32 -> vector<4x128xf32>
    %c1_244 = arith.constant 1 : index
    %c1_245 = arith.constant 1 : index
    %c6_246 = arith.constant 6 : index
    %337 = memref.load %arg2[%c1_244, %c1_245, %c6_246] : memref<2x7x7xf32, #tpu.memory_space<smem>>
    %338 = vector.broadcast %337 : f32 to vector<4x128xf32>
    %339 = arith.mulf %336, %338 : vector<4x128xf32>
    %340 = arith.addf %335, %339 : vector<4x128xf32>
    %341 = vector.extract_strided_slice %20 {offsets = [2, 0], sizes = [4, 128], strides = [1, 1]} : vector<10x128xf32> to vector<4x128xf32>
    %c1_247 = arith.constant 1 : index
    %c2_248 = arith.constant 2 : index
    %c3_249 = arith.constant 3 : index
    %342 = memref.load %arg2[%c1_247, %c2_248, %c3_249] : memref<2x7x7xf32, #tpu.memory_space<smem>>
    %343 = vector.broadcast %342 : f32 to vector<4x128xf32>
    %344 = arith.mulf %341, %343 : vector<4x128xf32>
    %345 = arith.addf %325, %344 : vector<4x128xf32>
    %c1_i32_250 = arith.constant 1 : i32
    %346 = tpu.dynamic_rotate %341 by %c1_i32_250 dim 1 : vector<4x128xf32>, i32 -> vector<4x128xf32>
    %c1_251 = arith.constant 1 : index
    %c2_252 = arith.constant 2 : index
    %c2_253 = arith.constant 2 : index
    %347 = memref.load %arg2[%c1_251, %c2_252, %c2_253] : memref<2x7x7xf32, #tpu.memory_space<smem>>
    %348 = vector.broadcast %347 : f32 to vector<4x128xf32>
    %349 = arith.mulf %346, %348 : vector<4x128xf32>
    %350 = arith.addf %345, %349 : vector<4x128xf32>
    %c1_i32_254 = arith.constant 1 : i32
    %351 = tpu.dynamic_rotate %346 by %c1_i32_254 dim 1 : vector<4x128xf32>, i32 -> vector<4x128xf32>
    %c1_255 = arith.constant 1 : index
    %c2_256 = arith.constant 2 : index
    %c1_257 = arith.constant 1 : index
    %352 = memref.load %arg2[%c1_255, %c2_256, %c1_257] : memref<2x7x7xf32, #tpu.memory_space<smem>>
    %353 = vector.broadcast %352 : f32 to vector<4x128xf32>
    %354 = arith.mulf %351, %353 : vector<4x128xf32>
    %355 = arith.addf %350, %354 : vector<4x128xf32>
    %c1_i32_258 = arith.constant 1 : i32
    %356 = tpu.dynamic_rotate %351 by %c1_i32_258 dim 1 : vector<4x128xf32>, i32 -> vector<4x128xf32>
    %c1_259 = arith.constant 1 : index
    %c2_260 = arith.constant 2 : index
    %c0_261 = arith.constant 0 : index
    %357 = memref.load %arg2[%c1_259, %c2_260, %c0_261] : memref<2x7x7xf32, #tpu.memory_space<smem>>
    %358 = vector.broadcast %357 : f32 to vector<4x128xf32>
    %359 = arith.mulf %356, %358 : vector<4x128xf32>
    %360 = arith.addf %355, %359 : vector<4x128xf32>
    %c127_i32_262 = arith.constant 127 : i32
    %361 = tpu.dynamic_rotate %341 by %c127_i32_262 dim 1 : vector<4x128xf32>, i32 -> vector<4x128xf32>
    %c1_263 = arith.constant 1 : index
    %c2_264 = arith.constant 2 : index
    %c4_265 = arith.constant 4 : index
    %362 = memref.load %arg2[%c1_263, %c2_264, %c4_265] : memref<2x7x7xf32, #tpu.memory_space<smem>>
    %363 = vector.broadcast %362 : f32 to vector<4x128xf32>
    %364 = arith.mulf %361, %363 : vector<4x128xf32>
    %365 = arith.addf %340, %364 : vector<4x128xf32>
    %c127_i32_266 = arith.constant 127 : i32
    %366 = tpu.dynamic_rotate %361 by %c127_i32_266 dim 1 : vector<4x128xf32>, i32 -> vector<4x128xf32>
    %c1_267 = arith.constant 1 : index
    %c2_268 = arith.constant 2 : index
    %c5_269 = arith.constant 5 : index
    %367 = memref.load %arg2[%c1_267, %c2_268, %c5_269] : memref<2x7x7xf32, #tpu.memory_space<smem>>
    %368 = vector.broadcast %367 : f32 to vector<4x128xf32>
    %369 = arith.mulf %366, %368 : vector<4x128xf32>
    %370 = arith.addf %365, %369 : vector<4x128xf32>
    %c127_i32_270 = arith.constant 127 : i32
    %371 = tpu.dynamic_rotate %366 by %c127_i32_270 dim 1 : vector<4x128xf32>, i32 -> vector<4x128xf32>
    %c1_271 = arith.constant 1 : index
    %c2_272 = arith.constant 2 : index
    %c6_273 = arith.constant 6 : index
    %372 = memref.load %arg2[%c1_271, %c2_272, %c6_273] : memref<2x7x7xf32, #tpu.memory_space<smem>>
    %373 = vector.broadcast %372 : f32 to vector<4x128xf32>
    %374 = arith.mulf %371, %373 : vector<4x128xf32>
    %375 = arith.addf %370, %374 : vector<4x128xf32>
    %376 = vector.extract_strided_slice %20 {offsets = [3, 0], sizes = [4, 128], strides = [1, 1]} : vector<10x128xf32> to vector<4x128xf32>
    %c1_274 = arith.constant 1 : index
    %c3_275 = arith.constant 3 : index
    %c3_276 = arith.constant 3 : index
    %377 = memref.load %arg2[%c1_274, %c3_275, %c3_276] : memref<2x7x7xf32, #tpu.memory_space<smem>>
    %378 = vector.broadcast %377 : f32 to vector<4x128xf32>
    %379 = arith.mulf %376, %378 : vector<4x128xf32>
    %380 = arith.addf %360, %379 : vector<4x128xf32>
    %c1_i32_277 = arith.constant 1 : i32
    %381 = tpu.dynamic_rotate %376 by %c1_i32_277 dim 1 : vector<4x128xf32>, i32 -> vector<4x128xf32>
    %c1_278 = arith.constant 1 : index
    %c3_279 = arith.constant 3 : index
    %c2_280 = arith.constant 2 : index
    %382 = memref.load %arg2[%c1_278, %c3_279, %c2_280] : memref<2x7x7xf32, #tpu.memory_space<smem>>
    %383 = vector.broadcast %382 : f32 to vector<4x128xf32>
    %384 = arith.mulf %381, %383 : vector<4x128xf32>
    %385 = arith.addf %380, %384 : vector<4x128xf32>
    %c1_i32_281 = arith.constant 1 : i32
    %386 = tpu.dynamic_rotate %381 by %c1_i32_281 dim 1 : vector<4x128xf32>, i32 -> vector<4x128xf32>
    %c1_282 = arith.constant 1 : index
    %c3_283 = arith.constant 3 : index
    %c1_284 = arith.constant 1 : index
    %387 = memref.load %arg2[%c1_282, %c3_283, %c1_284] : memref<2x7x7xf32, #tpu.memory_space<smem>>
    %388 = vector.broadcast %387 : f32 to vector<4x128xf32>
    %389 = arith.mulf %386, %388 : vector<4x128xf32>
    %390 = arith.addf %385, %389 : vector<4x128xf32>
    %c1_i32_285 = arith.constant 1 : i32
    %391 = tpu.dynamic_rotate %386 by %c1_i32_285 dim 1 : vector<4x128xf32>, i32 -> vector<4x128xf32>
    %c1_286 = arith.constant 1 : index
    %c3_287 = arith.constant 3 : index
    %c0_288 = arith.constant 0 : index
    %392 = memref.load %arg2[%c1_286, %c3_287, %c0_288] : memref<2x7x7xf32, #tpu.memory_space<smem>>
    %393 = vector.broadcast %392 : f32 to vector<4x128xf32>
    %394 = arith.mulf %391, %393 : vector<4x128xf32>
    %395 = arith.addf %390, %394 : vector<4x128xf32>
    %c127_i32_289 = arith.constant 127 : i32
    %396 = tpu.dynamic_rotate %376 by %c127_i32_289 dim 1 : vector<4x128xf32>, i32 -> vector<4x128xf32>
    %c1_290 = arith.constant 1 : index
    %c3_291 = arith.constant 3 : index
    %c4_292 = arith.constant 4 : index
    %397 = memref.load %arg2[%c1_290, %c3_291, %c4_292] : memref<2x7x7xf32, #tpu.memory_space<smem>>
    %398 = vector.broadcast %397 : f32 to vector<4x128xf32>
    %399 = arith.mulf %396, %398 : vector<4x128xf32>
    %400 = arith.addf %375, %399 : vector<4x128xf32>
    %c127_i32_293 = arith.constant 127 : i32
    %401 = tpu.dynamic_rotate %396 by %c127_i32_293 dim 1 : vector<4x128xf32>, i32 -> vector<4x128xf32>
    %c1_294 = arith.constant 1 : index
    %c3_295 = arith.constant 3 : index
    %c5_296 = arith.constant 5 : index
    %402 = memref.load %arg2[%c1_294, %c3_295, %c5_296] : memref<2x7x7xf32, #tpu.memory_space<smem>>
    %403 = vector.broadcast %402 : f32 to vector<4x128xf32>
    %404 = arith.mulf %401, %403 : vector<4x128xf32>
    %405 = arith.addf %400, %404 : vector<4x128xf32>
    %c127_i32_297 = arith.constant 127 : i32
    %406 = tpu.dynamic_rotate %401 by %c127_i32_297 dim 1 : vector<4x128xf32>, i32 -> vector<4x128xf32>
    %c1_298 = arith.constant 1 : index
    %c3_299 = arith.constant 3 : index
    %c6_300 = arith.constant 6 : index
    %407 = memref.load %arg2[%c1_298, %c3_299, %c6_300] : memref<2x7x7xf32, #tpu.memory_space<smem>>
    %408 = vector.broadcast %407 : f32 to vector<4x128xf32>
    %409 = arith.mulf %406, %408 : vector<4x128xf32>
    %410 = arith.addf %405, %409 : vector<4x128xf32>
    %411 = vector.extract_strided_slice %20 {offsets = [4, 0], sizes = [4, 128], strides = [1, 1]} : vector<10x128xf32> to vector<4x128xf32>
    %c1_301 = arith.constant 1 : index
    %c4_302 = arith.constant 4 : index
    %c3_303 = arith.constant 3 : index
    %412 = memref.load %arg2[%c1_301, %c4_302, %c3_303] : memref<2x7x7xf32, #tpu.memory_space<smem>>
    %413 = vector.broadcast %412 : f32 to vector<4x128xf32>
    %414 = arith.mulf %411, %413 : vector<4x128xf32>
    %415 = arith.addf %395, %414 : vector<4x128xf32>
    %c1_i32_304 = arith.constant 1 : i32
    %416 = tpu.dynamic_rotate %411 by %c1_i32_304 dim 1 : vector<4x128xf32>, i32 -> vector<4x128xf32>
    %c1_305 = arith.constant 1 : index
    %c4_306 = arith.constant 4 : index
    %c2_307 = arith.constant 2 : index
    %417 = memref.load %arg2[%c1_305, %c4_306, %c2_307] : memref<2x7x7xf32, #tpu.memory_space<smem>>
    %418 = vector.broadcast %417 : f32 to vector<4x128xf32>
    %419 = arith.mulf %416, %418 : vector<4x128xf32>
    %420 = arith.addf %415, %419 : vector<4x128xf32>
    %c1_i32_308 = arith.constant 1 : i32
    %421 = tpu.dynamic_rotate %416 by %c1_i32_308 dim 1 : vector<4x128xf32>, i32 -> vector<4x128xf32>
    %c1_309 = arith.constant 1 : index
    %c4_310 = arith.constant 4 : index
    %c1_311 = arith.constant 1 : index
    %422 = memref.load %arg2[%c1_309, %c4_310, %c1_311] : memref<2x7x7xf32, #tpu.memory_space<smem>>
    %423 = vector.broadcast %422 : f32 to vector<4x128xf32>
    %424 = arith.mulf %421, %423 : vector<4x128xf32>
    %425 = arith.addf %420, %424 : vector<4x128xf32>
    %c1_i32_312 = arith.constant 1 : i32
    %426 = tpu.dynamic_rotate %421 by %c1_i32_312 dim 1 : vector<4x128xf32>, i32 -> vector<4x128xf32>
    %c1_313 = arith.constant 1 : index
    %c4_314 = arith.constant 4 : index
    %c0_315 = arith.constant 0 : index
    %427 = memref.load %arg2[%c1_313, %c4_314, %c0_315] : memref<2x7x7xf32, #tpu.memory_space<smem>>
    %428 = vector.broadcast %427 : f32 to vector<4x128xf32>
    %429 = arith.mulf %426, %428 : vector<4x128xf32>
    %430 = arith.addf %425, %429 : vector<4x128xf32>
    %c127_i32_316 = arith.constant 127 : i32
    %431 = tpu.dynamic_rotate %411 by %c127_i32_316 dim 1 : vector<4x128xf32>, i32 -> vector<4x128xf32>
    %c1_317 = arith.constant 1 : index
    %c4_318 = arith.constant 4 : index
    %c4_319 = arith.constant 4 : index
    %432 = memref.load %arg2[%c1_317, %c4_318, %c4_319] : memref<2x7x7xf32, #tpu.memory_space<smem>>
    %433 = vector.broadcast %432 : f32 to vector<4x128xf32>
    %434 = arith.mulf %431, %433 : vector<4x128xf32>
    %435 = arith.addf %410, %434 : vector<4x128xf32>
    %c127_i32_320 = arith.constant 127 : i32
    %436 = tpu.dynamic_rotate %431 by %c127_i32_320 dim 1 : vector<4x128xf32>, i32 -> vector<4x128xf32>
    %c1_321 = arith.constant 1 : index
    %c4_322 = arith.constant 4 : index
    %c5_323 = arith.constant 5 : index
    %437 = memref.load %arg2[%c1_321, %c4_322, %c5_323] : memref<2x7x7xf32, #tpu.memory_space<smem>>
    %438 = vector.broadcast %437 : f32 to vector<4x128xf32>
    %439 = arith.mulf %436, %438 : vector<4x128xf32>
    %440 = arith.addf %435, %439 : vector<4x128xf32>
    %c127_i32_324 = arith.constant 127 : i32
    %441 = tpu.dynamic_rotate %436 by %c127_i32_324 dim 1 : vector<4x128xf32>, i32 -> vector<4x128xf32>
    %c1_325 = arith.constant 1 : index
    %c4_326 = arith.constant 4 : index
    %c6_327 = arith.constant 6 : index
    %442 = memref.load %arg2[%c1_325, %c4_326, %c6_327] : memref<2x7x7xf32, #tpu.memory_space<smem>>
    %443 = vector.broadcast %442 : f32 to vector<4x128xf32>
    %444 = arith.mulf %441, %443 : vector<4x128xf32>
    %445 = arith.addf %440, %444 : vector<4x128xf32>
    %446 = vector.extract_strided_slice %20 {offsets = [5, 0], sizes = [4, 128], strides = [1, 1]} : vector<10x128xf32> to vector<4x128xf32>
    %c1_328 = arith.constant 1 : index
    %c5_329 = arith.constant 5 : index
    %c3_330 = arith.constant 3 : index
    %447 = memref.load %arg2[%c1_328, %c5_329, %c3_330] : memref<2x7x7xf32, #tpu.memory_space<smem>>
    %448 = vector.broadcast %447 : f32 to vector<4x128xf32>
    %449 = arith.mulf %446, %448 : vector<4x128xf32>
    %450 = arith.addf %430, %449 : vector<4x128xf32>
    %c1_i32_331 = arith.constant 1 : i32
    %451 = tpu.dynamic_rotate %446 by %c1_i32_331 dim 1 : vector<4x128xf32>, i32 -> vector<4x128xf32>
    %c1_332 = arith.constant 1 : index
    %c5_333 = arith.constant 5 : index
    %c2_334 = arith.constant 2 : index
    %452 = memref.load %arg2[%c1_332, %c5_333, %c2_334] : memref<2x7x7xf32, #tpu.memory_space<smem>>
    %453 = vector.broadcast %452 : f32 to vector<4x128xf32>
    %454 = arith.mulf %451, %453 : vector<4x128xf32>
    %455 = arith.addf %450, %454 : vector<4x128xf32>
    %c1_i32_335 = arith.constant 1 : i32
    %456 = tpu.dynamic_rotate %451 by %c1_i32_335 dim 1 : vector<4x128xf32>, i32 -> vector<4x128xf32>
    %c1_336 = arith.constant 1 : index
    %c5_337 = arith.constant 5 : index
    %c1_338 = arith.constant 1 : index
    %457 = memref.load %arg2[%c1_336, %c5_337, %c1_338] : memref<2x7x7xf32, #tpu.memory_space<smem>>
    %458 = vector.broadcast %457 : f32 to vector<4x128xf32>
    %459 = arith.mulf %456, %458 : vector<4x128xf32>
    %460 = arith.addf %455, %459 : vector<4x128xf32>
    %c1_i32_339 = arith.constant 1 : i32
    %461 = tpu.dynamic_rotate %456 by %c1_i32_339 dim 1 : vector<4x128xf32>, i32 -> vector<4x128xf32>
    %c1_340 = arith.constant 1 : index
    %c5_341 = arith.constant 5 : index
    %c0_342 = arith.constant 0 : index
    %462 = memref.load %arg2[%c1_340, %c5_341, %c0_342] : memref<2x7x7xf32, #tpu.memory_space<smem>>
    %463 = vector.broadcast %462 : f32 to vector<4x128xf32>
    %464 = arith.mulf %461, %463 : vector<4x128xf32>
    %465 = arith.addf %460, %464 : vector<4x128xf32>
    %c127_i32_343 = arith.constant 127 : i32
    %466 = tpu.dynamic_rotate %446 by %c127_i32_343 dim 1 : vector<4x128xf32>, i32 -> vector<4x128xf32>
    %c1_344 = arith.constant 1 : index
    %c5_345 = arith.constant 5 : index
    %c4_346 = arith.constant 4 : index
    %467 = memref.load %arg2[%c1_344, %c5_345, %c4_346] : memref<2x7x7xf32, #tpu.memory_space<smem>>
    %468 = vector.broadcast %467 : f32 to vector<4x128xf32>
    %469 = arith.mulf %466, %468 : vector<4x128xf32>
    %470 = arith.addf %445, %469 : vector<4x128xf32>
    %c127_i32_347 = arith.constant 127 : i32
    %471 = tpu.dynamic_rotate %466 by %c127_i32_347 dim 1 : vector<4x128xf32>, i32 -> vector<4x128xf32>
    %c1_348 = arith.constant 1 : index
    %c5_349 = arith.constant 5 : index
    %c5_350 = arith.constant 5 : index
    %472 = memref.load %arg2[%c1_348, %c5_349, %c5_350] : memref<2x7x7xf32, #tpu.memory_space<smem>>
    %473 = vector.broadcast %472 : f32 to vector<4x128xf32>
    %474 = arith.mulf %471, %473 : vector<4x128xf32>
    %475 = arith.addf %470, %474 : vector<4x128xf32>
    %c127_i32_351 = arith.constant 127 : i32
    %476 = tpu.dynamic_rotate %471 by %c127_i32_351 dim 1 : vector<4x128xf32>, i32 -> vector<4x128xf32>
    %c1_352 = arith.constant 1 : index
    %c5_353 = arith.constant 5 : index
    %c6_354 = arith.constant 6 : index
    %477 = memref.load %arg2[%c1_352, %c5_353, %c6_354] : memref<2x7x7xf32, #tpu.memory_space<smem>>
    %478 = vector.broadcast %477 : f32 to vector<4x128xf32>
    %479 = arith.mulf %476, %478 : vector<4x128xf32>
    %480 = arith.addf %475, %479 : vector<4x128xf32>
    %481 = vector.extract_strided_slice %20 {offsets = [6, 0], sizes = [4, 128], strides = [1, 1]} : vector<10x128xf32> to vector<4x128xf32>
    %c1_355 = arith.constant 1 : index
    %c6_356 = arith.constant 6 : index
    %c3_357 = arith.constant 3 : index
    %482 = memref.load %arg2[%c1_355, %c6_356, %c3_357] : memref<2x7x7xf32, #tpu.memory_space<smem>>
    %483 = vector.broadcast %482 : f32 to vector<4x128xf32>
    %484 = arith.mulf %481, %483 : vector<4x128xf32>
    %485 = arith.addf %465, %484 : vector<4x128xf32>
    %c1_i32_358 = arith.constant 1 : i32
    %486 = tpu.dynamic_rotate %481 by %c1_i32_358 dim 1 : vector<4x128xf32>, i32 -> vector<4x128xf32>
    %c1_359 = arith.constant 1 : index
    %c6_360 = arith.constant 6 : index
    %c2_361 = arith.constant 2 : index
    %487 = memref.load %arg2[%c1_359, %c6_360, %c2_361] : memref<2x7x7xf32, #tpu.memory_space<smem>>
    %488 = vector.broadcast %487 : f32 to vector<4x128xf32>
    %489 = arith.mulf %486, %488 : vector<4x128xf32>
    %490 = arith.addf %485, %489 : vector<4x128xf32>
    %c1_i32_362 = arith.constant 1 : i32
    %491 = tpu.dynamic_rotate %486 by %c1_i32_362 dim 1 : vector<4x128xf32>, i32 -> vector<4x128xf32>
    %c1_363 = arith.constant 1 : index
    %c6_364 = arith.constant 6 : index
    %c1_365 = arith.constant 1 : index
    %492 = memref.load %arg2[%c1_363, %c6_364, %c1_365] : memref<2x7x7xf32, #tpu.memory_space<smem>>
    %493 = vector.broadcast %492 : f32 to vector<4x128xf32>
    %494 = arith.mulf %491, %493 : vector<4x128xf32>
    %495 = arith.addf %490, %494 : vector<4x128xf32>
    %c1_i32_366 = arith.constant 1 : i32
    %496 = tpu.dynamic_rotate %491 by %c1_i32_366 dim 1 : vector<4x128xf32>, i32 -> vector<4x128xf32>
    %c1_367 = arith.constant 1 : index
    %c6_368 = arith.constant 6 : index
    %c0_369 = arith.constant 0 : index
    %497 = memref.load %arg2[%c1_367, %c6_368, %c0_369] : memref<2x7x7xf32, #tpu.memory_space<smem>>
    %498 = vector.broadcast %497 : f32 to vector<4x128xf32>
    %499 = arith.mulf %496, %498 : vector<4x128xf32>
    %500 = arith.addf %495, %499 : vector<4x128xf32>
    %c127_i32_370 = arith.constant 127 : i32
    %501 = tpu.dynamic_rotate %481 by %c127_i32_370 dim 1 : vector<4x128xf32>, i32 -> vector<4x128xf32>
    %c1_371 = arith.constant 1 : index
    %c6_372 = arith.constant 6 : index
    %c4_373 = arith.constant 4 : index
    %502 = memref.load %arg2[%c1_371, %c6_372, %c4_373] : memref<2x7x7xf32, #tpu.memory_space<smem>>
    %503 = vector.broadcast %502 : f32 to vector<4x128xf32>
    %504 = arith.mulf %501, %503 : vector<4x128xf32>
    %505 = arith.addf %480, %504 : vector<4x128xf32>
    %c127_i32_374 = arith.constant 127 : i32
    %506 = tpu.dynamic_rotate %501 by %c127_i32_374 dim 1 : vector<4x128xf32>, i32 -> vector<4x128xf32>
    %c1_375 = arith.constant 1 : index
    %c6_376 = arith.constant 6 : index
    %c5_377 = arith.constant 5 : index
    %507 = memref.load %arg2[%c1_375, %c6_376, %c5_377] : memref<2x7x7xf32, #tpu.memory_space<smem>>
    %508 = vector.broadcast %507 : f32 to vector<4x128xf32>
    %509 = arith.mulf %506, %508 : vector<4x128xf32>
    %510 = arith.addf %505, %509 : vector<4x128xf32>
    %c127_i32_378 = arith.constant 127 : i32
    %511 = tpu.dynamic_rotate %506 by %c127_i32_378 dim 1 : vector<4x128xf32>, i32 -> vector<4x128xf32>
    %c1_379 = arith.constant 1 : index
    %c6_380 = arith.constant 6 : index
    %c6_381 = arith.constant 6 : index
    %512 = memref.load %arg2[%c1_379, %c6_380, %c6_381] : memref<2x7x7xf32, #tpu.memory_space<smem>>
    %513 = vector.broadcast %512 : f32 to vector<4x128xf32>
    %514 = arith.mulf %511, %513 : vector<4x128xf32>
    %515 = arith.addf %510, %514 : vector<4x128xf32>
    %516 = arith.addf %500, %515 : vector<4x128xf32>
    %517 = arith.addf %268, %516 : vector<4x128xf32>
    %518 = vector.extract_strided_slice %517 {offsets = [0, 0], sizes = [4, 16], strides = [1, 1]} : vector<4x128xf32> to vector<4x16xf32>
    %c0_382 = arith.constant 0 : index
    %519 = memref.load %arg3[%c0_382] : memref<1xf32, #tpu.memory_space<smem>>
    %520 = vector.broadcast %519 : f32 to vector<4x16xf32>
    %521 = arith.addf %518, %520 : vector<4x16xf32>
    %522 = arith.negf %521 : vector<4x16xf32>
    %523 = math.exp %522 : vector<4x16xf32>
    %cst_383 = arith.constant 1.000000e+00 : f32
    %524 = vector.broadcast %cst_383 : f32 to vector<4x16xf32>
    %525 = arith.addf %524, %523 : vector<4x16xf32>
    %526 = arith.divf %524, %525 : vector<4x16xf32>
    %527 = vector.extract_strided_slice %526 {offsets = [0, 0], sizes = [1, 16], strides = [1, 1]} : vector<4x16xf32> to vector<1x16xf32>
    %528 = vector.extract_strided_slice %526 {offsets = [1, 0], sizes = [1, 16], strides = [1, 1]} : vector<4x16xf32> to vector<1x16xf32>
    %529 = vector.extract_strided_slice %526 {offsets = [2, 0], sizes = [1, 16], strides = [1, 1]} : vector<4x16xf32> to vector<1x16xf32>
    %530 = vector.extract_strided_slice %526 {offsets = [3, 0], sizes = [1, 16], strides = [1, 1]} : vector<4x16xf32> to vector<1x16xf32>
    %531 = tpu.concatenate %527, %528, %529, %530 in 1 : vector<1x16xf32>, vector<1x16xf32>, vector<1x16xf32>, vector<1x16xf32> -> vector<1x64xf32>
    %532 = vector.shape_cast %531 : vector<1x64xf32> to vector<1x1x64xf32>
    %533 = vector.broadcast %532 : vector<1x1x64xf32> to vector<1x16x64xf32>
    %534 = arith.mulf %0, %533 : vector<1x16x64xf32>
    %c0_384 = arith.constant 0 : index
    %c0_385 = arith.constant 0 : index
    %c0_386 = arith.constant 0 : index
    %535 = vector.load %arg4[%c0_384, %c0_385, %c0_386] : memref<1x16x64xf32, #tpu.memory_space<vmem>>, vector<1x16x64xf32>
    tpu.vector_store %arg4[%c0_384, %c0_385, %c0_386], %534 {strides = array<i32>} : memref<1x16x64xf32, #tpu.memory_space<vmem>>, vector<1x16x64xf32>,
    return
  }
  func.func @transform_0(%arg0: i32) -> (i32, i32, i32) {
    %c0_i32 = arith.constant 0 : i32
    %c0_i32_0 = arith.constant 0 : i32
    %c0_i32_1 = arith.constant 0 : i32
    return %arg0, %c0_i32, %c0_i32_0 : i32, i32, i32
  }
  func.func @transform_1(%arg0: i32) -> (i32, i32, i32) {
    %c0_i32 = arith.constant 0 : i32
    %c0_i32_0 = arith.constant 0 : i32
    %c0_i32_1 = arith.constant 0 : i32
    %c0_i32_2 = arith.constant 0 : i32
    return %c0_i32, %c0_i32_0, %c0_i32_1 : i32, i32, i32
  }
  func.func @transform_2(%arg0: i32) -> i32 {
    %c0_i32 = arith.constant 0 : i32
    %c0_i32_0 = arith.constant 0 : i32
    return %c0_i32 : i32
  }
  func.func @transform_3(%arg0: i32) -> (i32, i32, i32) {
    %c0_i32 = arith.constant 0 : i32
    %c0_i32_0 = arith.constant 0 : i32
    %c0_i32_1 = arith.constant 0 : i32
    return %arg0, %c0_i32, %c0_i32_0 : i32, i32, i32
  }
}

</mosaic_0001>

<bundles_post_ra>
// kernel: cse_attention.2
= control target key start
LH: loop header
LB: loop body
LE: loop exit
PB: predicated region body
PF: predicated region fallthrough
CT: control target
= control target key end

     0   :  { %s2049_s0 = inlined_call_operand.vmem [shape: f32[2,16,64], index: 0, kind: input, shape index: {}]   ;;  %s2050_s1 = inlined_call_operand.vmem [shape: f32[2,7,7], index: 1, kind: input, shape index: {}]   ;;  %s2051_s2 = inlined_call_operand.<no memory space> [shape: f32[1], index: 2, kind: input, shape index: {}]   ;;  %s2052_s3 = inlined_call_operand.vmem [shape: f32[2,16,64], index: 3, kind: output, shape index: {}]  }
   0x1   :  { %2088 = sst [smem:[#allocation43_spill]] %s2049_s0 }
   0x2   :  { %2089 = sst [smem:[#allocation44_spill]] %s2050_s1 }
   0x3   :  { %2090 = sst [smem:[#allocation45_spill]] %s2052_s3 }
   0x4   :  { %8 = sst [smem:[#allocation2]] %s2051_s2 }
   0x5   :  { %9 = vsyncpa [#allocation4], 0  ;;  %s1211_s14 = smov 0  }
   0x6 LB: > { %2091 = sst [smem:[#allocation6_spill]] %s1174_s14  ;;  %s1000_s15 = sadd.s32 4294967295, %s1174_s14   ;;  %s1174_s14 = sphi %s1211_s14, %s15_s14  }
   0x7   : > { %p1002_p0 = scmp.ge.s32.totalorder %s1174_s14, 1  ;;  %p114_p1 = scmp.lt.s32.totalorder %s1174_s14, 3 }
   0x8   : > { %s2092_s1 = sld [smem:[#allocation44_spill]]  ;;  %p1121_p3 = scmp.eq.s32.totalorder %s1000_s15, 0 }
   0x9   : > { %p1222_p2 = pnand %p1002_p0, %p114_p1 }
   0xb   : > { %p1117_p4 = pneg %p1222_p2 }
   0xd   : > { %p1229_p5 = pnand %p1121_p3, %p1117_p4 }
   0xe   : > { %s126_s18 = sshll.u32 %s2092_s1, 4  ;;  %s127_s18 = int_to_ptr.vmem [resolvable:$true] %s126_s18 }
   0xf   : > { %s1149_s20 = scalar_lea.vmem %s127_s18, 256  ;;  %p1151_p7 = pneg %p1229_p5 }
  0x10   : > { %p1150_p6 = scmp.ne.s32.totalorder %s127_s18, %s1149_s20  ;;  %p1157_p10 = scmp.lt.s32.totalorder %s127_s18, %s127_s18 }
  0x11   : > { %p1158_p11 = scmp.lt.s32.totalorder %s1149_s20, %s1149_s20 }
  0x12   : > { %p1152_p8 = pnand %p1151_p7, %p1150_p6 }
  0x13   : > { %p1159_p12 = por %p1158_p11, %p1157_p10 }
  0x14   : > { %p1153_p9 = pneg %p1152_p8 }
  0x16   : > { %p1160_p13 = pnand %p1159_p12, %p1153_p9 }
  0x18   : > { %1163 = shalt.err (!%p1160_p13)
}
  0x19   : > { %s1176_s21 = smov [#allocation3]   ;;  %s1177_s22 = smov 128  }
  0x1a   : > { %s1178_s23 = smov 8   ;;  %153 = sbr.rel (%p1222_p2) target bundleno = 750 (0x2ee), region = 32 }
  0x1b   : > { %1120 = dma.vmem_to_smem (!%p1229_p5), %s127_s18, 256, %s1176_s21, [#allocation4], %s1177_s22, %s1177_s22, %s1178_s23  }
  0x21   : > { %1169 = dma.done.wait (%p1121_p3), [#allocation4], 256  }
  0x22   : > { %1171 = vsyncadd (%p1121_p3), [#allocation4], 4294967040 }
  0x23   : > { %159 = sfence }
  0x24   : > { %p178_p0 = scmp.lt.s32.totalorder %s1000_s15, 1  ;;  %vm190_vm0 = vcmask 523264   ;;  %s2096_s0 = sld [smem:[#allocation43_spill]]  ;;  %vm221_vm1 = vcmask 1042432   ;;  %vm223_vm2 = vcmask 1043456   ;;  %vm225_vm3 = vcmask 1044480  }
  0x25   : > { %s1179_s28 = smov 96   ;;  %s1180_s29 = smov 112   ;;  %vm227_vm4 = vcmask 1045504   ;;  %vm229_vm5 = vcmask 1046528   ;;  %vm231_vm6 = vcmask 130048   ;;  %vm528_vm7 = vcmask 1041408  }
  0x26   : > { %s2208_s15 = smov (!%p178_p0, %s1000_s15), 1  ;;  %s1181_s30 = smov 80   ;;  %v1184_v59 = vmov 0.0   ;;  %vm921_vm8 = vcmask 261120   ;;  %vm923_vm9 = vcmask 392192  }
  0x27   : > { %2095 = sst [smem:[#allocation7_spill]] %s2208_s15  ;;  %s2053_s24 = sshll.u32 %s2208_s15, 4  ;;  %v483_v60 = vrot.slane %v1184_v59, 5 }
  0x28   : > { %s1101_s4 = sld [smem:[#allocation3 + $0x703]]  ;;  %s1182_s6 = smov 1  }
  0x29   : > { %s1052_s5 = sld [smem:[#allocation3 + $0x303]]  ;;  %s1183_s7 = smov 127  }
  0x2a   : > { %s1249_s27 = scalar_lea.vmem %s2096_s0, %s2053_s24  ;;  %s1059_s8 = sld [smem:[#allocation3 + $0x403]] }
  0x2b   : > { %2097 = sst [smem:[#allocation8_spill]] %s1249_s27  ;;  %v188_v0 = vld [vmem:[%s1249_s27] sm:$0xff]  ;;  %v189_v1 = vld [vmem:[%s1249_s27 + $0x8] sm:$0xff]  ;;  %s1011_s9 = sld [smem:[#allocation3 + $0x3]] }
  0x2c   : > { %v191_v2 = vsel %vm190_vm0, %v188_v0, -inf  ;;  %v192_v3 = vsel %vm190_vm0, %v189_v1, -inf  ;;  %v200_v4 = vsel %vm190_vm0, %v188_v0, 0.0  ;;  %v201_v5 = vsel %vm190_vm0, %v189_v1, 0.0  ;;  %s1060_s10 = sld [smem:[#allocation3 + $0x402]]  ;;  %s1061_s12 = sld [smem:[#allocation3 + $0x401]] }
  0x2d   : > { %v193_v6 = vmax.f32 %v191_v2, %v192_v3  ;;  %v202_v7 = vadd.f32 %v201_v5, %v200_v4  ;;  %v535_v2 = vrot.slane %v1184_v59, 6  ;;  %s1012_s11 = sld [smem:[#allocation3 + $0x2]]  ;;  %s1013_s13 = sld [smem:[#allocation3 + $0x1]] }
  0x2e   : > { %v847_v39 = vstv %s1101_s4  ;;  %s1063_s16 = sld [smem:[#allocation3 + $0x404]]  ;;  %s1064_s18 = sld [smem:[#allocation3 + $0x405]] }
  0x2f   : > { %v194_v8 = vrot.slane %v193_v6, 4  ;;  %v203_v9 = vrot.slane %v202_v7, 4  ;;  %v523_v40 = vstv %s1052_s5  ;;  %v849_v43 = vmul.f32 0.0, %v847_v39  ;;  %s1014_s17 = sld [smem:[#allocation3 + $0x4]]  ;;  %s1015_s2 = sld [smem:[#allocation3 + $0x5]] }
  0x30   : > { %v525_v44 = vmul.f32 0.0, %v523_v40  ;;  %s1545_s19 = sld [smem:[#allocation3 + $0x483]]  ;;  %s1565_s4 = sld [smem:[#allocation3 + $0x182]] }
  0x31   : > { %v195_v10 = vmax.f32 %v193_v6, %v194_v8  ;;  %v204_v11 = vadd.f32 %v203_v9, %v202_v7  ;;  %v853_v48 = vrot.slane %v849_v43, 6  ;;  %v576_v6 = vstv %s1059_s8  ;;  %s1547_s20 = sld [smem:[#allocation3 + $0x83]]  ;;  %s1567_s5 = sld [smem:[#allocation3 + $0x82]] }
  0x32   : > { %v530_v50 = vrot.slane %v525_v44, 6  ;;  %v582_v7 = vstv %s1060_s10  ;;  %v250_v8 = vstv %s1011_s9  ;;  %s1549_s21 = sld [smem:[#allocation3 + $0x683]]  ;;  %s1573_s8 = sld [smem:[#allocation3 + $0x502]] }
  0x33   : > { %v196_v12 = vrot.slane %v195_v10, 2  ;;  %v205_v13 = vrot.slane %v204_v11, 2  ;;  %v256_v9 = vstv %s1012_s11  ;;  %s1551_s22 = sld [smem:[#allocation3 + $0x283]]  ;;  %s1575_s9 = sld [smem:[#allocation3 + $0x84]] }
  0x34   : > { %s1553_s23 = sld [smem:[#allocation3 + $0x103]]  ;;  %s1577_s10 = sld [smem:[#allocation3 + $0x484]] }
  0x35   : > { %v197_v14 = vmax.f32 %v195_v10, %v196_v12  ;;  %v206_v15 = vadd.f32 %v205_v13, %v204_v11  ;;  %s1555_s25 = sld [smem:[#allocation3 + $0x503]]  ;;  %s1579_s11 = sld [smem:[#allocation3 + $0x104]] }
  0x36   : > { %s1557_s26 = sld [smem:[#allocation3 + $0x183]]  ;;  %s1596_s24 = sld [smem:[#allocation3 + $0x604]] }
  0x37   : > { %v198_v16 = vrot.slane %v197_v14, 1  ;;  %v207_v17 = vrot.slane %v206_v15, 1  ;;  %2116 = sst [smem:[#allocation27_spill]] %s1567_s5  ;;  %s1598_s0 = sld [smem:[#allocation3 + $0x204]] }
  0x38   : > { %2118 = sst [smem:[#allocation29_spill]] %s1573_s8  ;;  %s1609_s1 = sld [smem:[#allocation3 + $0x684]] }
  0x39   : > { %v199_v18 = vmax.f32 %v197_v14, %v198_v16  ;;  %v208_v19 = vadd.f32 %v207_v17, %v206_v15  ;;  %s1611_s14 = sld [smem:[#allocation3 + $0x284]]  ;;  %s1665_s3 = sld [smem:[#allocation3 + $0x481]] }
  0x3a   : > { %s1667_s27 = sld [smem:[#allocation3 + $0x101]]  ;;  %s1674_s5 = sld [smem:[#allocation3 + $0x85]] }
  0x3b   : > { %215 = vrot.lane.b32.xlu1 %v199_v18, %s1179_s28  ;;  %212 = vrot.lane.b32.xlu0 %v199_v18, %s1180_s29  ;;  %v210_v20 = vmul.f32 0.0625, %v208_v19  ;;  %v222_v23 = vsel %vm221_vm1, 0.0, %v199_v18  ;;  %2119 = sst [smem:[#allocation30_spill]] %s1579_s11  ;;  %s1672_s15 = sld [smem:[#allocation3 + $0x501]] }
  0x3c   : > { %s1682_s8 = sld [smem:[#allocation3 + $0x6]]  ;;  %s1695_s11 = sld [smem:[#allocation3 + $0x485]] }
  0x3d   : > { %v243_v24 = vsel %vm221_vm1, 0.0, %v210_v20 }
  0x3e   : > { %2124 = sst [smem:[#allocation35_spill]] %s1609_s1  ;;  %s1833_s1 = sld [smem:[#allocation3 + $0x180]] }
  0x3f   : > { %237 = vrot.lane.b32.xlu1 %v210_v20, %s1179_s28  ;;  %234 = vrot.lane.b32.xlu0 %v210_v20, %s1180_s29  ;;  %s1559_s28 = sld [smem:[#allocation3 + $0x583]]  ;;  %2125 = sst [smem:[#allocation36_spill]] %s1611_s14 }
  0x40   : > { %s1561_s29 = sld [smem:[#allocation3 + $0x603]]  ;;  %s1805_s14 = sld [smem:[#allocation3 + $0x285]] }
  0x43   : > { %240 = vrot.lane.b32.xlu1 %v210_v20, %s1181_s30  ;;  %218 = vrot.lane.b32.xlu0 %v199_v18, %s1181_s30  ;;  %s1563_s30 = sld [smem:[#allocation3 + $0x203]] }
  0xad   : > { %v216_v21 = vpop.permute.xlu1 %215  ;;  %v213_v22 = vpop.permute.xlu0 %212 }
  0xae   : > { %v224_v27 = vsel %vm223_vm2, %v222_v23, %v213_v22 }
  0xaf   : > { %v226_v32 = vsel %vm225_vm3, %v224_v27, %v216_v21 }
  0xb1   : > { %v238_v25 = vpop.permute.xlu1 %237  ;;  %v235_v26 = vpop.permute.xlu0 %234 }
  0xb2   : > { %v244_v28 = vsel %vm223_vm2, %v243_v24, %v235_v26 }
  0xb3   : > { %v245_v30 = vsel %vm225_vm3, %v244_v28, %v238_v25 }
  0xb5   : > { %v241_v29 = vpop.permute.xlu1 %240  ;;  %v219_v31 = vpop.permute.xlu0 %218 }
  0xb6   : > { %v246_v33 = vsel %vm227_vm4, %v245_v30, %v241_v29  ;;  %v228_v34 = vsel %vm227_vm4, %v226_v32, %v219_v31 }
  0xb7   : > { %v247_v35 = vsel %vm229_vm5, %v246_v33, 0.0  ;;  %v230_v36 = vsel %vm229_vm5, %v228_v34, 0.0 }
  0xb8   : > { %v1260_v37 = vsel %vm231_vm6, %v247_v35, 0.0  ;;  %v1263_v38 = vsel %vm231_vm6, %v230_v36, 0.0 }
  0xb9   : > { %579 = vrot.lane.b32.xlu1 %v1260_v37, %s1182_s6  ;;  %253 = vrot.lane.b32.xlu0 %v1263_v38, %s1182_s6  ;;  %v387_v41 = vrot.slane %v1263_v38, 3  ;;  %v297_v42 = vrot.slane %v1263_v38, 1  ;;  %v623_v45 = vrot.slane %v1260_v37, 1  ;;  %v342_v46 = vrot.slane %v1263_v38, 2 }
  0xba   : > { %v848_v47 = vmul.f32 %v847_v39, %v1260_v37  ;;  %v524_v49 = vmul.f32 %v523_v40, %v1263_v38  ;;  %v668_v53 = vrot.slane %v1260_v37, 2  ;;  %v713_v56 = vrot.slane %v1260_v37, 3 }
  0xbb   : > { %v758_v57 = vrot.slane %v1260_v37, 4  ;;  %v432_v58 = vrot.slane %v1263_v38, 4  ;;  %v807_v61 = vrot.slane %v1260_v37, 5  ;;  %v482_v62 = vrot.slane %v1263_v38, 5 }
  0xbc   : > { %v852_v51 = vrot.slane %v848_v47, 6  ;;  %v529_v52 = vrot.slane %v524_v49, 6  ;;  %v534_v1 = vrot.slane %v1263_v38, 6  ;;  %v857_v4 = vrot.slane %v1260_v37, 6 }
  0xbd   : > { %597 = vrot.lane.b32.xlu1 %v1260_v37, %s1183_s7  ;;  %271 = vrot.lane.b32.xlu0 %v1263_v38, %s1183_s7  ;;  %v808_v63 = vsel %vm221_vm1, %v807_v61, %v483_v60  ;;  %v484_v0 = vsel %vm221_vm1, %v482_v62, %v483_v60  ;;  %v577_v11 = vmul.f32 %v576_v6, %v1260_v37  ;;  %v262_v47 = vstv %s1013_s13  ;;  %s1583_s13 = sld [smem:[#allocation3 + $0x184]] }
  0xbe   : > { %v1285_v54 = vsel %vm528_vm7, %v852_v51, %v853_v48  ;;  %v1288_v55 = vsel %vm528_vm7, %v529_v52, %v530_v50  ;;  %v536_v3 = vsel %vm528_vm7, %v534_v1, %v535_v2  ;;  %v858_v5 = vsel %vm528_vm7, %v857_v4, %v535_v2 }
  0xbf   : > { %2098 = vst [vmem:[#allocation9_spill] sm:$0xff] %v1285_v54  ;;  %2099 = vst [vmem:[#allocation10_spill] sm:$0xff] %v1288_v55  ;;  %v251_v14 = vmul.f32 %v250_v8, %v1263_v38  ;;  %v600_v50 = vstv %s1063_s16  ;;  %s1587_s16 = sld [smem:[#allocation3 + $0x584]]  ;;  %v707_v54 = vstv %s1559_s28  ;;  %v752_v55 = vstv %s1561_s29  ;;  %s1644_s28 = sld [smem:[#allocation3]] }
  0xc0   : > { %s1652_s29 = sld [smem:[#allocation3 + $0x181]] }
  0xc1   : > { %389 = vrot.lane.b32.xlu1 %v387_v41, %s1182_s6  ;;  %299 = vrot.lane.b32.xlu0 %v297_v42, %s1182_s6 }
  0xc5   : > { %625 = vrot.lane.b32.xlu1 %v623_v45, %s1182_s6  ;;  %344 = vrot.lane.b32.xlu0 %v342_v46, %s1182_s6 }
  0xc9   : > { %670 = vrot.lane.b32.xlu1 %v668_v53, %s1182_s6  ;;  %317 = vrot.lane.b32.xlu0 %v297_v42, %s1183_s7 }
  0xcd   : > { %643 = vrot.lane.b32.xlu1 %v623_v45, %s1183_s7  ;;  %362 = vrot.lane.b32.xlu0 %v342_v46, %s1183_s7  ;;  %v588_v46 = vstv %s1061_s12  ;;  %s1581_s12 = sld [smem:[#allocation3 + $0x582]] }
  0xd1   : > { %715 = vrot.lane.b32.xlu1 %v713_v56, %s1182_s6  ;;  %407 = vrot.lane.b32.xlu0 %v387_v41, %s1183_s7 }
  0xd3   : > { %2120 = sst [smem:[#allocation31_spill]] %s1581_s12  ;;  %s1697_s12 = sld [smem:[#allocation3 + $0x105]] }
  0xd5   : > { %733 = vrot.lane.b32.xlu1 %v713_v56, %s1183_s7  ;;  %688 = vrot.lane.b32.xlu0 %v668_v53, %s1183_s7  ;;  %v274_v53 = vstv %s1014_s17  ;;  %v606_v56 = vstv %s1064_s18  ;;  %s1589_s17 = sld [smem:[#allocation3 + $0x504]]  ;;  %s1591_s18 = sld [smem:[#allocation3 + $0x602]] }
  0xd9   : > { %760 = vrot.lane.b32.xlu1 %v758_v57, %s1182_s6  ;;  %434 = vrot.lane.b32.xlu0 %v432_v58, %s1182_s6 }
  0xdb   : > { %2121 = sst [smem:[#allocation32_spill]] %s1589_s17 }
  0xdc   : > { %s1710_s17 = sld [smem:[#allocation3 + $0x80]] }
  0xdd   : > { %778 = vrot.lane.b32.xlu1 %v758_v57, %s1183_s7  ;;  %452 = vrot.lane.b32.xlu0 %v432_v58, %s1183_s7  ;;  %v280_v57 = vstv %s1015_s2  ;;  %s1593_s2 = sld [smem:[#allocation3 + $0x202]] }
  0xe1   : > { %810 = vrot.lane.b32.xlu1 %v808_v63, %s1182_s6  ;;  %486 = vrot.lane.b32.xlu0 %v484_v0, %s1182_s6 }
  0xe5   : > { %828 = vrot.lane.b32.xlu1 %v808_v63, %s1183_s7  ;;  %504 = vrot.lane.b32.xlu0 %v484_v0, %s1183_s7 }
  0xe9   : > { %556 = vrot.lane.b32.xlu1 %v536_v3, %s1183_s7  ;;  %538 = vrot.lane.b32.xlu0 %v536_v3, %s1182_s6 }
  0xed   : > { %878 = vrot.lane.b32.xlu1 %v858_v5, %s1183_s7  ;;  %860 = vrot.lane.b32.xlu0 %v858_v5, %s1182_s6 }
 0x12b   : > { %v580_v10 = vpop.permute.xlu1 %579  ;;  %v254_v12 = vpop.permute.xlu0 %253 }
 0x12c   : > { %v583_v13 = vmul.f32 %v582_v7, %v580_v10  ;;  %v257_v15 = vmul.f32 %v256_v9, %v254_v12  ;;  %585 = vrot.lane.b32.xlu1 %v580_v10, %s1182_s6  ;;  %259 = vrot.lane.b32.xlu0 %v254_v12, %s1182_s6 }
 0x12e   : > { %v1325_v16 = vadd.f32 %v583_v13, %v577_v11  ;;  %v1327_v17 = vadd.f32 %v257_v15, %v251_v14 }
 0x12f   : > { %v1329_v18 = vpop.permute.xlu1 %597  ;;  %v1331_v19 = vpop.permute.xlu0 %271 }
 0x130   : > { %603 = vrot.lane.b32.xlu1 %v1329_v18, %s1183_s7  ;;  %277 = vrot.lane.b32.xlu0 %v1331_v19, %s1183_s7  ;;  %v601_v60 = vmul.f32 %v600_v50, %v1329_v18  ;;  %v275_v63 = vmul.f32 %v274_v53, %v1331_v19 }
 0x133   : > { %v1337_v20 = vpop.permute.xlu1 %389  ;;  %v1339_v21 = vpop.permute.xlu0 %299 }
 0x134   : > { %395 = vrot.lane.b32.xlu1 %v1337_v20, %s1182_s6  ;;  %305 = vrot.lane.b32.xlu0 %v1339_v21, %s1182_s6 }
 0x137   : > { %v1345_v22 = vpop.permute.xlu1 %625  ;;  %v1347_v23 = vpop.permute.xlu0 %344 }
 0x138   : > { %631 = vrot.lane.b32.xlu1 %v1345_v22, %s1182_s6  ;;  %350 = vrot.lane.b32.xlu0 %v1347_v23, %s1182_s6 }
 0x13b   : > { %v1353_v24 = vpop.permute.xlu1 %670  ;;  %v1355_v25 = vpop.permute.xlu0 %317 }
 0x13c   : > { %676 = vrot.lane.b32.xlu1 %v1353_v24, %s1182_s6  ;;  %323 = vrot.lane.b32.xlu0 %v1355_v25, %s1183_s7 }
 0x13f   : > { %v1361_v26 = vpop.permute.xlu1 %643  ;;  %v1363_v27 = vpop.permute.xlu0 %362 }
 0x140   : > { %649 = vrot.lane.b32.xlu1 %v1361_v26, %s1183_s7  ;;  %368 = vrot.lane.b32.xlu0 %v1363_v27, %s1183_s7 }
 0x143   : > { %v1369_v28 = vpop.permute.xlu1 %715  ;;  %v1371_v29 = vpop.permute.xlu0 %407 }
 0x144   : > { %721 = vrot.lane.b32.xlu1 %v1369_v28, %s1182_s6  ;;  %413 = vrot.lane.b32.xlu0 %v1371_v29, %s1183_s7 }
 0x147   : > { %v1377_v30 = vpop.permute.xlu1 %733  ;;  %v1379_v31 = vpop.permute.xlu0 %688 }
 0x148   : > { %739 = vrot.lane.b32.xlu1 %v1377_v30, %s1183_s7  ;;  %694 = vrot.lane.b32.xlu0 %v1379_v31, %s1183_s7 }
 0x14b   : > { %v1385_v32 = vpop.permute.xlu1 %760  ;;  %v1387_v33 = vpop.permute.xlu0 %434 }
 0x14c   : > { %766 = vrot.lane.b32.xlu1 %v1385_v32, %s1182_s6  ;;  %440 = vrot.lane.b32.xlu0 %v1387_v33, %s1182_s6 }
 0x14f   : > { %v1393_v34 = vpop.permute.xlu1 %778  ;;  %v1395_v35 = vpop.permute.xlu0 %452 }
 0x150   : > { %784 = vrot.lane.b32.xlu1 %v1393_v34, %s1183_s7  ;;  %458 = vrot.lane.b32.xlu0 %v1395_v35, %s1183_s7 }
 0x153   : > { %v1401_v36 = vpop.permute.xlu1 %810  ;;  %v1403_v39 = vpop.permute.xlu0 %486 }
 0x154   : > { %816 = vrot.lane.b32.xlu1 %v1401_v36, %s1182_s6  ;;  %492 = vrot.lane.b32.xlu0 %v1403_v39, %s1182_s6 }
 0x157   : > { %v1409_v40 = vpop.permute.xlu1 %828  ;;  %v1411_v41 = vpop.permute.xlu0 %504 }
 0x158   : > { %2100 = vst [vmem:[#allocation11_spill] sm:$0xff] %v1409_v40  ;;  %2101 = vst [vmem:[#allocation12_spill] sm:$0xff] %v1411_v41  ;;  %834 = vrot.lane.b32.xlu1 %v1409_v40, %s1183_s7  ;;  %510 = vrot.lane.b32.xlu0 %v1411_v41, %s1183_s7 }
 0x15b   : > { %v1417_v42 = vpop.permute.xlu1 %556  ;;  %v1419_v43 = vpop.permute.xlu0 %538 }
 0x15c   : > { %2102 = vst [vmem:[#allocation13_spill] sm:$0xff] %v1417_v42  ;;  %2103 = vst [vmem:[#allocation14_spill] sm:$0xff] %v1419_v43  ;;  %562 = vrot.lane.b32.xlu1 %v1417_v42, %s1183_s7  ;;  %544 = vrot.lane.b32.xlu0 %v1419_v43, %s1182_s6 }
 0x15f   : > { %v1425_v44 = vpop.permute.xlu1 %878  ;;  %v1427_v45 = vpop.permute.xlu0 %860 }
 0x160   : > { %2104 = vst [vmem:[#allocation15_spill] sm:$0xff] %v1425_v44  ;;  %2105 = vst [vmem:[#allocation16_spill] sm:$0xff] %v1427_v45  ;;  %884 = vrot.lane.b32.xlu1 %v1425_v44, %s1183_s7  ;;  %866 = vrot.lane.b32.xlu0 %v1427_v45, %s1182_s6  ;;  %v426_v45 = vstv %s1563_s30  ;;  %s1654_s30 = sld [smem:[#allocation3 + $0x81]] }
 0x166   : > { %v308_v43 = vstv %s1654_s30  ;;  %s1742_s30 = sld [smem:[#allocation3 + $0x505]] }
 0x19e   : > { %v586_v48 = vpop.permute.xlu1 %585  ;;  %v260_v49 = vpop.permute.xlu0 %259 }
 0x19f   : > { %v589_v51 = vmul.f32 %v588_v46, %v586_v48  ;;  %v263_v52 = vmul.f32 %v262_v47, %v260_v49  ;;  %591 = vrot.lane.b32.xlu1 %v586_v48, %s1182_s6  ;;  %265 = vrot.lane.b32.xlu0 %v260_v49, %s1182_s6 }
 0x1a1   : > { %v1436_v58 = vadd.f32 %v589_v51, %v1325_v16  ;;  %v1439_v59 = vadd.f32 %v263_v52, %v1327_v17 }
 0x1a2   : > { %v604_v61 = vpop.permute.xlu1 %603  ;;  %v278_v62 = vpop.permute.xlu0 %277 }
 0x1a3   : > { %v607_v0 = vmul.f32 %v606_v56, %v604_v61  ;;  %v281_v1 = vmul.f32 %v280_v57, %v278_v62  ;;  %609 = vrot.lane.b32.xlu1 %v604_v61, %s1183_s7  ;;  %283 = vrot.lane.b32.xlu0 %v278_v62, %s1183_s7  ;;  %v797_v56 = vstv %s1549_s21  ;;  %v471_v57 = vstv %s1551_s22  ;;  %s1603_s21 = sld [smem:[#allocation3 + $0x682]] }
 0x1a4   : > { %v290_v61 = vstv %s1547_s20  ;;  %v799_v62 = vmul.f32 0.0, %v797_v56  ;;  %s1605_s22 = sld [smem:[#allocation3 + $0x282]] }
 0x1a5   : > { %v1445_v2 = vadd.f32 %v607_v0, %v601_v60  ;;  %v1447_v3 = vadd.f32 %v281_v1, %v275_v63  ;;  %v616_v60 = vstv %s1545_s19  ;;  %v1601_v63 = vmul.f32 0.0, %v471_v57  ;;  %s1619_s19 = sld [smem:[#allocation3 + $0x304]]  ;;  %s1621_s20 = sld [smem:[#allocation3 + $0x302]] }
 0x1a6   : > { %v1449_v4 = vpop.permute.xlu1 %395  ;;  %v1451_v5 = vpop.permute.xlu0 %305  ;;  %v336_v0 = vstv %s1553_s23  ;;  %v662_v1 = vstv %s1555_s25  ;;  %s1629_s23 = sld [smem:[#allocation3 + $0x704]]  ;;  %s1631_s25 = sld [smem:[#allocation3 + $0x702]]  ;;  %v803_v44 = vrot.slane %v799_v62, 5  ;;  %v268_v62 = vstv %s1644_s28 }
 0x1a7   : > { %401 = vrot.lane.b32.xlu1 %v1449_v4, %s1182_s6  ;;  %311 = vrot.lane.b32.xlu0 %v1451_v5, %s1182_s6  ;;  %v309_v40 = vmul.f32 %v308_v43, %v1451_v5 }
 0x1a9   : > { %2122 = sst [smem:[#allocation33_spill]] %s1603_s21  ;;  %s2132_s21 = sld [smem:[#allocation27_spill]] }
 0x1aa   : > { %v1457_v6 = vpop.permute.xlu1 %631  ;;  %v1459_v7 = vpop.permute.xlu0 %350  ;;  %2123 = sst [smem:[#allocation34_spill]] %s1605_s22  ;;  %s1720_s22 = sld [smem:[#allocation3 + $0x581]] }
 0x1ab   : > { %637 = vrot.lane.b32.xlu1 %v1457_v6, %s1182_s6  ;;  %356 = vrot.lane.b32.xlu0 %v1459_v7, %s1182_s6  ;;  %2126 = sst [smem:[#allocation37_spill]] %s1619_s19  ;;  %s1801_s19 = sld [smem:[#allocation3 + $0x486]] }
 0x1ac   : > { %2127 = sst [smem:[#allocation38_spill]] %s1621_s20  ;;  %s1799_s20 = sld [smem:[#allocation3 + $0x500]] }
 0x1ad   : > { %2128 = sst [smem:[#allocation39_spill]] %s1629_s23 }
 0x1ae   : > { %v1465_v8 = vpop.permute.xlu1 %676  ;;  %v1467_v9 = vpop.permute.xlu0 %323  ;;  %2129 = sst [smem:[#allocation40_spill]] %s1631_s25  ;;  %s2145_s23 = sld [smem:[#allocation31_spill]] }
 0x1af   : > { %682 = vrot.lane.b32.xlu1 %v1465_v8, %s1182_s6  ;;  %329 = vrot.lane.b32.xlu0 %v1467_v9, %s1183_s7  ;;  %s1730_s25 = sld [smem:[#allocation3 + $0x480]] }
 0x1b0   : > { %v724_v43 = vstv %s1720_s22  ;;  %s1928_s22 = sld [smem:[#allocation3 + $0x701]] }
 0x1b2   : > { %v1473_v10 = vpop.permute.xlu1 %649  ;;  %v1475_v11 = vpop.permute.xlu0 %368 }
 0x1b3   : > { %655 = vrot.lane.b32.xlu1 %v1473_v10, %s1183_s7  ;;  %374 = vrot.lane.b32.xlu0 %v1475_v11, %s1183_s7 }
 0x1b6   : > { %v1481_v12 = vpop.permute.xlu1 %721  ;;  %v1483_v13 = vpop.permute.xlu0 %413 }
 0x1b7   : > { %727 = vrot.lane.b32.xlu1 %v1481_v12, %s1182_s6  ;;  %419 = vrot.lane.b32.xlu0 %v1483_v13, %s1183_s7 }
 0x1ba   : > { %v1489_v14 = vpop.permute.xlu1 %739  ;;  %v1491_v15 = vpop.permute.xlu0 %694 }
 0x1bb   : > { %745 = vrot.lane.b32.xlu1 %v1489_v14, %s1183_s7  ;;  %700 = vrot.lane.b32.xlu0 %v1491_v15, %s1183_s7 }
 0x1be   : > { %v1497_v16 = vpop.permute.xlu1 %766  ;;  %v1499_v17 = vpop.permute.xlu0 %440 }
 0x1bf   : > { %2106 = vst [vmem:[#allocation17_spill] sm:$0xff] %v1497_v16  ;;  %772 = vrot.lane.b32.xlu1 %v1497_v16, %s1182_s6  ;;  %446 = vrot.lane.b32.xlu0 %v1499_v17, %s1182_s6  ;;  %v314_v16 = vstv %s1710_s17  ;;  %s2143_s17 = sld [smem:[#allocation30_spill]] }
 0x1c2   : > { %v1505_v18 = vpop.permute.xlu1 %784  ;;  %v1507_v19 = vpop.permute.xlu0 %458 }
 0x1c3   : > { %2107 = vst [vmem:[#allocation18_spill] sm:$0xff] %v1505_v18  ;;  %790 = vrot.lane.b32.xlu1 %v1505_v18, %s1183_s7  ;;  %464 = vrot.lane.b32.xlu0 %v1507_v19, %s1183_s7  ;;  %v2135_v18 = vstv %s2132_s21  ;;  %s2142_s21 = sld [smem:[#allocation29_spill]] }
 0x1c4   : > { %v303_v42 = vmul.f32 %v2135_v18, %v1339_v21  ;;  %v2141_v21 = vstv %s1577_s10  ;;  %s1788_s10 = sld [smem:[#allocation3 + $0x281]] }
 0x1c5   : > { %v647_v41 = vmul.f32 %v2141_v21, %v1361_v26 }
 0x1c6   : > { %v1513_v46 = vpop.permute.xlu1 %816  ;;  %v1515_v47 = vpop.permute.xlu0 %492 }
 0x1c7   : > { %2108 = vst [vmem:[#allocation19_spill] sm:$0xff] %v1513_v46  ;;  %2109 = vst [vmem:[#allocation20_spill] sm:$0xff] %v1515_v47  ;;  %822 = vrot.lane.b32.xlu1 %v1513_v46, %s1182_s6  ;;  %498 = vrot.lane.b32.xlu0 %v1515_v47, %s1182_s6 }
 0x1ca   : > { %v1521_v48 = vpop.permute.xlu1 %834  ;;  %v1523_v49 = vpop.permute.xlu0 %510 }
 0x1cb   : > { %2110 = vst [vmem:[#allocation21_spill] sm:$0xff] %v1521_v48  ;;  %2111 = vst [vmem:[#allocation22_spill] sm:$0xff] %v1523_v49  ;;  %840 = vrot.lane.b32.xlu1 %v1521_v48, %s1183_s7  ;;  %516 = vrot.lane.b32.xlu0 %v1523_v49, %s1183_s7  ;;  %v472_v48 = vmul.f32 %v471_v57, %v1263_v38  ;;  %v1661_v49 = vmul.f32 %v426_v45, %v1263_v38 }
 0x1cd   : > { %v476_v47 = vrot.slane %v472_v48, 5 }
 0x1ce   : > { %v1529_v50 = vpop.permute.xlu1 %562  ;;  %v1531_v51 = vpop.permute.xlu0 %544 }
 0x1cf   : > { %2112 = vst [vmem:[#allocation23_spill] sm:$0xff] %v1529_v50  ;;  %2113 = vst [vmem:[#allocation24_spill] sm:$0xff] %v1531_v51  ;;  %568 = vrot.lane.b32.xlu1 %v1529_v50, %s1183_s7  ;;  %550 = vrot.lane.b32.xlu0 %v1531_v51, %s1182_s6  ;;  %v798_v50 = vmul.f32 %v797_v56, %v1260_v37  ;;  %v1624_v51 = vmul.f32 %v290_v61, %v1263_v38  ;;  %v477_v61 = vrot.slane %v1601_v63, 5 }
 0x1d0   : > { %v1637_v56 = vmul.f32 %v662_v1, %v1260_v37  ;;  %v1658_v63 = vmul.f32 %v752_v55, %v1260_v37 }
 0x1d1   : > { %v802_v1 = vrot.slane %v798_v50, 5  ;;  %v286_v50 = vstv %s1682_s8  ;;  %s1776_s8 = sld [smem:[#allocation3 + $0x86]] }
 0x1d2   : > { %v1537_v52 = vpop.permute.xlu1 %884  ;;  %v1539_v53 = vpop.permute.xlu0 %866 }
 0x1d3   : > { %2114 = vst [vmem:[#allocation25_spill] sm:$0xff] %v1537_v52  ;;  %2115 = vst [vmem:[#allocation26_spill] sm:$0xff] %v1539_v53  ;;  %890 = vrot.lane.b32.xlu1 %v1537_v52, %s1183_s7  ;;  %872 = vrot.lane.b32.xlu0 %v1539_v53, %s1182_s6  ;;  %s1569_s6 = sld [smem:[#allocation3 + $0x482]]  ;;  %v1614_v53 = vmul.f32 %v616_v60, %v1260_v37  ;;  %v381_v52 = vstv %s1557_s26  ;;  %v1634_v60 = vmul.f32 %v336_v0, %v1263_v38  ;;  %s1642_s26 = sld [smem:[#allocation3 + $0x400]] }
 0x1d4   : > { %s1571_s7 = sld [smem:[#allocation3 + $0x102]]  ;;  %v1647_v57 = vmul.f32 %v381_v52, %v1263_v38  ;;  %v1650_v0 = vmul.f32 %v707_v54, %v1260_v37  ;;  %v1689_v37 = vsel %vm221_vm1, %v802_v1, %v803_v44  ;;  %v1700_v38 = vsel %vm221_vm1, %v476_v47, %v477_v61 }
 0x1d5   : > { %2130 = vst [vmem:[#allocation41_spill] sm:$0xff] %v1689_v37  ;;  %2131 = vst [vmem:[#allocation42_spill] sm:$0xff] %v1700_v38  ;;  %v634_v54 = vstv %s1665_s3  ;;  %v326_v1 = vstv %s1674_s5  ;;  %v2134_v37 = vstv %s1565_s4  ;;  %s1740_s3 = sld [smem:[#allocation3 + $0x585]]  ;;  %s1756_s4 = sld [smem:[#allocation3 + $0x601]] }
 0x1d6   : > { %v1735_v38 = vmul.f32 %v2134_v37, %v1337_v20  ;;  %v652_v37 = vstv %s1695_s11  ;;  %s1758_s5 = sld [smem:[#allocation3 + $0x201]]  ;;  %v327_v26 = vmul.f32 %v326_v1, %v1467_v9  ;;  %v2144_v9 = vstv %s2142_s21  ;;  %s1812_s21 = sld [smem:[#allocation3 + $0x106]] }
 0x1d7   : > { %s1778_s11 = sld [smem:[#allocation3 + $0x681]]  ;;  %v674_v1 = vmul.f32 %v2144_v9, %v1353_v24  ;;  %v2146_v24 = vstv %s2143_s17  ;;  %s1831_s17 = sld [smem:[#allocation3 + $0x305]] }
 0x1d9   : > { %v594_v48 = vstv %s1642_s26  ;;  %s1722_s26 = sld [smem:[#allocation3 + $0x185]] }
 0x1da   : > { %2117 = sst [smem:[#allocation28_spill]] %s1571_s7  ;;  %s1680_s7 = sld [smem:[#allocation3 + $0x406]] }
 0x1db   : > { %s2133_s28 = sld [smem:[#allocation28_spill]]  ;;  %v769_v21 = vstv %s1756_s4  ;;  %s2178_s4 = sld [smem:[#allocation38_spill]] }
 0x1df   : > { %v416_v5 = vstv %s1722_s26  ;;  %s2170_s26 = sld [smem:[#allocation36_spill]] }
 0x1e0   : > { %v612_v52 = vstv %s1680_s7  ;;  %s1760_s7 = sld [smem:[#allocation3 + $0x605]] }
 0x1e1   : > { %v2137_v44 = vstv %s2133_s28  ;;  %s1793_s28 = sld [smem:[#allocation3 + $0x685]] }
 0x1e2   : > { %v1752_v20 = vmul.f32 %v2137_v44, %v1347_v23  ;;  %v2140_v44 = vstv %s1575_s9  ;;  %s1782_s9 = sld [smem:[#allocation3 + $0x100]] }
 0x211   : > { %v592_v55 = vpop.permute.xlu1 %591  ;;  %v266_v45 = vpop.permute.xlu0 %265 }
 0x212   : > { %v595_v47 = vmul.f32 %v594_v48, %v592_v55  ;;  %v269_v61 = vmul.f32 %v268_v62, %v266_v45  ;;  %v2136_v45 = vstv %s1569_s6  ;;  %s1773_s6 = sld [smem:[#allocation3 + $0x205]] }
 0x213   : > { %v629_v48 = vmul.f32 %v2136_v45, %v1345_v22  ;;  %v2139_v22 = vrot.slane %v1624_v51, 1  ;;  %v321_v45 = vmul.f32 %v2140_v44, %v1355_v25  ;;  %v635_v25 = vmul.f32 %v634_v54, %v1457_v6 }
 0x214   : > { %v596_v62 = vadd.f32 %v595_v47, %v1436_v58  ;;  %v270_v55 = vadd.f32 %v269_v61, %v1439_v59  ;;  %v2138_v58 = vrot.slane %v1614_v53, 1  ;;  %v787_v44 = vstv %s1760_s7  ;;  %s2187_s7 = sld [smem:[#allocation39_spill]] }
 0x215   : > { %v610_v18 = vpop.permute.xlu1 %609  ;;  %v284_v46 = vpop.permute.xlu0 %283 }
 0x216   : > { %v621_v59 = vadd.f32 %v2138_v58, %v596_v62  ;;  %v295_v47 = vadd.f32 %v2139_v22, %v270_v55  ;;  %v613_v61 = vmul.f32 %v612_v52, %v610_v18  ;;  %v287_v23 = vmul.f32 %v286_v50, %v284_v46 }
 0x217   : > { %v443_v18 = vstv %s1758_s5  ;;  %s2173_s5 = sld [smem:[#allocation37_spill]] }
 0x218   : > { %v614_v51 = vadd.f32 %v613_v61, %v1445_v2  ;;  %v288_v46 = vadd.f32 %v287_v23, %v1447_v3  ;;  %v304_v53 = vadd.f32 %v303_v42, %v295_v47  ;;  %v630_v52 = vadd.f32 %v629_v48, %v621_v59 }
 0x219   : > { %v1790_v50 = vpop.permute.xlu1 %401  ;;  %v312_v2 = vpop.permute.xlu0 %311  ;;  %v653_v3 = vmul.f32 %v652_v37, %v1473_v10  ;;  %v640_v48 = vstv %s1730_s25  ;;  %v742_v10 = vstv %s1740_s3  ;;  %v697_v37 = vstv %s1742_s30  ;;  %s2147_s25 = sld [smem:[#allocation32_spill]]  ;;  %s1962_s30 = sld [smem:[#allocation3 + $0x286]] }
 0x21a   : > { %v648_v42 = vadd.f32 %v647_v41, %v614_v51  ;;  %v322_v6 = vadd.f32 %v321_v45, %v288_v46  ;;  %v310_v54 = vadd.f32 %v309_v40, %v304_v53  ;;  %v315_v62 = vmul.f32 %v314_v16, %v312_v2  ;;  %s1960_s3 = sld [smem:[#allocation3 + $0x680]] }
 0x21b   : > { %v636_v55 = vadd.f32 %v635_v25, %v630_v52  ;;  %v366_v16 = vmul.f32 %v2146_v24, %v1363_v27  ;;  %v2148_v47 = vstv %s2145_s23  ;;  %v2149_v23 = vstv %s1583_s13  ;;  %s1853_s13 = sld [smem:[#allocation3 + $0x580]] }
 0x21c   : > { %v328_v40 = vadd.f32 %v327_v26, %v322_v6  ;;  %v654_v41 = vadd.f32 %v653_v3, %v648_v42  ;;  %v316_v58 = vadd.f32 %v315_v62, %v310_v54  ;;  %v1817_v61 = vmul.f32 %v2148_v47, %v1369_v28  ;;  %s1940_s23 = sld [smem:[#allocation3 + $0x280]] }
 0x21d   : > { %v638_v59 = vpop.permute.xlu1 %637  ;;  %v357_v22 = vpop.permute.xlu0 %356  ;;  %v1822_v27 = vmul.f32 %v2149_v23, %v1371_v29  ;;  %v2150_v51 = vstv %s1587_s16  ;;  %v461_v53 = vstv %s1773_s6  ;;  %v2151_v28 = vrot.slane %v1634_v60, 2  ;;  %s1855_s16 = sld [smem:[#allocation3 + $0x186]] }
 0x21e   : > { %v641_v45 = vmul.f32 %v640_v48, %v638_v59  ;;  %v1828_v46 = vmul.f32 %v2150_v51, %v1377_v30  ;;  %v332_v25 = vstv %s1776_s8  ;;  %v819_v2 = vstv %s1778_s11  ;;  %s1972_s6 = sld [smem:[#allocation3 + $0x686]]  ;;  %s898_s11 = sld [smem:[#allocation2]] }
 0x21f   : > { %v341_v52 = vadd.f32 %v2151_v28, %v316_v58  ;;  %v2152_v29 = vstv %s2147_s25  ;;  %v359_v42 = vstv %s1782_s9  ;;  %v2153_v30 = vstv %s1591_s18  ;;  %s1881_s18 = sld [smem:[#allocation3 + $0x301]]  ;;  %s1982_s8 = sld [smem:[#allocation3 + $0x306]] }
 0x220   : > { %v692_v26 = vmul.f32 %v2152_v29, %v1379_v31  ;;  %v642_v3 = vadd.f32 %v641_v45, %v636_v55  ;;  %v1846_v6 = vmul.f32 %v2153_v30, %v1385_v32  ;;  %v2154_v54 = vstv %s1667_s27  ;;  %s1867_s27 = sld [smem:[#allocation3 + $0x506]]  ;;  %s1984_s9 = sld [smem:[#allocation3 + $0x300]] }
 0x221   : > { %v354_v9 = vmul.f32 %v2154_v54, %v1459_v7  ;;  %v495_v60 = vstv %s1788_s10  ;;  %v349_v62 = vadd.f32 %v1752_v20, %v341_v52  ;;  %v683_v48 = vpop.permute.xlu1 %682  ;;  %v330_v24 = vpop.permute.xlu0 %329  ;;  %v2155_v31 = vstv %s1593_s2  ;;  %s1915_s2 = sld [smem:[#allocation3 + $0x206]]  ;;  %s1185_s10 = smov 32  }
 0x222   : > { %v1860_v32 = vmul.f32 %v2155_v31, %v1387_v33  ;;  %v837_v55 = vstv %s1793_s28  ;;  %v2156_v7 = vrot.slane %v1637_v56, 2  ;;  %v333_v59 = vmul.f32 %v332_v25, %v330_v24  ;;  %s1997_s25 = sld [smem:[#allocation3 + $0x706]]  ;;  %s1186_s28 = smov 16  }
 0x223   : > { %v355_v47 = vadd.f32 %v354_v9, %v349_v62  ;;  %v360_v20 = vmul.f32 %v359_v42, %v357_v22  ;;  %v685_v23 = vstv %s1799_s20  ;;  %v658_v45 = vstv %s1801_s19  ;;  %s2165_s19 = sld [smem:[#allocation34_spill]]  ;;  %s1937_s20 = sld [smem:[#allocation3 + $0x606]] }
 0x224   : > { %v667_v58 = vadd.f32 %v2156_v7, %v642_v3  ;;  %v2157_v51 = vstv %s1672_s15  ;;  %v513_v52 = vstv %s1805_s14  ;;  %v334_v29 = vadd.f32 %v333_v59, %v328_v40  ;;  %s1888_s15 = sld [smem:[#allocation3 + $0x705]]  ;;  %s2189_s14 = sld [smem:[#allocation40_spill]] }
 0x225   : > { %v680_v28 = vmul.f32 %v2157_v51, %v1465_v8  ;;  %v2158_v56 = vstv %s1596_s24  ;;  %v2159_v25 = vstv %s1697_s12  ;;  %v361_v42 = vadd.f32 %v360_v20, %v355_v47  ;;  %v656_v30 = vpop.permute.xlu1 %655  ;;  %v375_v9 = vpop.permute.xlu0 %374  ;;  %s1893_s24 = sld [smem:[#allocation3 + $0x586]]  ;;  %s1895_s12 = sld [smem:[#allocation3 + $0x200]] }
 0x226   : > { %v675_v33 = vadd.f32 %v674_v1, %v667_v58  ;;  %v1876_v3 = vmul.f32 %v2158_v56, %v1393_v34  ;;  %v372_v22 = vmul.f32 %v2159_v25, %v1475_v11  ;;  %v377_v54 = vstv %s1812_s21  ;;  %s1999_s21 = sld [smem:[#allocation3 + $0x700]] }
 0x227   : > { %v686_v62 = vmul.f32 %v685_v23, %v683_v48  ;;  %v367_v1 = vadd.f32 %v366_v16, %v334_v29  ;;  %v659_v24 = vmul.f32 %v658_v45, %v656_v30  ;;  %v2160_v40 = vstv %s1598_s0  ;;  %s2163_s0 = sld [smem:[#allocation33_spill]] }
 0x228   : > { %v681_v8 = vadd.f32 %v680_v28, %v675_v33  ;;  %v456_v34 = vmul.f32 %v2160_v40, %v1395_v35  ;;  %v565_v31 = vstv %s1831_s17  ;;  %v404_v11 = vstv %s1833_s1  ;;  %s1903_s1 = sld [smem:[#allocation3 + $0x600]]  ;;  %s2202_s17 = sld [smem:[#allocation7_spill]] }
 0x229   : > { %v2161_v7 = vrot.slane %v1647_v57, 3  ;;  %v660_v48 = vadd.f32 %v659_v24, %v654_v41  ;;  %v373_v47 = vadd.f32 %v372_v22, %v367_v1  ;;  %v378_v16 = vmul.f32 %v377_v54, %v375_v9  ;;  %v728_v51 = vpop.permute.xlu1 %727  ;;  %v420_v28 = vpop.permute.xlu0 %419 }
 0x22a   : > { %v687_v59 = vadd.f32 %v686_v62, %v681_v8  ;;  %v2162_v35 = vstv %s1652_s29  ;;  %v730_v45 = vstv %s1853_s13  ;;  %v422_v57 = vstv %s1855_s16  ;;  %s2169_s29 = sld [smem:[#allocation35_spill]]  ;;  %s2203_s13 = sld [smem:[#allocation8_spill]] }
 0x22b   : > { %v386_v58 = vadd.f32 %v2161_v7, %v361_v42  ;;  %v399_v20 = vmul.f32 %v2162_v35, %v1449_v4  ;;  %v698_v41 = vmul.f32 %v697_v37, %v1491_v15  ;;  %v2164_v33 = vrot.slane %v1650_v0, 3  ;;  %s1187_s16 = smov 48  }
 0x22c   : > { %v693_v56 = vadd.f32 %v692_v26, %v660_v48  ;;  %v379_v25 = vadd.f32 %v378_v16, %v373_v47  ;;  %v725_v4 = vmul.f32 %v724_v43, %v1481_v12  ;;  %v703_v42 = vstv %s1867_s27 }
 0x22d   : > { %v394_v23 = vadd.f32 %v1735_v38, %v386_v58  ;;  %v712_v29 = vadd.f32 %v2164_v33, %v687_v59  ;;  %v405_v38 = vmul.f32 %v404_v11, %v1790_v50  ;;  %v417_v30 = vmul.f32 %v416_v5, %v1483_v13  ;;  %v746_v54 = vpop.permute.xlu1 %745  ;;  %v701_v9 = vpop.permute.xlu0 %700 }
 0x22e   : > { %v412_v15 = vadd.f32 %v1822_v27, %v379_v25  ;;  %v699_v37 = vadd.f32 %v698_v41, %v693_v56  ;;  %v2166_v26 = vstv %s2163_s0  ;;  %v547_v43 = vstv %s1881_s18  ;;  %s2204_s27 = sshll.u32 %s2202_s17, 4 }
 0x22f   : > { %v400_v22 = vadd.f32 %v399_v20, %v394_v23  ;;  %v720_v0 = vadd.f32 %v1817_v61, %v712_v29  ;;  %v1925_v12 = vmul.f32 %v2166_v26, %v1401_v36  ;;  %v731_v50 = vmul.f32 %v730_v45, %v728_v51  ;;  %v2176_v29 = vld [vmem:[#allocation12_spill] sm:$0xff] }
 0x230   : > { %v418_v27 = vadd.f32 %v417_v30, %v412_v15  ;;  %v423_v8 = vmul.f32 %v422_v57, %v420_v28  ;;  %v704_v61 = vmul.f32 %v703_v42, %v701_v9  ;;  %v2167_v62 = vstv %s2165_s19  ;;  %v2182_v9 = vld [vmem:[#allocation42_spill] sm:$0xff] }
 0x231   : > { %v406_v13 = vadd.f32 %v405_v38, %v400_v22  ;;  %v726_v5 = vadd.f32 %v725_v4, %v720_v0  ;;  %v490_v1 = vmul.f32 %v2167_v62, %v1403_v39  ;;  %v887_v36 = vstv %s1888_s15  ;;  %v773_v35 = vpop.permute.xlu1 %772  ;;  %v2179_v0 = vld [vmem:[#allocation13_spill] sm:$0xff] }
 0x232   : > { %v748_v24 = vstv %s1893_s24  ;;  %v2168_v40 = vrot.slane %v1661_v49, 4  ;;  %v424_v58 = vadd.f32 %v423_v8, %v418_v27  ;;  %v705_v59 = vadd.f32 %v704_v61, %v699_v37  ;;  %v447_v49 = vpop.permute.xlu0 %446  ;;  %s2205_s24 = sld [smem:[#allocation45_spill]] }
 0x233   : > { %v732_v7 = vadd.f32 %v731_v50, %v726_v5  ;;  %v449_v48 = vstv %s1895_s12  ;;  %v743_v47 = vmul.f32 %v742_v10, %v1489_v14  ;;  %v444_v39 = vmul.f32 %v443_v18, %v1499_v17  ;;  %v2172_v10 = vld [vmem:[#allocation17_spill] sm:$0xff]  ;;  %v2181_v50 = vld [vmem:[#allocation18_spill] sm:$0xff] }
 0x234   : > { %v431_v11 = vadd.f32 %v2168_v40, %v406_v13  ;;  %v775_v16 = vstv %s1903_s1  ;;  %v462_v23 = vmul.f32 %v461_v53, %v1507_v19  ;;  %v2171_v45 = vrot.slane %v1658_v63, 4 }
 0x235   : > { %v457_v57 = vadd.f32 %v456_v34, %v424_v58  ;;  %v738_v14 = vadd.f32 %v1828_v46, %v705_v59  ;;  %v770_v17 = vmul.f32 %v769_v21, %v2172_v10  ;;  %v450_v28 = vmul.f32 %v449_v48, %v447_v49  ;;  %v2174_v34 = vld [vmem:[#allocation11_spill] sm:$0xff]  ;;  %v791_v38 = vpop.permute.xlu1 %790  ;;  %v2186_v58 = vld [vmem:[#allocation22_spill] sm:$0xff] }
 0x236   : > { %v439_v20 = vadd.f32 %v1860_v32, %v431_v11  ;;  %v757_v51 = vadd.f32 %v2171_v45, %v732_v7  ;;  %v467_v41 = vstv %s1915_s2  ;;  %v749_v32 = vmul.f32 %v748_v24, %v746_v54  ;;  %v465_v22 = vpop.permute.xlu0 %464  ;;  %v2183_v24 = vld [vmem:[#allocation14_spill] sm:$0xff]  ;;  %v2185_v7 = vld [vmem:[#allocation20_spill] sm:$0xff] }
 0x237   : > { %v744_v19 = vadd.f32 %v743_v47, %v738_v14  ;;  %v463_v53 = vadd.f32 %v462_v23, %v457_v57  ;;  %v2175_v46 = vstv %s2169_s29  ;;  %v2177_v21 = vstv %s2170_s26 }
 0x238   : > { %v445_v18 = vadd.f32 %v444_v39, %v439_v20  ;;  %v765_v63 = vadd.f32 %v1846_v6, %v757_v51  ;;  %v832_v33 = vmul.f32 %v2175_v46, %v2174_v34  ;;  %v508_v56 = vmul.f32 %v2177_v21, %v2176_v29  ;;  %v2190_v51 = vld [vmem:[#allocation19_spill] sm:$0xff]  ;;  %s187_s12 = scalar_lea.vmem %s2205_s24, %s2204_s27 }
 0x239   : > { %v869_v25 = vstv %s1928_s22  ;;  %v776_v6 = vmul.f32 %v775_v16, %v773_v35  ;;  %v750_v30 = vadd.f32 %v749_v32, %v744_v19  ;;  %v468_v15 = vmul.f32 %v467_v41, %v465_v22  ;;  %v823_v48 = vpop.permute.xlu1 %822  ;;  %v2193_v41 = vld [vmem:[#allocation21_spill] sm:$0xff] }
 0x23a   : > { %v451_v4 = vadd.f32 %v450_v28, %v445_v18  ;;  %v771_v42 = vadd.f32 %v770_v17, %v765_v63  ;;  %v2180_v37 = vstv %s2173_s5  ;;  %v788_v54 = vmul.f32 %v787_v44, %v2181_v50  ;;  %v499_v47 = vpop.permute.xlu0 %498  ;;  %v2191_v17 = vld [vmem:[#allocation15_spill] sm:$0xff] }
 0x23b   : > { %v560_v26 = vmul.f32 %v2180_v37, %v2179_v0  ;;  %v793_v5 = vstv %s1937_s20  ;;  %v783_v8 = vadd.f32 %v1876_v3, %v750_v30  ;;  %v469_v61 = vadd.f32 %v468_v15, %v463_v53  ;;  %v2188_v3 = vld [vmem:[#allocation41_spill] sm:$0xff] }
 0x23c   : > { %v480_v13 = vadd.f32 %v2182_v9, %v451_v4  ;;  %v777_v27 = vadd.f32 %v776_v6, %v771_v42  ;;  %v501_v62 = vstv %s1940_s23  ;;  %v2184_v40 = vstv %s2178_s4 }
 0x23d   : > { %v542_v11 = vmul.f32 %v2184_v40, %v2183_v24  ;;  %v496_v44 = vmul.f32 %v495_v60, %v2185_v7  ;;  %v514_v59 = vmul.f32 %v513_v52, %v2186_v58  ;;  %v789_v35 = vadd.f32 %v788_v54, %v783_v8  ;;  %v841_v53 = vpop.permute.xlu1 %840  ;;  %v2200_v7 = vld [vmem:[#allocation25_spill] sm:$0xff]  ;;  %v2201_v58 = vld [vmem:[#allocation26_spill] sm:$0xff] }
 0x23e   : > { %v491_v39 = vadd.f32 %v490_v1, %v480_v13  ;;  %v806_v16 = vadd.f32 %v2188_v3, %v777_v27  ;;  %v794_v49 = vmul.f32 %v793_v5, %v791_v38  ;;  %v509_v20 = vadd.f32 %v508_v56, %v469_v61  ;;  %v517_v34 = vpop.permute.xlu0 %516  ;;  %v2196_v38 = vld [vmem:[#allocation10_spill] sm:$0xff]  ;;  %v2198_v27 = vld [vmem:[#allocation23_spill] sm:$0xff]  ;;  %v2199_v61 = vld [vmem:[#allocation9_spill] sm:$0xff] }
 0x23f   : > { %v825_v23 = vstv %s1960_s3  ;;  %v502_v45 = vmul.f32 %v501_v62, %v499_v47  ;;  %v519_v52 = vstv %s1962_s30  ;;  %v820_v57 = vmul.f32 %v819_v2, %v2190_v51 }
 0x240   : > { %v497_v60 = vadd.f32 %v496_v44, %v491_v39  ;;  %v795_v1 = vadd.f32 %v794_v49, %v789_v35  ;;  %v815_v14 = vadd.f32 %v1925_v12, %v806_v16  ;;  %v515_v10 = vadd.f32 %v514_v59, %v509_v20  ;;  %v2194_v12 = vld [vmem:[#allocation16_spill] sm:$0xff] }
 0x241   : > { %v2192_v18 = vstv %s2187_s7  ;;  %v838_v32 = vmul.f32 %v837_v55, %v2193_v41  ;;  %v843_v63 = vstv %s1972_s6  ;;  %v826_v29 = vmul.f32 %v825_v23, %v823_v48  ;;  %v569_v50 = vpop.permute.xlu1 %568 }
 0x242   : > { %v882_v28 = vmul.f32 %v2192_v18, %v2191_v17  ;;  %v503_v19 = vadd.f32 %v502_v45, %v497_v60  ;;  %v833_v46 = vadd.f32 %v832_v33, %v795_v1  ;;  %v821_v2 = vadd.f32 %v820_v57, %v815_v14  ;;  %v2197_v33 = vld [vmem:[#allocation24_spill] sm:$0xff]  ;;  %v551_v54 = vpop.permute.xlu0 %550 }
 0x243   : > { %v520_v21 = vmul.f32 %v519_v52, %v517_v34  ;;  %v2195_v56 = vstv %s2189_s14  ;;  %v571_v42 = vstv %s1982_s8  ;;  %v553_v55 = vstv %s1984_s9 }
 0x244   : > { %v864_v4 = vmul.f32 %v2195_v56, %v2194_v12  ;;  %v533_v22 = vadd.f32 %v2196_v38, %v503_v19  ;;  %v827_v6 = vadd.f32 %v826_v29, %v821_v2  ;;  %v839_v30 = vadd.f32 %v838_v32, %v833_v46 }
 0x245   : > { %v844_v15 = vmul.f32 %v843_v63, %v841_v53  ;;  %v521_v0 = vadd.f32 %v520_v21, %v515_v10  ;;  %v548_v37 = vmul.f32 %v547_v43, %v2197_v33  ;;  %v893_v13 = vstv %s1997_s25  ;;  %v891_v35 = vpop.permute.xlu1 %890 }
 0x246   : > { %v543_v9 = vadd.f32 %v542_v11, %v533_v22  ;;  %v875_v5 = vstv %s1999_s21  ;;  %v566_v8 = vmul.f32 %v565_v31, %v2198_v27  ;;  %v856_v62 = vadd.f32 %v2199_v61, %v827_v6  ;;  %v873_v31 = vpop.permute.xlu0 %872  ;;  %v1148_v22 = vld [vmem:[%s2203_s13 + $0x8] sm:$0xff] }
 0x247   : > { %v845_v24 = vadd.f32 %v844_v15, %v839_v30  ;;  %v561_v40 = vadd.f32 %v560_v26, %v521_v0  ;;  %v888_v44 = vmul.f32 %v887_v36, %v2200_v7  ;;  %v870_v59 = vmul.f32 %v869_v25, %v2201_v58 }
 0x248   : > { %v549_v48 = vadd.f32 %v548_v37, %v543_v9  ;;  %v554_v43 = vmul.f32 %v553_v55, %v551_v54  ;;  %v572_v11 = vmul.f32 %v571_v42, %v569_v50  ;;  %v865_v3 = vadd.f32 %v864_v4, %v856_v62  ;;  %v1147_v4 = vld [vmem:[%s2203_s13] sm:$0xff] }
 0x249   : > { %v883_v47 = vadd.f32 %v882_v28, %v845_v24  ;;  %v567_v39 = vadd.f32 %v566_v8, %v561_v40  ;;  %v894_v23 = vmul.f32 %v893_v13, %v891_v35  ;;  %v876_v60 = vmul.f32 %v875_v5, %v873_v31 }
 0x24a   : > { %v555_v16 = vadd.f32 %v554_v43, %v549_v48  ;;  %v871_v26 = vadd.f32 %v870_v59, %v865_v3  ;;  %v899_v25 = vstv %s898_s11  ;;  %v925_v19 = vlaneseq }
 0x24b   : > { %v573_v49 = vadd.f32 %v572_v11, %v567_v39  ;;  %v889_v20 = vadd.f32 %v888_v44, %v883_v47 }
 0x24c   : > { %v877_v52 = vadd.f32 %v876_v60, %v871_v26  ;;  %v926_v63 = vshrl.u32 %v925_v19, 7 }
 0x24d   : > { %v574_v45 = vadd.f32 %v573_v49, %v555_v16  ;;  %v895_v36 = vadd.f32 %v894_v23, %v889_v20 }
 0x24e   : > { %v927_v2 = vsub.s32 0, %v926_v63 }
 0x24f   : > { %v896_v51 = vadd.f32 %v895_v36, %v877_v52 }
 0x251   : > { %v897_v57 = vadd.f32 %v896_v51, %v574_v45 }
 0x253   : > { %v900_v1 = vadd.f32 %v899_v25, %v897_v57 }
 0x255   : > { %v1108_v14 = vmul.f32 -1.442695, %v900_v1 }
 0x257   : > { %1143 = vpow2.f32 %v1108_v14 }
 0x261   : > { %v1144_v10 = vpop.eup %1143 }
 0x262   : > { %v904_v17 = vadd.f32 1.0, %v1144_v10 }
 0x264   : > { %1145 = vrcp.f32 %v904_v17 }
 0x26e   : > { %v1146_v18 = vpop.eup %1145 }
 0x26f   : > { %v912_v28 = vrot.slane %v1146_v18, 2  ;;  %v908_v41 = vrot.slane %v1146_v18, 1  ;;  %v916_v32 = vrot.slane %v1146_v18, 3 }
 0x271   : > { %913 = vrot.lane.b32.xlu1 %v912_v28, %s1185_s10  ;;  %909 = vrot.lane.b32.xlu0 %v908_v41, %s1186_s28 }
 0x275   : > { %917 = vrot.lane.b32.xlu0 %v916_v32, %s1187_s16 }
 0x2e3   : > { %v910_v53 = vpop.permute.xlu0 %909  ;;  %v914_v34 = vpop.permute.xlu1 %913 }
 0x2e4   : > { %v920_v46 = vsel %vm231_vm6, %v1146_v18, %v910_v53 }
 0x2e5   : > { %v922_v29 = vsel %vm921_vm8, %v920_v46, %v914_v34 }
 0x2e7   : > { %v918_v21 = vpop.permute.xlu0 %917 }
 0x2e8   : > { %v924_v12 = vsel %vm923_vm9, %v922_v29, %v918_v21 }
 0x2e9   : > { %v928_v56 = vrot.slane %v924_v12, %v927_v2 }
 0x2eb   : > { %v929_v38 = vmul.f32 %v1147_v4, %v928_v56  ;;  %v930_v42 = vmul.f32 %v1148_v22, %v928_v56 }
 0x2ed   : > { %931 = vst.msk [vmem:[%s187_s12] sm:$0xff] %vm190_vm0, %v929_v38  ;;  %932 = vst.msk [vmem:[%s187_s12 + $0x8] sm:$0xff] %vm190_vm0, %v930_v42 }
 0x2ee PF: > { %s2206_s0 = sld [smem:[#allocation6_spill]] }
 0x2f4   : > { %s15_s14 = sadd.s32 1, %s2206_s0  }
 0x2f5   : > { %p12_p1 = scmp.ge.s32.totalorder %s15_s14, 4  }
 0x2f7   :  { %14 = sbr.rel (!%p12_p1) target bundleno = 6 (0x6), region = 67 }
 0x2fe   :  { %954 = vsyncpa [#allocation4], 1 }
 0x2ff   :  { %956 = vsyncpa [#allocation4 + $0x1], 1 }

// kernel: cse_attention.3
= control target key start
LH: loop header
LB: loop body
LE: loop exit
PB: predicated region body
PF: predicated region fallthrough
CT: control target
= control target key end

     0   :  { %s3688_s0 = inlined_call_operand.vmem [shape: f32[2,16,64], index: 0, kind: input, shape index: {}]   ;;  %s3689_s1 = inlined_call_operand.vmem [shape: f32[2,7,7], index: 1, kind: input, shape index: {}]   ;;  %s3690_s2 = inlined_call_operand.<no memory space> [shape: f32[1], index: 2, kind: input, shape index: {}]   ;;  %s3691_s3 = inlined_call_operand.vmem [shape: f32[2,16,64], index: 3, kind: output, shape index: {}]  }
   0x1   :  { %3793 = sst [smem:[#allocation105_spill]] %s3688_s0 }
   0x2   :  { %3794 = sst [smem:[#allocation106_spill]] %s3689_s1 }
   0x3   :  { %3795 = sst [smem:[#allocation107_spill]] %s3691_s3 }
   0x4   :  { %8 = sst [smem:[#allocation2]] %s3690_s2 }
   0x5   :  { %9 = vsyncpa [#allocation4], 0  ;;  %s1946_s14 = smov 0  }
   0x6 LB: > { %3796 = sst [smem:[#allocation6_spill]] %s1886_s14  ;;  %s1684_s15 = sadd.s32 4294967295, %s1886_s14   ;;  %s1886_s14 = sphi %s1946_s14, %s15_s14  }
   0x7   : > { %p1686_p0 = scmp.ge.s32.totalorder %s1886_s14, 1  ;;  %p114_p1 = scmp.lt.s32.totalorder %s1886_s14, 3 }
   0x8   : > { %s3797_s1 = sld [smem:[#allocation106_spill]]  ;;  %p1806_p3 = scmp.eq.s32.totalorder %s1684_s15, 0 }
   0x9   : > { %p1957_p2 = pnand %p1686_p0, %p114_p1 }
   0xb   : > { %p1802_p4 = pneg %p1957_p2 }
   0xd   : > { %p1964_p5 = pnand %p1806_p3, %p1802_p4 }
   0xe   : > { %s126_s18 = sshll.u32 %s3797_s1, 4  ;;  %s127_s18 = int_to_ptr.vmem [resolvable:$true] %s126_s18 }
   0xf   : > { %s1861_s20 = scalar_lea.vmem %s127_s18, 256  ;;  %p1863_p7 = pneg %p1964_p5 }
  0x10   : > { %p1862_p6 = scmp.ne.s32.totalorder %s127_s18, %s1861_s20  ;;  %p1869_p10 = scmp.lt.s32.totalorder %s127_s18, %s127_s18 }
  0x11   : > { %p1870_p11 = scmp.lt.s32.totalorder %s1861_s20, %s1861_s20 }
  0x12   : > { %p1864_p8 = pnand %p1863_p7, %p1862_p6 }
  0x13   : > { %p1871_p12 = por %p1870_p11, %p1869_p10 }
  0x14   : > { %p1865_p9 = pneg %p1864_p8 }
  0x16   : > { %p1872_p13 = pnand %p1871_p12, %p1865_p9 }
  0x18   : > { %1875 = shalt.err (!%p1872_p13)
}
  0x19   : > { %s1888_s21 = smov [#allocation3]   ;;  %s1889_s22 = smov 128  }
  0x1a   : > { %s1890_s23 = smov 8   ;;  %153 = sbr.rel (%p1957_p2) target bundleno = 899 (0x383), region = 32 }
  0x1b   : > { %1805 = dma.vmem_to_smem (!%p1964_p5), %s127_s18, 256, %s1888_s21, [#allocation4], %s1889_s22, %s1889_s22, %s1890_s23  }
  0x21   : > { %1881 = dma.done.wait (%p1806_p3), [#allocation4], 256  }
  0x22   : > { %1883 = vsyncadd (%p1806_p3), [#allocation4], 4294967040 }
  0x23   : > { %159 = sfence }
  0x24   : > { %p178_p0 = scmp.lt.s32.totalorder %s1684_s15, 1  ;;  %vm190_vm0 = vcmask 523264   ;;  %s3801_s0 = sld [smem:[#allocation105_spill]]  ;;  %vm264_vm1 = vcmask 1040384   ;;  %vm254_vm2 = vcmask 1042432   ;;  %vm256_vm3 = vcmask 1043456  }
  0x25   : > { %s1891_s28 = smov 116   ;;  %s1892_s29 = smov 124   ;;  %vm258_vm4 = vcmask 1044480   ;;  %vm260_vm5 = vcmask 1045504   ;;  %vm262_vm6 = vcmask 1046528   ;;  %vm281_vm7 = vcmask 31744  }
  0x26   : > { %s4062_s15 = smov (!%p178_p0, %s1684_s15), 1  ;;  %s1893_s30 = smov 112   ;;  %vm266_vm8 = vcmask 1041408   ;;  %vm1581_vm9 = vcmask 64512   ;;  %vm1583_vm10 = vcmask 97280   ;;  %vm1585_vm11 = vcmask 130048  }
  0x27   : > { %3800 = sst [smem:[#allocation7_spill]] %s4062_s15  ;;  %s3765_s24 = sshll.u32 %s4062_s15, 4  ;;  %vm1587_vm12 = vcmask 162816   ;;  %vm1589_vm13 = vcmask 195584   ;;  %vm1591_vm14 = vcmask 228352   ;;  %vm1593_vm15 = vcmask 261120  }
  0x28   : > { %s1894_s4 = smov 120   ;;  %s1895_s5 = smov 104  }
  0x29   : > { %s1896_s6 = smov 108   ;;  %s1897_s7 = smov 96  }
  0x2a   : > { %s1984_s27 = scalar_lea.vmem %s3801_s0, %s3765_s24  ;;  %s1898_s8 = smov 100  }
  0x2b   : > { %3802 = sst [smem:[#allocation8_spill]] %s1984_s27  ;;  %v188_v0 = vld [vmem:[%s1984_s27] sm:$0xff]  ;;  %v189_v1 = vld [vmem:[%s1984_s27 + $0x8] sm:$0xff]  ;;  %s1899_s9 = smov 88  }
  0x2c   : > { %v191_v2 = vsel %vm190_vm0, %v188_v0, -inf  ;;  %v192_v3 = vsel %vm190_vm0, %v189_v1, -inf  ;;  %v200_v6 = vsel %vm190_vm0, %v188_v0, 0.0  ;;  %v201_v7 = vsel %vm190_vm0, %v189_v1, 0.0  ;;  %s1900_s10 = smov 92   ;;  %s1901_s11 = smov 80  }
  0x2d   : > { %v193_v4 = vmax.f32 %v191_v2, %v192_v3  ;;  %v202_v10 = vadd.f32 %v201_v7, %v200_v6  ;;  %s1902_s12 = smov 84   ;;  %s1903_s13 = smov 76  }
  0x2e   : > { %s1904_s16 = smov 72   ;;  %s1905_s17 = smov 68  }
  0x2f   : > { %v194_v5 = vrot.slane %v193_v4, 4  ;;  %v203_v13 = vrot.slane %v202_v10, 4  ;;  %s1906_s18 = smov 1   ;;  %s1701_s2 = sld [smem:[#allocation3 + $0x83]] }
  0x30   : > { %s1708_s19 = sld [smem:[#allocation3 + $0x103]]  ;;  %s3766_s21 = smov 127  }
  0x31   : > { %v195_v8 = vmax.f32 %v193_v4, %v194_v5  ;;  %v204_v15 = vadd.f32 %v203_v13, %v202_v10  ;;  %s1715_s20 = sld [smem:[#allocation3 + $0x183]]  ;;  %s2969_s24 = sld [smem:[#allocation3 + $0x484]] }
  0x32   : > { %s1722_s22 = sld [smem:[#allocation3 + $0x203]]  ;;  %s2971_s0 = sld [smem:[#allocation3 + $0x284]] }
  0x33   : > { %v196_v9 = vrot.slane %v195_v8, 2  ;;  %v205_v16 = vrot.slane %v204_v15, 2  ;;  %s1729_s23 = sld [smem:[#allocation3 + $0x283]]  ;;  %s2979_s1 = sld [smem:[#allocation3 + $0x504]] }
  0x34   : > { %s1736_s25 = sld [smem:[#allocation3 + $0x303]]  ;;  %s3905_s14 = smov 127  }
  0x35   : > { %v197_v11 = vmax.f32 %v195_v8, %v196_v9  ;;  %v206_v17 = vadd.f32 %v205_v16, %v204_v15  ;;  %v2031_v45 = vstv %s1701_s2  ;;  %s1750_s26 = sld [smem:[#allocation3 + $0x483]]  ;;  %s2924_s2 = sld [smem:[#allocation3 + $0x4]] }
  0x36   : > { %v2033_v46 = vstv %s1708_s19  ;;  %s2929_s19 = sld [smem:[#allocation3 + $0x82]]  ;;  %s2985_s27 = sld [smem:[#allocation3 + $0x604]] }
  0x37   : > { %v198_v12 = vrot.slane %v197_v11, 1  ;;  %v207_v18 = vrot.slane %v206_v17, 1  ;;  %v2036_v50 = vstv %s1715_s20  ;;  %s2931_s20 = sld [smem:[#allocation3 + $0x84]]  ;;  %s2983_s3 = sld [smem:[#allocation3 + $0x602]] }
  0x38   : > { %v2039_v52 = vstv %s1722_s22  ;;  %s2933_s22 = sld [smem:[#allocation3 + $0x404]]  ;;  %s2987_s15 = sld [smem:[#allocation3 + $0x682]] }
  0x39   : > { %v199_v14 = vmax.f32 %v197_v11, %v198_v12  ;;  %v208_v19 = vadd.f32 %v207_v18, %v206_v17  ;;  %v2046_v56 = vstv %s1729_s23  ;;  %s2935_s23 = sld [smem:[#allocation3 + $0x102]] }
  0x3a   : > { %v2053_v59 = vstv %s1736_s25  ;;  %s2939_s25 = sld [smem:[#allocation3 + $0x182]] }
  0x3b   : > { %218 = vrot.lane.b32.xlu1 %v199_v14, %s1891_s28  ;;  %212 = vrot.lane.b32.xlu0 %v199_v14, %s1892_s29  ;;  %v1994_v20 = vmul.f32 0.0625, %v208_v19  ;;  %v274_v22 = vsel %vm264_vm1, %v199_v14, 0.0  ;;  %v255_v27 = vsel %vm254_vm2, 0.0, %v199_v14 }
  0x3c   : > { %v276_v24 = vrot.slane %v274_v22, 6 }
  0x3d   : > { %v341_v21 = vsel %vm264_vm1, %v1994_v20, 0.0  ;;  %v328_v60 = vsel %vm254_vm2, 0.0, %v1994_v20 }
  0x3e   : > { %v343_v23 = vrot.slane %v341_v21, 6 }
  0x3f   : > { %221 = vrot.lane.b32.xlu1 %v199_v14, %s1893_s30  ;;  %215 = vrot.lane.b32.xlu0 %v199_v14, %s1894_s4 }
  0x43   : > { %227 = vrot.lane.b32.xlu1 %v199_v14, %s1895_s5  ;;  %224 = vrot.lane.b32.xlu0 %v199_v14, %s1896_s6 }
  0x47   : > { %233 = vrot.lane.b32.xlu1 %v199_v14, %s1897_s7  ;;  %230 = vrot.lane.b32.xlu0 %v199_v14, %s1898_s8 }
  0x4b   : > { %239 = vrot.lane.b32.xlu1 %v199_v14, %s1899_s9  ;;  %236 = vrot.lane.b32.xlu0 %v199_v14, %s1900_s10 }
  0x4f   : > { %245 = vrot.lane.b32.xlu1 %v199_v14, %s1901_s11  ;;  %242 = vrot.lane.b32.xlu0 %v199_v14, %s1902_s12 }
  0x53   : > { %286 = vrot.lane.b32.xlu1 %v1994_v20, %s1892_s29  ;;  %248 = vrot.lane.b32.xlu0 %v199_v14, %s1903_s13  ;;  %s1764_s29 = sld [smem:[#allocation3 + $0x583]] }
  0x57   : > { %292 = vrot.lane.b32.xlu1 %v1994_v20, %s1891_s28  ;;  %289 = vrot.lane.b32.xlu0 %v1994_v20, %s1894_s4  ;;  %s1757_s28 = sld [smem:[#allocation3 + $0x503]] }
  0x58   : > { %s1778_s4 = sld [smem:[#allocation3 + $0x683]] }
  0x5b   : > { %301 = vrot.lane.b32.xlu1 %v1994_v20, %s1895_s5  ;;  %298 = vrot.lane.b32.xlu0 %v1994_v20, %s1896_s6  ;;  %s1785_s5 = sld [smem:[#allocation3 + $0x703]]  ;;  %s2821_s6 = sld [smem:[#allocation3 + $0x2]] }
  0x5f   : > { %304 = vrot.lane.b32.xlu1 %v1994_v20, %s1898_s8  ;;  %295 = vrot.lane.b32.xlu0 %v1994_v20, %s1893_s30  ;;  %s1771_s30 = sld [smem:[#allocation3 + $0x603]]  ;;  %s2831_s8 = sld [smem:[#allocation3 + $0x1]] }
  0x63   : > { %310 = vrot.lane.b32.xlu1 %v1994_v20, %s1900_s10  ;;  %307 = vrot.lane.b32.xlu0 %v1994_v20, %s1897_s7  ;;  %s2829_s7 = sld [smem:[#allocation3 + $0x3]]  ;;  %s2846_s10 = sld [smem:[#allocation3 + $0x402]] }
  0x67   : > { %316 = vrot.lane.b32.xlu1 %v1994_v20, %s1902_s12  ;;  %313 = vrot.lane.b32.xlu0 %v1994_v20, %s1899_s9  ;;  %s2843_s9 = sld [smem:[#allocation3]]  ;;  %s2858_s12 = sld [smem:[#allocation3 + $0x401]] }
  0x69   : > { %3889 = sst [smem:[#allocation88_spill]] %s2846_s10 }
  0x6b   : > { %251 = vrot.lane.b32.xlu1 %v199_v14, %s1904_s16  ;;  %319 = vrot.lane.b32.xlu0 %v1994_v20, %s1901_s11  ;;  %s2855_s11 = sld [smem:[#allocation3 + $0x403]] }
  0x6d   : > { %3892 = sst [smem:[#allocation91_spill]] %s2858_s12 }
  0x6f   : > { %325 = vrot.lane.b32.xlu1 %v1994_v20, %s1904_s16  ;;  %322 = vrot.lane.b32.xlu0 %v1994_v20, %s1903_s13  ;;  %s2880_s13 = sld [smem:[#allocation3 + $0x400]]  ;;  %s2890_s16 = sld [smem:[#allocation3 + $0x482]] }
  0x73   : > { %344 = vrot.lane.b32.xlu1 %v343_v23, %s1905_s17  ;;  %277 = vrot.lane.b32.xlu0 %v276_v24, %s1905_s17  ;;  %s2913_s17 = sld [smem:[#allocation3 + $0x481]] }
  0x75   : > { %3895 = sst [smem:[#allocation94_spill]] %s2880_s13 }
  0x76   : > { %3897 = sst [smem:[#allocation96_spill]] %s2890_s16 }
  0x79   : > { %3899 = sst [smem:[#allocation98_spill]] %s2913_s17 }
  0xad   : > { %v219_v25 = vpop.permute.xlu1 %218  ;;  %v213_v26 = vpop.permute.xlu0 %212 }
  0xae   : > { %v257_v28 = vsel %vm256_vm3, %v255_v27, %v213_v26 }
  0xb1   : > { %v222_v29 = vpop.permute.xlu1 %221  ;;  %v216_v30 = vpop.permute.xlu0 %215 }
  0xb2   : > { %v259_v31 = vsel %vm258_vm4, %v257_v28, %v216_v30 }
  0xb3   : > { %v261_v32 = vsel %vm260_vm5, %v259_v31, %v219_v25 }
  0xb4   : > { %v263_v33 = vsel %vm262_vm6, %v261_v32, %v222_v29 }
  0xb5   : > { %v2021_v34 = vsel %vm281_vm7, %v263_v33, 0.0  ;;  %v228_v35 = vpop.permute.xlu1 %227  ;;  %v225_v36 = vpop.permute.xlu0 %224 }
  0xb6   : > { %357 = vrot.lane.b32.xlu0 %v2021_v34, %s1906_s18  ;;  %v265_v37 = vsel %vm264_vm1, %v225_v36, %v228_v35  ;;  %v419_v54 = vmul.f32 %v2031_v45, %v2021_v34  ;;  %v506_v55 = vmul.f32 %v2033_v46, %v2021_v34  ;;  %v590_v58 = vmul.f32 %v2036_v50, %v2021_v34 }
  0xb7   : > { %v437_v63 = vrot.slane %v2021_v34, 1  ;;  %v857_v1 = vrot.slane %v2021_v34, 6  ;;  %v674_v3 = vmul.f32 %v2039_v52, %v2021_v34  ;;  %v758_v4 = vmul.f32 %v2046_v56, %v2021_v34 }
  0xb8   : > { %v425_v6 = vrot.slane %v419_v54, 1  ;;  %v512_v7 = vrot.slane %v506_v55, 2  ;;  %v842_v8 = vmul.f32 %v2053_v59, %v2021_v34  ;;  %v596_v12 = vrot.slane %v590_v58, 3 }
  0xb9   : > { %v234_v38 = vpop.permute.xlu1 %233  ;;  %v231_v39 = vpop.permute.xlu0 %230  ;;  %v680_v21 = vrot.slane %v674_v3, 4  ;;  %v764_v22 = vrot.slane %v758_v4, 5  ;;  %v993_v3 = vstv %s1750_s26  ;;  %s2941_s26 = sld [smem:[#allocation3 + $0x104]] }
  0xba   : > { %v267_v40 = vsel %vm266_vm8, %v265_v37, %v231_v39  ;;  %387 = vrot.lane.b32.xlu0 %v2021_v34, %s3766_s21  ;;  %v848_v29 = vrot.slane %v842_v8, 6 }
  0xbb   : > { %v268_v42 = vsel %vm254_vm2, %v267_v40, %v234_v38 }
  0xbd   : > { %v240_v41 = vpop.permute.xlu1 %239  ;;  %v237_v43 = vpop.permute.xlu0 %236 }
  0xbe   : > { %v269_v44 = vsel %vm256_vm3, %v268_v42, %v237_v43 }
  0xbf   : > { %v270_v48 = vsel %vm258_vm4, %v269_v44, %v240_v41 }
  0xc1   : > { %v246_v47 = vpop.permute.xlu1 %245  ;;  %v243_v49 = vpop.permute.xlu0 %242 }
  0xc2   : > { %v271_v51 = vsel %vm260_vm5, %v270_v48, %v243_v49 }
  0xc3   : > { %v272_v53 = vsel %vm262_vm6, %v271_v51, %v246_v47 }
  0xc4   : > { %v2049_v57 = vsel %vm281_vm7, %v272_v53, 0.0 }
  0xc5   : > { %v287_v61 = vpop.permute.xlu1 %286  ;;  %v2057_v62 = vpop.permute.xlu0 %248  ;;  %v438_v0 = vrot.slane %v2049_v57, 1  ;;  %v858_v2 = vrot.slane %v2049_v57, 6  ;;  %v2080_v10 = vmul.f32 %v2031_v45, %v2049_v57  ;;  %v2084_v11 = vmul.f32 %v2033_v46, %v2049_v57 }
  0xc6   : > { %v2088_v15 = vmul.f32 %v2036_v50, %v2049_v57  ;;  %v2092_v16 = vmul.f32 %v2039_v52, %v2049_v57  ;;  %v2096_v17 = vmul.f32 %v2046_v56, %v2049_v57  ;;  %v2100_v18 = vmul.f32 %v2053_v59, %v2049_v57 }
  0xc7   : > { %v439_v5 = vsel %vm262_vm6, %v437_v63, %v438_v0  ;;  %v2076_v9 = vsel %vm266_vm8, %v857_v1, %v858_v2  ;;  %v426_v19 = vrot.slane %v2080_v10, 1  ;;  %v513_v20 = vrot.slane %v2084_v11, 2 }
  0xc8   : > { %444 = vrot.lane.b32.xlu0 %v439_v5, %s1906_s18  ;;  %v329_v23 = vsel %vm256_vm3, %v328_v60, %v287_v61  ;;  %v597_v24 = vrot.slane %v2088_v15, 3  ;;  %v681_v25 = vrot.slane %v2092_v16, 4  ;;  %v3695_v26 = vrot.slane %v2096_v17, 5 }
  0xc9   : > { %v293_v13 = vpop.permute.xlu1 %292  ;;  %v290_v14 = vpop.permute.xlu0 %289  ;;  %v2112_v27 = vsel %vm262_vm6, %v425_v6, %v426_v19  ;;  %v2117_v28 = vsel %vm260_vm5, %v512_v7, %v513_v20  ;;  %v3694_v30 = vrot.slane %v2100_v18, 6 }
  0xca   : > { %v2123_v33 = vsel %vm258_vm4, %v596_v12, %v597_v24  ;;  %v2128_v35 = vsel %vm256_vm3, %v680_v21, %v681_v25  ;;  %v2133_v36 = vsel %vm254_vm2, %v764_v22, %v3695_v26  ;;  %v330_v37 = vsel %vm258_vm4, %v329_v23, %v290_v14 }
  0xcb   : > { %3803 = vst [vmem:[#allocation9_spill] sm:$0xff] %v2123_v33  ;;  %3804 = vst [vmem:[#allocation10_spill] sm:$0xff] %v2128_v35  ;;  %v2139_v38 = vsel %vm266_vm8, %v848_v29, %v3694_v30  ;;  %v331_v40 = vsel %vm260_vm5, %v330_v37, %v293_v13  ;;  %v1080_v21 = vstv %s1757_s28  ;;  %v2185_v37 = vstv %s1771_s30  ;;  %s2951_s28 = sld [smem:[#allocation3 + $0x282]] }
  0xcc   : > { %474 = vrot.lane.b32.xlu0 %v439_v5, %s3766_s21  ;;  %3805 = vst [vmem:[#allocation11_spill] sm:$0xff] %v2133_v36  ;;  %3806 = vst [vmem:[#allocation12_spill] sm:$0xff] %v2139_v38  ;;  %s2958_s30 = sld [smem:[#allocation3 + $0x502]] }
  0xcd   : > { %v302_v31 = vpop.permute.xlu1 %301  ;;  %v299_v32 = vpop.permute.xlu0 %298 }
  0xce   : > { %v333_v44 = vsel %vm264_vm1, %v299_v32, %v302_v31  ;;  %v1164_v31 = vstv %s1764_s29  ;;  %v605_v32 = vrot.slane %v2021_v34, 3  ;;  %s2956_s29 = sld [smem:[#allocation3 + $0x202]] }
  0xd1   : > { %v305_v39 = vpop.permute.xlu1 %304  ;;  %v296_v41 = vpop.permute.xlu0 %295 }
  0xd2   : > { %v332_v42 = vsel %vm262_vm6, %v331_v40, %v296_v41  ;;  %v334_v47 = vsel %vm266_vm8, %v333_v44, %v305_v39  ;;  %v2187_v39 = vstv %s1778_s4  ;;  %v2189_v40 = vstv %s1785_s5  ;;  %s2963_s4 = sld [smem:[#allocation3 + $0x204]]  ;;  %s2965_s5 = sld [smem:[#allocation3 + $0x582]] }
  0xd3   : > { %v2144_v43 = vsel %vm281_vm7, %v332_v42, 0.0 }
  0xd4   : > { %932 = vrot.lane.b32.xlu1 %v2144_v43, %s1906_s18  ;;  %v1012_v8 = vrot.slane %v2144_v43, 1  ;;  %v1432_v12 = vrot.slane %v2144_v43, 6  ;;  %v994_v14 = vmul.f32 %v993_v3, %v2144_v43 }
  0xd5   : > { %v311_v48 = vpop.permute.xlu1 %310  ;;  %v308_v49 = vpop.permute.xlu0 %307 }
  0xd6   : > { %v335_v51 = vsel %vm254_vm2, %v334_v47, %v308_v49  ;;  %v522_v47 = vrot.slane %v2049_v57, 2 }
  0xd7   : > { %v336_v54 = vsel %vm256_vm3, %v335_v51, %v311_v48  ;;  %v1000_v48 = vrot.slane %v994_v14, 1 }
  0xd8   : > { %962 = vrot.lane.b32.xlu1 %v2144_v43, %s3766_s21 }
  0xd9   : > { %v317_v53 = vpop.permute.xlu1 %316  ;;  %v314_v55 = vpop.permute.xlu0 %313 }
  0xda   : > { %v337_v58 = vsel %vm258_vm4, %v336_v54, %v314_v55  ;;  %v3696_v54 = vrot.slane %v2049_v57, 3  ;;  %v1081_v55 = vmul.f32 %v1080_v21, %v2144_v43 }
  0xdb   : > { %v338_v61 = vsel %vm260_vm5, %v337_v58, %v317_v53 }
  0xdc   : > { %359 = vrot.lane.b32.xlu1 %v2049_v57, %s1906_s18 }
  0xdd   : > { %v252_v60 = vpop.permute.xlu1 %251  ;;  %v320_v63 = vpop.permute.xlu0 %319 }
  0xde   : > { %v339_v1 = vsel %vm262_vm6, %v338_v61, %v320_v63  ;;  %v273_v41 = vsel %vm264_vm1, %v2057_v62, %v252_v60  ;;  %v1165_v60 = vmul.f32 %v1164_v31, %v2144_v43 }
  0xdf   : > { %v2160_v4 = vsel %vm281_vm7, %v339_v1, 0.0 }
  0xe0   : > { %389 = vrot.lane.b32.xlu1 %v2049_v57, %s3766_s21  ;;  %v3693_v5 = vrot.slane %v2160_v4, 1  ;;  %v3692_v13 = vrot.slane %v2160_v4, 6  ;;  %v2180_v29 = vmul.f32 %v993_v3, %v2160_v4  ;;  %v1166_v14 = vmul.f32 %v1164_v31, %v2160_v4 }
  0xe1   : > { %v326_v6 = vpop.permute.xlu1 %325  ;;  %v323_v7 = vpop.permute.xlu0 %322 }
  0xe2   : > { %v2172_v22 = vsel %vm262_vm6, %v1012_v8, %v3693_v5  ;;  %v2177_v23 = vsel %vm266_vm8, %v1432_v12, %v3692_v13  ;;  %v1001_v49 = vrot.slane %v2180_v29, 1  ;;  %v340_v51 = vsel %vm264_vm1, %v323_v7, %v326_v6 }
  0xe3   : > { %v1082_v6 = vmul.f32 %v1080_v21, %v2160_v4  ;;  %v1249_v7 = vmul.f32 %v2185_v37, %v2144_v43  ;;  %v521_v8 = vrot.slane %v2021_v34, 2  ;;  %v2219_v29 = vmul.f32 %v2187_v39, %v2144_v43 }
  0xe4   : > { %934 = vrot.lane.b32.xlu1 %v2160_v4, %s1906_s18  ;;  %v2204_v62 = vsel %vm262_vm6, %v1000_v48, %v1001_v49  ;;  %v2232_v48 = vmul.f32 %v2185_v37, %v2160_v4  ;;  %v1171_v13 = vrot.slane %v1165_v60, 3  ;;  %v1418_v60 = vmul.f32 %v2189_v40, %v2160_v4 }
  0xe5   : > { %v345_v42 = vpop.permute.xlu1 %344  ;;  %v278_v44 = vpop.permute.xlu0 %277  ;;  %v1255_v5 = vrot.slane %v1249_v7, 4  ;;  %vm1595_vm1 = vcmask 293888  }
  0xe6   : > { %v280_v53 = vsel %vm266_vm8, %v273_v41, %v278_v44  ;;  %v347_v58 = vsel %vm266_vm8, %v340_v51, %v345_v42  ;;  %v607_v51 = vsel %vm258_vm4, %v605_v32, %v3696_v54  ;;  %v1334_v32 = vmul.f32 %v2187_v39, %v2160_v4 }
  0xe7   : > { %v2201_v61 = vsel %vm281_vm7, %v280_v53, 0.0  ;;  %v2222_v41 = vsel %vm281_vm7, %v347_v58, 0.0  ;;  %v523_v53 = vsel %vm260_vm5, %v521_v8, %v522_v47  ;;  %v1087_v58 = vrot.slane %v1081_v55, 2 }
  0xe8   : > { %964 = vrot.lane.b32.xlu1 %v2160_v4, %s3766_s21  ;;  %v524_v63 = vrot.slane %v2201_v61, 2  ;;  %v440_v1 = vrot.slane %v2201_v61, 1  ;;  %v421_v12 = vmul.f32 %v2031_v45, %v2201_v61  ;;  %v996_v30 = vmul.f32 %v993_v3, %v2222_v41 }
  0xe9   : > { %v1172_v8 = vrot.slane %v1166_v14, 3  ;;  %v508_v7 = vmul.f32 %v2033_v46, %v2201_v61  ;;  %v1083_v14 = vmul.f32 %v1080_v21, %v2222_v41  ;;  %v608_v26 = vrot.slane %v2201_v61, 3 }
  0xea   : > { %v2225_v42 = vsel %vm260_vm5, %v522_v47, %v524_v63  ;;  %v441_v44 = vsel %vm262_vm6, %v438_v0, %v440_v1  ;;  %v1417_v63 = vmul.f32 %v2189_v40, %v2144_v43  ;;  %v860_v0 = vrot.slane %v2201_v61, 6 }
  0xeb   : > { %530 = vrot.lane.b32.xlu0 %v2225_v42, %s1906_s18  ;;  %v1088_v1 = vrot.slane %v1082_v6, 2  ;;  %v1339_v47 = vrot.slane %v2219_v29, 5  ;;  %v1256_v6 = vrot.slane %v2232_v48, 4  ;;  %v428_v45 = vrot.slane %v421_v12, 1 }
  0xec   : > { %446 = vrot.lane.b32.xlu1 %v441_v44, %s1906_s18  ;;  %v2253_v55 = vsel %vm266_vm8, %v858_v2, %v860_v0  ;;  %v1003_v3 = vrot.slane %v996_v30, 1  ;;  %v592_v29 = vmul.f32 %v2036_v50, %v2201_v61  ;;  %v676_v2 = vmul.f32 %v2039_v52, %v2201_v61 }
  0xed   : > { %v2268_v48 = vsel %vm260_vm5, %v1087_v58, %v1088_v1  ;;  %v1167_v0 = vmul.f32 %v1164_v31, %v2222_v41  ;;  %v2274_v30 = vsel %vm262_vm6, %v426_v19, %v428_v45  ;;  %v515_v50 = vrot.slane %v508_v7, 2 }
  0xee   : > { %3807 = vst [vmem:[#allocation13_spill] sm:$0xff] %v2268_v48  ;;  %v2277_v46 = vsel %vm262_vm6, %v1001_v49, %v1003_v3  ;;  %v599_v12 = vrot.slane %v592_v29, 3  ;;  %v683_v52 = vrot.slane %v676_v2, 4  ;;  %v1090_v54 = vrot.slane %v1083_v14, 2 }
  0xef   : > { %612 = vrot.lane.b32.xlu0 %v607_v51, %s1906_s18  ;;  %v1174_v21 = vrot.slane %v1167_v0, 3  ;;  %v2284_v31 = vsel %vm260_vm5, %v513_v20, %v515_v50  ;;  %v2292_v19 = vsel %vm258_vm4, %v1171_v13, %v1172_v8  ;;  %v2295_v49 = vsel %vm256_vm3, %v1255_v5, %v1256_v6 }
  0xf0   : > { %528 = vrot.lane.b32.xlu1 %v523_v53, %s1906_s18  ;;  %v2289_v10 = vsel %vm258_vm4, %v597_v24, %v599_v12  ;;  %3808 = vst [vmem:[#allocation14_spill] sm:$0xff] %v2292_v19  ;;  %3809 = vst [vmem:[#allocation15_spill] sm:$0xff] %v2295_v49  ;;  %v2301_v11 = vsel %vm256_vm3, %v681_v25, %v683_v52  ;;  %v2304_v20 = vsel %vm260_vm5, %v1088_v1, %v1090_v54 }
  0xf1   : > { %3810 = vst [vmem:[#allocation16_spill] sm:$0xff] %v2301_v11  ;;  %3811 = vst [vmem:[#allocation17_spill] sm:$0xff] %v2304_v20  ;;  %v2307_v15 = vsel %vm258_vm4, %v1172_v8, %v1174_v21  ;;  %v760_v24 = vmul.f32 %v2046_v56, %v2201_v61  ;;  %v844_v5 = vmul.f32 %v2053_v59, %v2201_v61  ;;  %v1423_v16 = vrot.slane %v1417_v63, 6 }
  0xf2   : > { %3812 = vst [vmem:[#allocation18_spill] sm:$0xff] %v2307_v15  ;;  %v1251_v13 = vmul.f32 %v2185_v37, %v2222_v41  ;;  %v3813_v25 = vrot.slane %v2049_v57, 3  ;;  %v1335_v58 = vmul.f32 %v2187_v39, %v2222_v41  ;;  %v1424_v1 = vrot.slane %v1418_v60, 6 }
  0xf3   : > { %476 = vrot.lane.b32.xlu0 %v441_v44, %s3766_s21  ;;  %v1340_v44 = vrot.slane %v1334_v32, 5  ;;  %v767_v54 = vrot.slane %v760_v24, 5  ;;  %v851_v56 = vrot.slane %v844_v5, 6  ;;  %v1419_v37 = vmul.f32 %v2189_v40, %v2222_v41 }
  0xf4   : > { %558 = vrot.lane.b32.xlu1 %v523_v53, %s3766_s21  ;;  %v609_v53 = vsel %vm258_vm4, %v3813_v25, %v608_v26  ;;  %v1258_v8 = vrot.slane %v1251_v13, 4  ;;  %v3815_v63 = vrot.slane %v2096_v17, 5  ;;  %v1342_v32 = vrot.slane %v1335_v58, 5 }
  0xf5   : > { %v2322_v59 = vsel %vm254_vm2, %v1339_v47, %v1340_v44  ;;  %v2333_v39 = vsel %vm266_vm8, %v1423_v16, %v1424_v1  ;;  %v3818_v60 = vrot.slane %v2100_v18, 6  ;;  %v1426_v45 = vrot.slane %v1419_v37, 6 }
  0xf6   : > { %3814 = vst [vmem:[#allocation19_spill] sm:$0xff] %v2322_v59  ;;  %v2330_v26 = vsel %vm254_vm2, %v3815_v63, %v767_v54  ;;  %3817 = vst [vmem:[#allocation21_spill] sm:$0xff] %v2333_v39  ;;  %v2342_v40 = vsel %vm256_vm3, %v1256_v6, %v1258_v8  ;;  %v690_v17 = vrot.slane %v2049_v57, 4  ;;  %v2346_v3 = vsel %vm254_vm2, %v1340_v44, %v1342_v32 }
  0xf7   : > { %642 = vrot.lane.b32.xlu0 %v607_v51, %s3766_s21  ;;  %3816 = vst [vmem:[#allocation20_spill] sm:$0xff] %v2330_v26  ;;  %v773_v51 = vrot.slane %v2021_v34, 5  ;;  %v2339_v47 = vsel %vm266_vm8, %v3818_v60, %v851_v56  ;;  %3820 = vst [vmem:[#allocation23_spill] sm:$0xff] %v2342_v40  ;;  %v3822_v7 = vrot.slane %v2049_v57, 5  ;;  %v1097_v18 = vrot.slane %v2160_v4, 2 }
  0xf8   : > { %614 = vrot.lane.b32.xlu1 %v609_v53, %s1906_s18  ;;  %3819 = vst [vmem:[#allocation22_spill] sm:$0xff] %v2339_v47  ;;  %3821 = vst [vmem:[#allocation24_spill] sm:$0xff] %v2346_v3  ;;  %v2355_v2 = vsel %vm266_vm8, %v1424_v1, %v1426_v45  ;;  %v689_v6 = vrot.slane %v2021_v34, 4  ;;  %v1096_v14 = vrot.slane %v2144_v43, 2  ;;  %v1099_v50 = vrot.slane %v2222_v41, 2 }
  0xf9   : > { %v775_v29 = vsel %vm254_vm2, %v773_v51, %v3822_v7  ;;  %3823 = vst [vmem:[#allocation25_spill] sm:$0xff] %v2355_v2  ;;  %v1181_v52 = vrot.slane %v2160_v4, 3  ;;  %v1180_v21 = vrot.slane %v2144_v43, 3  ;;  %v692_v24 = vrot.slane %v2201_v61, 4 }
  0xfa   : > { %v691_v0 = vsel %vm256_vm3, %v689_v6, %v690_v17  ;;  %v1100_v12 = vsel %vm260_vm5, %v1097_v18, %v1099_v50  ;;  %v1015_v13 = vrot.slane %v2222_v41, 1  ;;  %v3824_v16 = vrot.slane %v2160_v4, 1 }
  0xfb   : > { %560 = vrot.lane.b32.xlu0 %v2225_v42, %s3766_s21  ;;  %v1098_v42 = vsel %vm260_vm5, %v1096_v14, %v1097_v18  ;;  %v1182_v5 = vsel %vm258_vm4, %v1180_v21, %v1181_v52  ;;  %v693_v44 = vsel %vm256_vm3, %v690_v17, %v692_v24  ;;  %v1265_v54 = vrot.slane %v2160_v4, 4 }
  0xfc   : > { %780 = vrot.lane.b32.xlu1 %v775_v29, %s1906_s18  ;;  %v1016_v25 = vsel %vm262_vm6, %v3824_v16, %v1015_v13  ;;  %v1264_v58 = vrot.slane %v2144_v43, 4  ;;  %v3825_v1 = vmov %v3822_v7  ;;  %v1349_v63 = vrot.slane %v2160_v4, 5 }
  0xfd   : > { %v1348_v32 = vrot.slane %v2144_v43, 5  ;;  %v1267_v60 = vrot.slane %v2222_v41, 4  ;;  %v1435_v7 = vrot.slane %v2222_v41, 6  ;;  %vm1603_vm5 = vcmask 424960  }
  0xfe   : > { %v1266_v8 = vsel %vm256_vm3, %v1264_v58, %v1265_v54  ;;  %vm1605_vm6 = vcmask 457728  }
  0xff   : > { %696 = vrot.lane.b32.xlu0 %v691_v0, %s1906_s18  ;;  %v1350_v51 = vsel %vm254_vm2, %v1348_v32, %v1349_v63  ;;  %v1268_v45 = vsel %vm256_vm3, %v1265_v54, %v1267_v60  ;;  %vm1599_vm3 = vcmask 359424  }
 0x100   : > { %1103 = vrot.lane.b32.xlu1 %v1098_v42, %s1906_s18 }
 0x103   : > { %726 = vrot.lane.b32.xlu0 %v691_v0, %s3766_s21 }
 0x104   : > { %1105 = vrot.lane.b32.xlu1 %v1100_v12, %s1906_s18 }
 0x107   : > { %644 = vrot.lane.b32.xlu0 %v609_v53, %s3766_s21  ;;  %v776_v53 = vrot.slane %v2201_v61, 5  ;;  %v1183_v61 = vrot.slane %v2222_v41, 3 }
 0x108   : > { %1187 = vrot.lane.b32.xlu1 %v1182_v5, %s1906_s18 }
 0x109   : > { %v777_v56 = vsel %vm254_vm2, %v3825_v1, %v776_v53  ;;  %v1184_v37 = vsel %vm258_vm4, %v1181_v52, %v1183_v61  ;;  %vm1601_vm4 = vcmask 392192  }
 0x10b   : > { %698 = vrot.lane.b32.xlu0 %v693_v44, %s1906_s18 }
 0x10c   : > { %1051 = vrot.lane.b32.xlu1 %v1016_v25, %s3766_s21 }
 0x10f   : > { %810 = vrot.lane.b32.xlu0 %v775_v29, %s3766_s21 }
 0x110   : > { %1217 = vrot.lane.b32.xlu1 %v1182_v5, %s3766_s21 }
 0x113   : > { %728 = vrot.lane.b32.xlu0 %v693_v44, %s3766_s21 }
 0x114   : > { %1135 = vrot.lane.b32.xlu1 %v1100_v12, %s3766_s21 }
 0x117   : > { %782 = vrot.lane.b32.xlu0 %v777_v56, %s1906_s18 }
 0x118   : > { %1271 = vrot.lane.b32.xlu1 %v1266_v8, %s1906_s18 }
 0x11b   : > { %1019 = vrot.lane.b32.xlu0 %v2172_v22, %s1906_s18 }
 0x11c   : > { %1301 = vrot.lane.b32.xlu1 %v1266_v8, %s3766_s21 }
 0x11f   : > { %1021 = vrot.lane.b32.xlu0 %v1016_v25, %s1906_s18 }
 0x120   : > { %1219 = vrot.lane.b32.xlu1 %v1184_v37, %s3766_s21 }
 0x123   : > { %1049 = vrot.lane.b32.xlu0 %v2172_v22, %s3766_s21  ;;  %v1351_v22 = vrot.slane %v2222_v41, 5 }
 0x124   : > { %1355 = vrot.lane.b32.xlu1 %v1350_v51, %s1906_s18 }
 0x125   : > { %v1352_v17 = vsel %vm254_vm2, %v1349_v63, %v1351_v22  ;;  %vm1597_vm2 = vcmask 326656  }
 0x127   : > { %1133 = vrot.lane.b32.xlu0 %v1098_v42, %s3766_s21 }
 0x128   : > { %1385 = vrot.lane.b32.xlu1 %v1350_v51, %s3766_s21  ;;  %v2436_v18 = vpop.permute.xlu0 %357 }
 0x12b   : > { %1189 = vrot.lane.b32.xlu0 %v1184_v37, %s1906_s18 }
 0x12c   : > { %1303 = vrot.lane.b32.xlu1 %v1268_v45, %s3766_s21  ;;  %v2443_v41 = vpop.permute.xlu0 %387 }
 0x12f   : > { %1273 = vrot.lane.b32.xlu0 %v1268_v45, %s1906_s18 }
 0x130   : > { %864 = vrot.lane.b32.xlu1 %v2076_v9, %s1906_s18 }
 0x133   : > { %894 = vrot.lane.b32.xlu0 %v2076_v9, %s3766_s21  ;;  %v3826_v9 = vrot.slane %v2160_v4, 6 }
 0x134   : > { %1357 = vrot.lane.b32.xlu1 %v1352_v17, %s1906_s18 }
 0x135   : > { %v1436_v29 = vsel %vm266_vm8, %v3826_v9, %v1435_v7 }
 0x137   : > { %1439 = vrot.lane.b32.xlu0 %v2177_v23, %s1906_s18 }
 0x138   : > { %1469 = vrot.lane.b32.xlu1 %v2177_v23, %s3766_s21 }
 0x13a   : > { %v2457_v14 = vpop.permute.xlu0 %444 }
 0x13b   : > { %812 = vrot.lane.b32.xlu0 %v777_v56, %s3766_s21 }
 0x13c   : > { %1387 = vrot.lane.b32.xlu1 %v1352_v17, %s3766_s21 }
 0x13e   : > { %v2469_v50 = vpop.permute.xlu0 %474 }
 0x13f   : > { %866 = vrot.lane.b32.xlu0 %v2253_v55, %s1906_s18 }
 0x140   : > { %896 = vrot.lane.b32.xlu1 %v2253_v55, %s3766_s21 }
 0x143   : > { %1441 = vrot.lane.b32.xlu0 %v1436_v29, %s1906_s18 }
 0x144   : > { %1471 = vrot.lane.b32.xlu1 %v1436_v29, %s3766_s21 }
 0x146   : > { %v2439_v23 = vpop.permute.xlu1 %932 }
 0x147   : > { %367 = vrot.lane.b32.xlu0 %v2436_v18, %s1906_s18 }
 0x14a   : > { %v2445_v6 = vpop.permute.xlu1 %962 }
 0x14b   : > { %972 = vrot.lane.b32.xlu1 %v2445_v6, %s3766_s21  ;;  %397 = vrot.lane.b32.xlu0 %v2443_v41, %s3766_s21 }
 0x14e   : > { %v2451_v55 = vpop.permute.xlu1 %359 }
 0x14f   : > { %369 = vrot.lane.b32.xlu1 %v2451_v55, %s1906_s18  ;;  %942 = vrot.lane.b32.xlu0 %v2439_v23, %s1906_s18 }
 0x152   : > { %v2459_v0 = vpop.permute.xlu1 %389 }
 0x153   : > { %399 = vrot.lane.b32.xlu1 %v2459_v0, %s3766_s21  ;;  %454 = vrot.lane.b32.xlu0 %v2457_v14, %s1906_s18 }
 0x156   : > { %v2465_v42 = vpop.permute.xlu1 %934 }
 0x157   : > { %944 = vrot.lane.b32.xlu1 %v2465_v42, %s1906_s18 }
 0x15a   : > { %v2471_v12 = vpop.permute.xlu1 %964 }
 0x15b   : > { %974 = vrot.lane.b32.xlu1 %v2471_v12, %s3766_s21 }
 0x15d   : > { %v2475_v52 = vpop.permute.xlu0 %530 }
 0x15e   : > { %v2477_v21 = vpop.permute.xlu1 %446 }
 0x15f   : > { %456 = vrot.lane.b32.xlu0 %v2477_v21, %s1906_s18  ;;  %484 = vrot.lane.b32.xlu1 %v2469_v50, %s3766_s21 }
 0x161   : > { %v2483_v24 = vpop.permute.xlu0 %612 }
 0x162   : > { %v2485_v5 = vpop.permute.xlu1 %528 }
 0x163   : > { %538 = vrot.lane.b32.xlu0 %v2485_v5, %s1906_s18 }
 0x165   : > { %v2489_v13 = vpop.permute.xlu0 %476 }
 0x166   : > { %v2491_v44 = vpop.permute.xlu1 %558 }
 0x167   : > { %568 = vrot.lane.b32.xlu1 %v2491_v44, %s3766_s21  ;;  %540 = vrot.lane.b32.xlu0 %v2475_v52, %s1906_s18 }
 0x169   : > { %v2497_v16 = vpop.permute.xlu0 %642 }
 0x16a   : > { %v2499_v25 = vpop.permute.xlu1 %614 }
 0x16b   : > { %624 = vrot.lane.b32.xlu1 %v2499_v25, %s1906_s18  ;;  %622 = vrot.lane.b32.xlu0 %v2483_v24, %s1906_s18 }
 0x16d   : > { %v2505_v53 = vpop.permute.xlu0 %560 }
 0x16e   : > { %v2507_v54 = vpop.permute.xlu1 %780 }
 0x16f   : > { %790 = vrot.lane.b32.xlu1 %v2507_v54, %s1906_s18  ;;  %486 = vrot.lane.b32.xlu0 %v2489_v13, %s3766_s21 }
 0x171   : > { %v2513_v58 = vpop.permute.xlu0 %696 }
 0x172   : > { %v2515_v1 = vpop.permute.xlu1 %1103 }
 0x173   : > { %652 = vrot.lane.b32.xlu0 %v2497_v16, %s3766_s21 }
 0x175   : > { %v2519_v56 = vpop.permute.xlu0 %726 }
 0x176   : > { %3827 = vst [vmem:[#allocation26_spill] sm:$0xff] %v2519_v56  ;;  %v2521_v8 = vpop.permute.xlu1 %1105 }
 0x177   : > { %3828 = vst [vmem:[#allocation27_spill] sm:$0xff] %v2521_v8  ;;  %570 = vrot.lane.b32.xlu0 %v2505_v53, %s3766_s21 }
 0x179   : > { %v2525_v61 = vpop.permute.xlu0 %644 }
 0x17a   : > { %v2527_v37 = vpop.permute.xlu1 %1187 }
 0x17b   : > { %3829 = vst [vmem:[#allocation28_spill] sm:$0xff] %v2527_v37  ;;  %706 = vrot.lane.b32.xlu0 %v2513_v58, %s1906_s18 }
 0x17d   : > { %v2531_v63 = vpop.permute.xlu0 %698 }
 0x17e   : > { %3830 = vst [vmem:[#allocation29_spill] sm:$0xff] %v2531_v63  ;;  %v2533_v32 = vpop.permute.xlu1 %1051 }
 0x17f   : > { %3831 = vst [vmem:[#allocation30_spill] sm:$0xff] %v2533_v32  ;;  %736 = vrot.lane.b32.xlu0 %v2519_v56, %s3766_s21 }
 0x181   : > { %v2537_v51 = vpop.permute.xlu0 %810 }
 0x182   : > { %3832 = vst [vmem:[#allocation31_spill] sm:$0xff] %v2537_v51  ;;  %v2539_v60 = vpop.permute.xlu1 %1217 }
 0x183   : > { %3833 = vst [vmem:[#allocation32_spill] sm:$0xff] %v2539_v60  ;;  %654 = vrot.lane.b32.xlu0 %v2525_v61, %s3766_s21 }
 0x185   : > { %v2543_v45 = vpop.permute.xlu0 %728 }
 0x186   : > { %v2545_v22 = vpop.permute.xlu1 %1135 }
 0x187   : > { %3834 = vst [vmem:[#allocation33_spill] sm:$0xff] %v2545_v22  ;;  %708 = vrot.lane.b32.xlu0 %v2531_v63, %s1906_s18 }
 0x189   : > { %v2549_v17 = vpop.permute.xlu0 %782 }
 0x18a   : > { %3835 = vst [vmem:[#allocation34_spill] sm:$0xff] %v2549_v17  ;;  %v2551_v7 = vpop.permute.xlu1 %1271 }
 0x18b   : > { %3836 = vst [vmem:[#allocation35_spill] sm:$0xff] %v2551_v7  ;;  %820 = vrot.lane.b32.xlu0 %v2537_v51, %s3766_s21 }
 0x18d   : > { %v2555_v9 = vpop.permute.xlu0 %1019 }
 0x18e   : > { %v2557_v29 = vpop.permute.xlu1 %1301 }
 0x18f   : > { %3837 = vst [vmem:[#allocation36_spill] sm:$0xff] %v2557_v29  ;;  %738 = vrot.lane.b32.xlu0 %v2543_v45, %s3766_s21 }
 0x191   : > { %v2561_v2 = vpop.permute.xlu0 %1021 }
 0x192   : > { %3838 = vst [vmem:[#allocation37_spill] sm:$0xff] %v2561_v2  ;;  %v2563_v39 = vpop.permute.xlu1 %1219 }
 0x193   : > { %3839 = vst [vmem:[#allocation38_spill] sm:$0xff] %v2563_v39  ;;  %792 = vrot.lane.b32.xlu0 %v2549_v17, %s1906_s18 }
 0x195   : > { %v2567_v3 = vpop.permute.xlu0 %1049 }
 0x196   : > { %3840 = vst [vmem:[#allocation39_spill] sm:$0xff] %v2567_v3  ;;  %v2569_v59 = vpop.permute.xlu1 %1355 }
 0x197   : > { %3841 = vst [vmem:[#allocation40_spill] sm:$0xff] %v2569_v59 }
 0x199   : > { %v2571_v40 = vpop.permute.xlu0 %1133 }
 0x19a   : > { %3842 = vst [vmem:[#allocation41_spill] sm:$0xff] %v2571_v40  ;;  %v2573_v47 = vpop.permute.xlu1 %1385 }
 0x19b   : > { %3843 = vst [vmem:[#allocation42_spill] sm:$0xff] %v2573_v47 }
 0x19d   : > { %v2575_v49 = vpop.permute.xlu0 %1189 }
 0x19e   : > { %3844 = vst [vmem:[#allocation43_spill] sm:$0xff] %v2575_v49  ;;  %v2577_v19 = vpop.permute.xlu1 %1303 }
 0x19f   : > { %3845 = vst [vmem:[#allocation44_spill] sm:$0xff] %v2577_v19 }
 0x1a1   : > { %v2579_v15 = vpop.permute.xlu0 %1273 }
 0x1a2   : > { %3846 = vst [vmem:[#allocation45_spill] sm:$0xff] %v2579_v15  ;;  %v2581_v38 = vpop.permute.xlu1 %864 }
 0x1a3   : > { %3847 = vst [vmem:[#allocation46_spill] sm:$0xff] %v2581_v38  ;;  %874 = vrot.lane.b32.xlu1 %v2581_v38, %s1906_s18 }
 0x1a5   : > { %v2585_v48 = vpop.permute.xlu0 %894 }
 0x1a6   : > { %3848 = vst [vmem:[#allocation47_spill] sm:$0xff] %v2585_v48  ;;  %904 = vrot.lane.b32.xlu0 %v2585_v48, %s3766_s21 }
 0x1a7   : > { %1031 = vrot.lane.b32.xlu1 %v2561_v2, %s1906_s18 }
 0x1a9   : > { %v2591_v20 = vpop.permute.xlu0 %1439 }
 0x1aa   : > { %3849 = vst [vmem:[#allocation48_spill] sm:$0xff] %v2591_v20  ;;  %1029 = vrot.lane.b32.xlu0 %v2555_v9, %s1906_s18 }
 0x1ab   : > { %1115 = vrot.lane.b32.xlu1 %v2521_v8, %s1906_s18 }
 0x1ad   : > { %v2597_v36 = vpop.permute.xlu0 %812 }
 0x1ae   : > { %3850 = vst [vmem:[#allocation49_spill] sm:$0xff] %v2597_v36  ;;  %1113 = vrot.lane.b32.xlu0 %v2515_v1, %s1906_s18 }
 0x1af   : > { %1197 = vrot.lane.b32.xlu1 %v2527_v37, %s1906_s18 }
 0x1b1   : > { %v2603_v26 = vpop.permute.xlu0 %866 }
 0x1b2   : > { %3851 = vst [vmem:[#allocation50_spill] sm:$0xff] %v2603_v26  ;;  %1059 = vrot.lane.b32.xlu0 %v2567_v3, %s3766_s21 }
 0x1b3   : > { %1061 = vrot.lane.b32.xlu1 %v2533_v32, %s3766_s21 }
 0x1b5   : > { %v2609_v48 = vpop.permute.xlu0 %1441 }
 0x1b6   : > { %3852 = vst [vmem:[#allocation51_spill] sm:$0xff] %v2609_v48  ;;  %1143 = vrot.lane.b32.xlu0 %v2571_v40, %s3766_s21 }
 0x1b7   : > { %1227 = vrot.lane.b32.xlu1 %v2539_v60, %s3766_s21 }
 0x1b9   : > { %v2617_v38 = vpop.permute.xlu0 %367 }
 0x1ba   : > { %1199 = vrot.lane.b32.xlu0 %v2575_v49, %s1906_s18  ;;  %v2631_v49 = vpop.permute.xlu1 %1357 }
 0x1bb   : > { %1145 = vrot.lane.b32.xlu1 %v2545_v22, %s3766_s21  ;;  %3853 = vst [vmem:[#allocation52_spill] sm:$0xff] %v2631_v49 }
 0x1bd   : > { %v2625_v35 = vpop.permute.xlu0 %397 }
 0x1be   : > { %1283 = vrot.lane.b32.xlu0 %v2579_v15, %s1906_s18  ;;  %v2639_v15 = vpop.permute.xlu1 %1469 }
 0x1bf   : > { %1281 = vrot.lane.b32.xlu1 %v2551_v7, %s1906_s18  ;;  %3854 = vst [vmem:[#allocation53_spill] sm:$0xff] %v2639_v15 }
 0x1c1   : > { %v2635_v40 = vpop.permute.xlu0 %942 }
 0x1c2   : > { %1449 = vrot.lane.b32.xlu0 %v2591_v20, %s1906_s18 }
 0x1c3   : > { %1311 = vrot.lane.b32.xlu1 %v2557_v29, %s3766_s21 }
 0x1c5   : > { %v2645_v20 = vpop.permute.xlu0 %454 }
 0x1c6   : > { %822 = vrot.lane.b32.xlu0 %v2597_v36, %s3766_s21  ;;  %v2651_v36 = vpop.permute.xlu1 %1387 }
 0x1c7   : > { %1229 = vrot.lane.b32.xlu1 %v2563_v39, %s3766_s21  ;;  %3855 = vst [vmem:[#allocation54_spill] sm:$0xff] %v2651_v36 }
 0x1ca   : > { %876 = vrot.lane.b32.xlu0 %v2603_v26, %s1906_s18 }
 0x1cb   : > { %1365 = vrot.lane.b32.xlu1 %v2569_v59, %s1906_s18  ;;  %v2661_v59 = vpop.permute.xlu1 %896 }
 0x1cc   : > { %3856 = vst [vmem:[#allocation55_spill] sm:$0xff] %v2661_v59 }
 0x1ce   : > { %1451 = vrot.lane.b32.xlu0 %v2609_v48, %s1906_s18 }
 0x1cf   : > { %1395 = vrot.lane.b32.xlu1 %v2573_v47, %s3766_s21  ;;  %v2673_v47 = vpop.permute.xlu1 %1471 }
 0x1d0   : > { %3857 = vst [vmem:[#allocation56_spill] sm:$0xff] %v2673_v47 }
 0x1d1   : > { %v2653_v3 = vpop.permute.xlu0 %456 }
 0x1d2   : > { %377 = vrot.lane.b32.xlu0 %v2617_v38, %s1906_s18 }
 0x1d3   : > { %1313 = vrot.lane.b32.xlu1 %v2577_v19, %s3766_s21  ;;  %v2681_v39 = vpop.permute.xlu1 %972 }
 0x1d4   : > { %3859 = vst [vmem:[#allocation58_spill] sm:$0xff] %v2681_v39 }
 0x1d5   : > { %v2659_v26 = vpop.permute.xlu0 %538 }
 0x1d6   : > { %407 = vrot.lane.b32.xlu0 %v2625_v35, %s3766_s21 }
 0x1d7   : > { %1367 = vrot.lane.b32.xlu1 %v2631_v49, %s1906_s18  ;;  %v2691_v11 = vpop.permute.xlu1 %369 }
 0x1d9   : > { %v2667_v48 = vpop.permute.xlu0 %540 }
 0x1da   : > { %952 = vrot.lane.b32.xlu0 %v2635_v40, %s1906_s18 }
 0x1db   : > { %1479 = vrot.lane.b32.xlu1 %v2639_v15, %s3766_s21  ;;  %v2703_v2 = vpop.permute.xlu1 %399 }
 0x1dd   : > { %v2675_v19 = vpop.permute.xlu0 %622 }
 0x1de   : > { %3858 = vst [vmem:[#allocation57_spill] sm:$0xff] %v2675_v19  ;;  %466 = vrot.lane.b32.xlu0 %v2653_v3, %s1906_s18 }
 0x1df   : > { %1397 = vrot.lane.b32.xlu1 %v2651_v36, %s3766_s21  ;;  %v2711_v29 = vpop.permute.xlu1 %944 }
 0x1e1   : > { %v2683_v49 = vpop.permute.xlu0 %486 }
 0x1e2   : > { %548 = vrot.lane.b32.xlu0 %v2659_v26, %s1906_s18 }
 0x1e3   : > { %906 = vrot.lane.b32.xlu1 %v2661_v59, %s3766_s21 }
 0x1e5   : > { %v2689_v15 = vpop.permute.xlu0 %652 }
 0x1e6   : > { %3860 = vst [vmem:[#allocation59_spill] sm:$0xff] %v2689_v15  ;;  %550 = vrot.lane.b32.xlu0 %v2667_v48, %s1906_s18 }
 0x1e7   : > { %1481 = vrot.lane.b32.xlu1 %v2673_v47, %s3766_s21 }
 0x1e9   : > { %v2697_v36 = vpop.permute.xlu0 %570 }
 0x1ea   : > { %632 = vrot.lane.b32.xlu0 %v2675_v19, %s1906_s18 }
 0x1eb   : > { %982 = vrot.lane.b32.xlu1 %v2681_v39, %s3766_s21  ;;  %v2723_v39 = vpop.permute.xlu1 %974 }
 0x1ec   : > { %3863 = vst [vmem:[#allocation62_spill] sm:$0xff] %v2723_v39 }
 0x1ed   : > { %v2709_v59 = vpop.permute.xlu0 %706 }
 0x1ee   : > { %496 = vrot.lane.b32.xlu0 %v2683_v49, %s3766_s21  ;;  %3861 = vst [vmem:[#allocation60_spill] sm:$0xff] %v2709_v59 }
 0x1ef   : > { %379 = vrot.lane.b32.xlu1 %v2691_v11, %s1906_s18  ;;  %v2731_v7 = vpop.permute.xlu1 %484 }
 0x1f1   : > { %v2717_v47 = vpop.permute.xlu0 %736 }
 0x1f2   : > { %662 = vrot.lane.b32.xlu0 %v2689_v15, %s3766_s21  ;;  %3862 = vst [vmem:[#allocation61_spill] sm:$0xff] %v2717_v47 }
 0x1f3   : > { %409 = vrot.lane.b32.xlu1 %v2703_v2, %s3766_s21  ;;  %v2737_v17 = vpop.permute.xlu1 %568 }
 0x1f4   : > { %3864 = vst [vmem:[#allocation63_spill] sm:$0xff] %v2737_v17 }
 0x1f5   : > { %v2729_v15 = vpop.permute.xlu0 %654 }
 0x1f6   : > { %580 = vrot.lane.b32.xlu0 %v2697_v36, %s3766_s21 }
 0x1f7   : > { %954 = vrot.lane.b32.xlu1 %v2711_v29, %s1906_s18 }
 0x1f9   : > { %v2739_v22 = vpop.permute.xlu0 %708 }
 0x1fa   : > { %716 = vrot.lane.b32.xlu0 %v2709_v59, %s1906_s18  ;;  %3865 = vst [vmem:[#allocation64_spill] sm:$0xff] %v2739_v22 }
 0x1fb   : > { %984 = vrot.lane.b32.xlu1 %v2723_v39, %s3766_s21 }
 0x1fd   : > { %v2751_v39 = vpop.permute.xlu0 %820 }
 0x1fe   : > { %746 = vrot.lane.b32.xlu0 %v2717_v47, %s3766_s21  ;;  %v2749_v47 = vpop.permute.xlu1 %624  ;;  %3867 = vst [vmem:[#allocation66_spill] sm:$0xff] %v2751_v39 }
 0x1ff   : > { %464 = vrot.lane.b32.xlu1 %v2645_v20, %s1906_s18  ;;  %3866 = vst [vmem:[#allocation65_spill] sm:$0xff] %v2749_v47 }
 0x201   : > { %v2759_v19 = vpop.permute.xlu0 %738 }
 0x202   : > { %664 = vrot.lane.b32.xlu0 %v2729_v15, %s3766_s21  ;;  %v2757_v59 = vpop.permute.xlu1 %790  ;;  %3869 = vst [vmem:[#allocation68_spill] sm:$0xff] %v2759_v19 }
 0x203   : > { %494 = vrot.lane.b32.xlu1 %v2731_v7, %s3766_s21  ;;  %3868 = vst [vmem:[#allocation67_spill] sm:$0xff] %v2757_v59 }
 0x206   : > { %718 = vrot.lane.b32.xlu0 %v2739_v22, %s1906_s18  ;;  %v2763_v22 = vpop.permute.xlu0 %792 }
 0x207   : > { %578 = vrot.lane.b32.xlu1 %v2737_v17, %s3766_s21  ;;  %3870 = vst [vmem:[#allocation69_spill] sm:$0xff] %v2763_v22 }
 0x20a   : > { %830 = vrot.lane.b32.xlu0 %v2751_v39, %s3766_s21 }
 0x20b   : > { %634 = vrot.lane.b32.xlu1 %v2749_v47, %s1906_s18 }
 0x20f   : > { %800 = vrot.lane.b32.xlu1 %v2757_v59, %s1906_s18 }
 0x215   : > { %v2765_v60 = vpop.permute.xlu1 %874 }
 0x216   : > { %3871 = vst [vmem:[#allocation70_spill] sm:$0xff] %v2765_v60 }
 0x218   : > { %v2767_v51 = vpop.permute.xlu0 %904 }
 0x219   : > { %3872 = vst [vmem:[#allocation71_spill] sm:$0xff] %v2767_v51  ;;  %v2769_v32 = vpop.permute.xlu1 %1031 }
 0x21a   : > { %3873 = vst [vmem:[#allocation72_spill] sm:$0xff] %v2769_v32  ;;  %1041 = vrot.lane.b32.xlu1 %v2769_v32, %s1906_s18 }
 0x21c   : > { %v2773_v39 = vpop.permute.xlu0 %1029 }
 0x21d   : > { %v2775_v33 = vpop.permute.xlu1 %1115  ;;  %1039 = vrot.lane.b32.xlu0 %v2773_v39, %s1906_s18 }
 0x21e   : > { %3874 = vst [vmem:[#allocation73_spill] sm:$0xff] %v2775_v33  ;;  %1125 = vrot.lane.b32.xlu1 %v2775_v33, %s1906_s18 }
 0x220   : > { %v2781_v59 = vpop.permute.xlu0 %1113 }
 0x221   : > { %3875 = vst [vmem:[#allocation74_spill] sm:$0xff] %v2781_v59  ;;  %v2783_v63 = vpop.permute.xlu1 %1197  ;;  %1123 = vrot.lane.b32.xlu0 %v2781_v59, %s1906_s18 }
 0x222   : > { %3876 = vst [vmem:[#allocation75_spill] sm:$0xff] %v2783_v63  ;;  %884 = vrot.lane.b32.xlu1 %v2765_v60, %s1906_s18 }
 0x224   : > { %v2789_v32 = vpop.permute.xlu0 %1059 }
 0x225   : > { %3877 = vst [vmem:[#allocation76_spill] sm:$0xff] %v2789_v32  ;;  %v2791_v37 = vpop.permute.xlu1 %1061  ;;  %1069 = vrot.lane.b32.xlu0 %v2789_v32, %s3766_s21 }
 0x226   : > { %3878 = vst [vmem:[#allocation77_spill] sm:$0xff] %v2791_v37  ;;  %1207 = vrot.lane.b32.xlu1 %v2783_v63, %s1906_s18 }
 0x228   : > { %v2797_v33 = vpop.permute.xlu0 %1143 }
 0x229   : > { %3879 = vst [vmem:[#allocation78_spill] sm:$0xff] %v2797_v33  ;;  %v2799_v47 = vpop.permute.xlu1 %1227  ;;  %748 = vrot.lane.b32.xlu0 %v2759_v19, %s3766_s21 }
 0x22a   : > { %3880 = vst [vmem:[#allocation79_spill] sm:$0xff] %v2799_v47  ;;  %1071 = vrot.lane.b32.xlu1 %v2791_v37, %s3766_s21 }
 0x22c   : > { %v2805_v60 = vpop.permute.xlu0 %1199 }
 0x22d   : > { %3881 = vst [vmem:[#allocation80_spill] sm:$0xff] %v2805_v60  ;;  %v2807_v59 = vpop.permute.xlu1 %1145  ;;  %1153 = vrot.lane.b32.xlu0 %v2797_v33, %s3766_s21  ;;  %v3756_v33 = vstv %s2821_s6 }
 0x22e   : > { %3882 = vst [vmem:[#allocation81_spill] sm:$0xff] %v2807_v59  ;;  %1237 = vrot.lane.b32.xlu1 %v2799_v47, %s3766_s21 }
 0x230   : > { %v2813_v63 = vpop.permute.xlu0 %1283 }
 0x231   : > { %3883 = vst [vmem:[#allocation82_spill] sm:$0xff] %v2813_v63  ;;  %v2815_v32 = vpop.permute.xlu1 %1281  ;;  %802 = vrot.lane.b32.xlu0 %v2763_v22, %s1906_s18  ;;  %v3757_v22 = vstv %s2829_s7 }
 0x232   : > { %3884 = vst [vmem:[#allocation83_spill] sm:$0xff] %v2815_v32  ;;  %1155 = vrot.lane.b32.xlu1 %v2807_v59, %s3766_s21 }
 0x234   : > { %v2823_v37 = vpop.permute.xlu0 %1449 }
 0x235   : > { %3885 = vst [vmem:[#allocation84_spill] sm:$0xff] %v2823_v37  ;;  %v2825_v19 = vpop.permute.xlu1 %1311  ;;  %1209 = vrot.lane.b32.xlu0 %v2805_v60, %s1906_s18 }
 0x236   : > { %3886 = vst [vmem:[#allocation85_spill] sm:$0xff] %v2825_v19  ;;  %1291 = vrot.lane.b32.xlu1 %v2815_v32, %s1906_s18 }
 0x238   : > { %v2835_v47 = vpop.permute.xlu0 %822 }
 0x239   : > { %3887 = vst [vmem:[#allocation86_spill] sm:$0xff] %v2835_v47  ;;  %v2837_v59 = vpop.permute.xlu1 %1229  ;;  %914 = vrot.lane.b32.xlu0 %v2767_v51, %s3766_s21  ;;  %v3759_v51 = vstv %s2831_s8 }
 0x23a   : > { %3888 = vst [vmem:[#allocation87_spill] sm:$0xff] %v2837_v59  ;;  %1321 = vrot.lane.b32.xlu1 %v2825_v19, %s3766_s21  ;;  %v363_v19 = vmul.f32 %v3756_v33, %v2436_v18  ;;  %v373_v56 = vmul.f32 %v3759_v51, %v2617_v38  ;;  %v3762_v18 = vstv %s2843_s9 }
 0x23c   : > { %v2848_v32 = vpop.permute.xlu0 %876 }
 0x23d   : > { %3890 = vst [vmem:[#allocation89_spill] sm:$0xff] %v2848_v32  ;;  %v2850_v60 = vpop.permute.xlu1 %1365  ;;  %1293 = vrot.lane.b32.xlu0 %v2813_v63, %s1906_s18  ;;  %v353_v63 = vmul.f32 %v3757_v22, %v2021_v34  ;;  %v3779_v34 = vstv %s2846_s10  ;;  %s3017_s10 = sld [smem:[#allocation3 + $0x405]] }
 0x23e   : > { %3891 = vst [vmem:[#allocation90_spill] sm:$0xff] %v2850_v60  ;;  %1239 = vrot.lane.b32.xlu1 %v2837_v59, %s3766_s21 }
 0x23f   : > { %v365_v33 = vadd.f32 %v363_v19, %v353_v63  ;;  %v938_v19 = vmul.f32 %v3779_v34, %v2439_v23  ;;  %v3908_v34 = vstv %s2821_s6  ;;  %s3027_s6 = sld [smem:[#allocation3 + $0x85]] }
 0x240   : > { %v2865_v8 = vpop.permute.xlu0 %1451 }
 0x241   : > { %3893 = vst [vmem:[#allocation92_spill] sm:$0xff] %v2865_v8  ;;  %v2873_v17 = vpop.permute.xlu1 %1395  ;;  %1459 = vrot.lane.b32.xlu0 %v2823_v37, %s1906_s18  ;;  %v375_v59 = vadd.f32 %v373_v56, %v365_v33  ;;  %v3780_v37 = vstv %s2855_s11 }
 0x242   : > { %3894 = vst [vmem:[#allocation93_spill] sm:$0xff] %v2873_v17  ;;  %1375 = vrot.lane.b32.xlu1 %v2850_v60, %s1906_s18  ;;  %v3764_v60 = vstv %s2858_s12  ;;  %v928_v63 = vmul.f32 %v3780_v37, %v2144_v43  ;;  %s2999_s12 = sld [smem:[#allocation3 + $0x304]]  ;;  %v364_v37 = vmul.f32 %v3908_v34, %v2451_v55  ;;  %v3913_v55 = vstv %s2843_s9  ;;  %s3088_s9 = sld [smem:[#allocation3 + $0x181]] }
 0x244   : > { %v378_v22 = vpop.permute.xlu0 %377  ;;  %v940_v23 = vadd.f32 %v938_v19, %v928_v63 }
 0x245   : > { %v383_v38 = vmul.f32 %v3762_v18, %v378_v22  ;;  %v2885_v51 = vpop.permute.xlu1 %1313  ;;  %832 = vrot.lane.b32.xlu0 %v2835_v47, %s3766_s21  ;;  %v948_v22 = vmul.f32 %v3764_v60, %v2635_v40 }
 0x246   : > { %3896 = vst [vmem:[#allocation95_spill] sm:$0xff] %v2885_v51  ;;  %1405 = vrot.lane.b32.xlu1 %v2873_v17, %s3766_s21 }
 0x247   : > { %v385_v33 = vadd.f32 %v383_v38, %v375_v59  ;;  %v3778_v59 = vstv %s2880_s13  ;;  %v950_v43 = vadd.f32 %v948_v22, %v940_v23  ;;  %s2995_s13 = sld [smem:[#allocation3 + $0x5]] }
 0x248   : > { %v2898_v56 = vpop.permute.xlu0 %407 }
 0x249   : > { %v2907_v18 = vadd.f32 %v2112_v27, %v385_v33  ;;  %v2909_v47 = vpop.permute.xlu1 %1367  ;;  %886 = vrot.lane.b32.xlu0 %v2848_v32, %s1906_s18  ;;  %v3777_v27 = vstv %s2890_s16  ;;  %s2993_s16 = sld [smem:[#allocation3 + $0x302]] }
 0x24a   : > { %3898 = vst [vmem:[#allocation97_spill] sm:$0xff] %v2909_v47  ;;  %1323 = vrot.lane.b32.xlu1 %v2885_v51, %s3766_s21  ;;  %v1025_v63 = vmul.f32 %v3777_v27, %v2555_v9 }
 0x24c   : > { %v953_v38 = vpop.permute.xlu0 %952 }
 0x24d   : > { %v958_v40 = vmul.f32 %v3778_v59, %v953_v38  ;;  %v2920_v60 = vpop.permute.xlu1 %1479  ;;  %1461 = vrot.lane.b32.xlu0 %v2865_v8, %s1906_s18  ;;  %v3776_v38 = vstv %s2913_s17  ;;  %s2989_s17 = sld [smem:[#allocation3 + $0x684]]  ;;  %v3909_v8 = vstv %s2855_s11  ;;  %s3045_s11 = sld [smem:[#allocation3 + $0x101]]  ;;  %v3914_v59 = vstv %s2931_s20 }
 0x24e   : > { %3900 = vst [vmem:[#allocation99_spill] sm:$0xff] %v2920_v60  ;;  %1377 = vrot.lane.b32.xlu1 %v2909_v47, %s1906_s18  ;;  %s2949_s18 = sld [smem:[#allocation3 + $0x184]]  ;;  %v3067_v34 = vmul.f32 %v3914_v59, %v2469_v50 }
 0x24f   : > { %v960_v19 = vadd.f32 %v958_v40, %v950_v43  ;;  %v1035_v43 = vmul.f32 %v3776_v38, %v2773_v39  ;;  %v3907_v38 = vstv %s2829_s7  ;;  %s3029_s7 = sld [smem:[#allocation3 + $0x6]] }
 0x250   : > { %v2937_v33 = vpop.permute.xlu0 %466  ;;  %v354_v27 = vmul.f32 %v3907_v38, %v2049_v57 }
 0x251   : > { %v1007_v22 = vadd.f32 %v2204_v62, %v960_v19  ;;  %v2947_v23 = vpop.permute.xlu1 %1397 }
 0x252   : > { %3901 = vst [vmem:[#allocation100_spill] sm:$0xff] %v2947_v23  ;;  %1489 = vrot.lane.b32.xlu1 %v2920_v60, %s3766_s21  ;;  %s2977_s21 = sld [smem:[#allocation3 + $0x584]]  ;;  %v3910_v60 = vstv %s2831_s8  ;;  %s3911_s8 = sld [smem:[#allocation88_spill]] }
 0x253   : > { %v1027_v9 = vadd.f32 %v1025_v63, %v1007_v22  ;;  %v392_v22 = vstv %s2924_s2  ;;  %s3019_s2 = sld [smem:[#allocation3 + $0x81]]  ;;  %v374_v38 = vmul.f32 %v3910_v60, %v2691_v11 }
 0x254   : > { %v2967_v62 = vpop.permute.xlu0 %548  ;;  %v393_v51 = vmul.f32 %v392_v22, %v2443_v41  ;;  %v394_v57 = vmul.f32 %v392_v22, %v2459_v0  ;;  %v3916_v41 = vstv %s2933_s22 }
 0x255   : > { %v2973_v40 = vpop.permute.xlu1 %906  ;;  %v2975_v19 = vadd.f32 %v1035_v43, %v1027_v9  ;;  %v449_v43 = vstv %s2929_s19  ;;  %s3047_s19 = sld [smem:[#allocation3 + $0x80]] }
 0x256   : > { %3902 = vst [vmem:[#allocation101_spill] sm:$0xff] %v2973_v40  ;;  %1407 = vrot.lane.b32.xlu1 %v2947_v23, %s3905_s14  ;;  %v929_v23 = vmul.f32 %v3909_v8, %v2160_v4  ;;  %v366_v8 = vadd.f32 %v364_v37, %v354_v27  ;;  %v451_v22 = vmul.f32 %v449_v43, %v2477_v21 }
 0x257   : > { %3903 = vst [vmem:[#allocation102_spill] sm:$0xff] %v2975_v19 }
 0x258   : > { %3904 = sst [smem:[#allocation103_spill]] %s2977_s21  ;;  %v2991_v39 = vpop.permute.xlu0 %550  ;;  %s3912_s21 = sld [smem:[#allocation91_spill]]  ;;  %v376_v27 = vadd.f32 %v374_v38, %v366_v8  ;;  %v3915_v17 = vstv %s3911_s8 }
 0x259   : > { %v2997_v63 = vpop.permute.xlu1 %1481  ;;  %v939_v32 = vmul.f32 %v3915_v17, %v2465_v42  ;;  %v459_v38 = vstv %s3019_s2  ;;  %v489_v42 = vstv %s3027_s6  ;;  %v412_v17 = vstv %s3029_s7  ;;  %s3918_s2 = sld [smem:[#allocation94_spill]]  ;;  %s3098_s8 = sld [smem:[#allocation3 + $0x106]] }
 0x25a   : > { %3906 = vst [vmem:[#allocation104_spill] sm:$0xff] %v2997_v63  ;;  %916 = vrot.lane.b32.xlu1 %v2973_v40, %s3905_s14  ;;  %v402_v40 = vstv %s2995_s13  ;;  %s3072_s13 = sld [smem:[#allocation3 + $0x105]]  ;;  %s3107_s7 = sld [smem:[#allocation3 + $0x281]] }
 0x25b   : > { %v404_v37 = vmul.f32 %v402_v40, %v2703_v2  ;;  %v941_v2 = vadd.f32 %v939_v32, %v929_v23  ;;  %v469_v19 = vstv %s3047_s19  ;;  %v413_v23 = vmul.f32 %v412_v17, %v2898_v56  ;;  %s3152_s19 = sld [smem:[#allocation3 + $0x186]]  ;;  %s3258_s6 = sld [smem:[#allocation3 + $0x200]] }
 0x25c   : > { %v3021_v9 = vpop.permute.xlu0 %632 }
 0x25d   : > { %v3031_v4 = vpop.permute.xlu1 %982 }
 0x25e   : > { %1491 = vrot.lane.b32.xlu1 %v2997_v63, %s3905_s14  ;;  %s3056_s14 = sld [smem:[#allocation3 + $0x86]]  ;;  %v450_v63 = vmul.f32 %v449_v43, %v2457_v14  ;;  %v3082_v14 = vmul.f32 %v3916_v41, %v2445_v6  ;;  %v3917_v50 = vstv %s3912_s21  ;;  %v403_v6 = vmul.f32 %v402_v40, %v2625_v35  ;;  %s3096_s21 = sld [smem:[#allocation3 + $0x100]] }
 0x25f   : > { %v949_v59 = vmul.f32 %v3917_v50, %v2711_v29  ;;  %v543_v41 = vstv %s3045_s11  ;;  %v3919_v29 = vstv %s2931_s20  ;;  %v491_v35 = vmul.f32 %v489_v42, %v2683_v49  ;;  %s3123_s20 = sld [smem:[#allocation3 + $0x185]]  ;;  %s3262_s11 = sld [smem:[#allocation3 + $0x501]] }
 0x260   : > { %v497_v60 = vpop.permute.xlu0 %496  ;;  %v481_v50 = vmul.f32 %v3919_v29, %v2489_v13  ;;  %v471_v13 = vmul.f32 %v469_v19, %v2937_v33  ;;  %v3922_v49 = vstv %s2935_s23  ;;  %v573_v56 = vstv %s3072_s13  ;;  %s3180_s23 = sld [smem:[#allocation3 + $0x205]]  ;;  %s3307_s13 = sld [smem:[#allocation3 + $0x406]] }
 0x261   : > { %v380_v47 = vpop.permute.xlu1 %379 }
 0x262   : > { %v384_v11 = vmul.f32 %v3913_v55, %v380_v47 }
 0x264   : > { %v386_v47 = vadd.f32 %v384_v11, %v376_v27  ;;  %v3077_v55 = vpop.permute.xlu0 %662  ;;  %v406_v11 = vadd.f32 %v404_v37, %v394_v57  ;;  %v499_v40 = vstv %s3056_s14  ;;  %v951_v57 = vadd.f32 %v949_v59, %v941_v2  ;;  %s3277_s14 = sld [smem:[#allocation3 + $0x581]] }
 0x265   : > { %v410_v0 = vpop.permute.xlu1 %409  ;;  %v405_v2 = vadd.f32 %v403_v6, %v393_v51  ;;  %v501_v59 = vmul.f32 %v499_v40, %v497_v60  ;;  %v452_v51 = vadd.f32 %v450_v63, %v2907_v18  ;;  %v3924_v60 = vstv %s2941_s26  ;;  %s3196_s26 = sld [smem:[#allocation3 + $0x180]] }
 0x266   : > { %v433_v8 = vadd.f32 %v2274_v30, %v386_v47  ;;  %v414_v27 = vmul.f32 %v412_v17, %v410_v0  ;;  %v461_v30 = vmul.f32 %v459_v38, %v2653_v3  ;;  %v3920_v0 = vstv %s3918_s2  ;;  %s3388_s2 = sld [smem:[#allocation3 + $0x500]] }
 0x267   : > { %v565_v6 = vmul.f32 %v3924_v60, %v2505_v53  ;;  %v583_v18 = vstv %s3098_s8  ;;  %v795_v63 = vstv %s3107_s7  ;;  %s3402_s8 = sld [smem:[#allocation3 + $0x486]]  ;;  %s3446_s7 = sld [smem:[#allocation3 + $0x580]] }
 0x268   : > { %v453_v21 = vadd.f32 %v451_v22, %v433_v8  ;;  %v416_v43 = vadd.f32 %v414_v27, %v406_v11  ;;  %v581_v32 = vpop.permute.xlu0 %580  ;;  %v3921_v8 = vstv %s2933_s22  ;;  %v535_v27 = vmul.f32 %v3922_v49, %v2475_v52  ;;  %s3149_s22 = sld [smem:[#allocation3 + $0x201]] }
 0x269   : > { %v955_v37 = vpop.permute.xlu1 %954  ;;  %v3117_v11 = vmul.f32 %v3921_v8, %v2471_v12  ;;  %v3923_v12 = vstv %s2939_s25  ;;  %v627_v52 = vstv %s3088_s9  ;;  %v585_v8 = vmul.f32 %v583_v18, %v581_v32  ;;  %s3211_s25 = sld [smem:[#allocation3 + $0x285]] }
 0x26a   : > { %v463_v3 = vadd.f32 %v461_v30, %v453_v21  ;;  %v483_v47 = vadd.f32 %v481_v50, %v416_v43  ;;  %v959_v22 = vmul.f32 %v3920_v0, %v955_v37  ;;  %v3132_v30 = vmul.f32 %v3923_v12, %v2483_v24  ;;  %s3326_s9 = sld [smem:[#allocation3 + $0x485]] }
 0x26b   : > { %v415_v21 = vadd.f32 %v413_v23, %v405_v2  ;;  %v3925_v24 = vmov %v3922_v49  ;;  %v553_v23 = vstv %s3096_s21  ;;  %v3926_v2 = vmov %v3924_v60  ;;  %s3328_s21 = sld [smem:[#allocation3 + $0x505]] }
 0x26c   : > { %v473_v33 = vadd.f32 %v471_v13, %v463_v3  ;;  %v493_v17 = vadd.f32 %v491_v35, %v483_v47  ;;  %v961_v29 = vadd.f32 %v959_v22, %v951_v57  ;;  %v3127_v50 = vpop.permute.xlu0 %716  ;;  %v534_v13 = vmul.f32 %v3925_v24, %v2485_v5 }
 0x26d   : > { %v3135_v43 = vpop.permute.xlu1 %984  ;;  %v460_v3 = vmul.f32 %v459_v38, %v2645_v20  ;;  %v482_v38 = vadd.f32 %v3067_v34, %v415_v21  ;;  %v555_v47 = vmul.f32 %v553_v23, %v2991_v39  ;;  %v490_v39 = vmul.f32 %v489_v42, %v2731_v7 }
 0x26e   : > { %v503_v35 = vadd.f32 %v501_v59, %v493_v17  ;;  %v3142_v57 = vadd.f32 %v2277_v46, %v961_v29  ;;  %v520_v37 = vadd.f32 %v2284_v31, %v473_v33  ;;  %v545_v46 = vmul.f32 %v543_v41, %v2667_v48 }
 0x26f   : > { %v575_v31 = vmul.f32 %v573_v56, %v2697_v36  ;;  %v462_v22 = vadd.f32 %v460_v3, %v452_v51  ;;  %v564_v59 = vmul.f32 %v3926_v2, %v2491_v44  ;;  %v657_v34 = vstv %s3123_s20  ;;  %v3936_v2 = vld [vmem:[#allocation27_spill] sm:$0xff]  ;;  %s3424_s20 = sld [smem:[#allocation3 + $0x605]] }
 0x270   : > { %v567_v5 = vadd.f32 %v565_v6, %v503_v35  ;;  %v3161_v53 = vpop.permute.xlu0 %746  ;;  %v537_v20 = vadd.f32 %v535_v27, %v520_v37  ;;  %v3927_v27 = vstv %s2949_s18  ;;  %v3929_v21 = vstv %s2951_s28  ;;  %s3242_s18 = sld [smem:[#allocation3 + $0x301]] }
 0x271   : > { %v465_v0 = vpop.permute.xlu1 %464  ;;  %v3174_v33 = vmul.f32 %v3927_v27, %v2497_v16  ;;  %v3928_v17 = vmov %v3927_v27  ;;  %v619_v16 = vmul.f32 %v3923_v12, %v2499_v25  ;;  %v3191_v7 = vmul.f32 %v3929_v21, %v2507_v54 }
 0x272   : > { %v577_v48 = vadd.f32 %v575_v31, %v567_v5  ;;  %v470_v36 = vmul.f32 %v469_v19, %v465_v0  ;;  %v547_v49 = vadd.f32 %v545_v46, %v537_v20  ;;  %v649_v32 = vmul.f32 %v3928_v17, %v2525_v61  ;;  %v3933_v20 = vld [vmem:[#allocation63_spill] sm:$0xff] }
 0x273   : > { %v659_v42 = vmul.f32 %v657_v34, %v2729_v15  ;;  %v492_v60 = vadd.f32 %v490_v39, %v482_v38  ;;  %v3930_v37 = vstv %s2956_s29  ;;  %v544_v15 = vmul.f32 %v543_v41, %v2659_v26  ;;  %s3946_s29 = sld [smem:[#allocation96_spill]] }
 0x274   : > { %v587_v19 = vadd.f32 %v585_v8, %v577_v48  ;;  %v472_v29 = vadd.f32 %v470_v36, %v462_v22  ;;  %v557_v44 = vadd.f32 %v555_v47, %v547_v49  ;;  %v665_v61 = vpop.permute.xlu0 %664  ;;  %v3205_v24 = vmul.f32 %v3930_v37, %v2513_v58  ;;  %v3934_v36 = vld [vmem:[#allocation26_spill] sm:$0xff] }
 0x275   : > { %v495_v51 = vpop.permute.xlu1 %494  ;;  %v711_v3 = vstv %s3149_s22  ;;  %v667_v46 = vstv %s3152_s19  ;;  %v3931_v58 = vstv %s2958_s30  ;;  %v3932_v26 = vstv %s2963_s4  ;;  %s3944_s30 = sld [smem:[#allocation103_spill]]  ;;  %s3255_s4 = sld [smem:[#allocation3 + $0x305]] }
 0x276   : > { %v651_v6 = vadd.f32 %v649_v32, %v587_v19  ;;  %v519_v35 = vadd.f32 %v2117_v28, %v472_v29  ;;  %v500_v25 = vmul.f32 %v499_v40, %v495_v51  ;;  %v604_v54 = vadd.f32 %v2289_v10, %v557_v44  ;;  %v3940_v29 = vld [vmem:[#allocation28_spill] sm:$0xff]  ;;  %s3459_s22 = sld [smem:[#allocation3 + $0x506]]  ;;  %s3480_s19 = sld [smem:[#allocation3 + $0x300]] }
 0x277   : > { %v669_v40 = vmul.f32 %v667_v46, %v665_v61  ;;  %v3219_v5 = vmul.f32 %v3931_v58, %v2515_v1  ;;  %v733_v41 = vmul.f32 %v3932_v26, %v2543_v45  ;;  %v574_v38 = vmul.f32 %v573_v56, %v3933_v20  ;;  %v3938_v56 = vld [vmem:[#allocation65_spill] sm:$0xff] }
 0x278   : > { %v536_v31 = vadd.f32 %v534_v13, %v519_v35  ;;  %v661_v28 = vadd.f32 %v659_v42, %v651_v6  ;;  %v502_v10 = vadd.f32 %v500_v25, %v492_v60  ;;  %v554_v47 = vmul.f32 %v553_v23, %v2967_v62  ;;  %v3939_v23 = vld [vmem:[#allocation68_spill] sm:$0xff]  ;;  %v3945_v6 = vld [vmem:[#allocation9_spill] sm:$0xff] }
 0x279   : > { %v579_v13 = vpop.permute.xlu1 %578  ;;  %v621_v8 = vadd.f32 %v619_v16, %v604_v54  ;;  %v3935_v1 = vmov %v3932_v26  ;;  %v3937_v45 = vmov %v3931_v58  ;;  %v629_v39 = vmul.f32 %v627_v52, %v3938_v56  ;;  %v3942_v16 = vld [vmem:[#allocation29_spill] sm:$0xff]  ;;  %v3958_v56 = vld [vmem:[#allocation35_spill] sm:$0xff] }
 0x27a   : > { %v546_v0 = vadd.f32 %v544_v15, %v536_v31  ;;  %v671_v22 = vadd.f32 %v669_v40, %v661_v28  ;;  %v566_v48 = vadd.f32 %v564_v59, %v502_v10  ;;  %v3231_v49 = vmul.f32 %v3935_v1, %v3934_v36  ;;  %v3947_v15 = vld [vmem:[#allocation30_spill] sm:$0xff]  ;;  %v3949_v40 = vld [vmem:[#allocation31_spill] sm:$0xff] }
 0x27b   : > { %v3236_v27 = vmul.f32 %v3937_v45, %v3936_v2  ;;  %v741_v62 = vstv %s3180_s23  ;;  %v3941_v44 = vstv %s2965_s5  ;;  %v3943_v21 = vmov %v3930_v37  ;;  %v3956_v1 = vld [vmem:[#allocation34_spill] sm:$0xff]  ;;  %s3490_s23 = sld [smem:[#allocation3 + $0x586]] }
 0x27c   : > { %v743_v17 = vmul.f32 %v741_v62, %v3939_v23  ;;  %v556_v59 = vadd.f32 %v554_v47, %v546_v0  ;;  %v735_v32 = vadd.f32 %v733_v41, %v671_v22  ;;  %v576_v19 = vadd.f32 %v574_v38, %v566_v48  ;;  %v3951_v41 = vld [vmem:[#allocation32_spill] sm:$0xff]  ;;  %v3953_v47 = vld [vmem:[#allocation57_spill] sm:$0xff] }
 0x27d   : > { %v3250_v12 = vmul.f32 %v3941_v44, %v3940_v29  ;;  %v703_v42 = vmul.f32 %v3943_v21, %v3942_v16  ;;  %v637_v61 = vstv %s3196_s26  ;;  %v584_v51 = vmul.f32 %v583_v18, %v579_v13  ;;  %v635_v60 = vpop.permute.xlu1 %634  ;;  %v3954_v48 = vld [vmem:[#allocation33_spill] sm:$0xff]  ;;  %v3964_v16 = vld [vmem:[#allocation16_spill] sm:$0xff]  ;;  %s3499_s26 = sld [smem:[#allocation3 + $0x600]] }
 0x27e   : > { %v603_v35 = vadd.f32 %v3945_v6, %v556_v59  ;;  %v631_v25 = vadd.f32 %v629_v39, %v621_v8  ;;  %v639_v54 = vmul.f32 %v637_v61, %v635_v60  ;;  %v3265_v37 = vadd.f32 %v743_v17, %v735_v32  ;;  %v3960_v17 = vld [vmem:[#allocation36_spill] sm:$0xff] }
 0x27f   : > { %v3948_v31 = vstv %s2969_s24  ;;  %v3950_v18 = vstv %s2971_s0  ;;  %v825_v58 = vstv %s3211_s25  ;;  %v586_v26 = vadd.f32 %v584_v51, %v576_v19  ;;  %v3965_v51 = vld [vmem:[#allocation38_spill] sm:$0xff]  ;;  %s3349_s24 = sld [smem:[#allocation3 + $0x585]] }
 0x280   : > { %v3270_v28 = vmul.f32 %v3948_v31, %v3947_v15  ;;  %v3275_v10 = vmul.f32 %v3950_v18, %v3949_v40  ;;  %v3952_v20 = vstv %s3944_s30  ;;  %v628_v13 = vmul.f32 %v627_v52, %v3953_v47  ;;  %s3501_s30 = sld [smem:[#allocation3 + $0x306]]  ;;  %s3543_s25 = sld [smem:[#allocation3 + $0x685]] }
 0x281   : > { %v3283_v38 = vmul.f32 %v3952_v20, %v3951_v41  ;;  %v620_v0 = vadd.f32 %v3132_v30, %v603_v35  ;;  %v641_v22 = vadd.f32 %v639_v54, %v631_v25  ;;  %v3955_v8 = vstv %s2979_s1  ;;  %v3962_v30 = vld [vmem:[#allocation37_spill] sm:$0xff]  ;;  %v3967_v35 = vld [vmem:[#allocation39_spill] sm:$0xff]  ;;  %v3971_v41 = vld [vmem:[#allocation64_spill] sm:$0xff]  ;;  %s3365_s1 = sld [smem:[#allocation3 + $0x280]] }
 0x282   : > { %v3292_v36 = vmul.f32 %v3955_v8, %v3954_v48  ;;  %v3957_v2 = vstv %s2951_s28  ;;  %v3959_v39 = vstv %s2983_s3  ;;  %v3961_v59 = vstv %s2985_s27  ;;  %s3314_s28 = sld [smem:[#allocation3 + $0x480]] }
 0x283   : > { %v787_v45 = vmul.f32 %v3957_v2, %v3956_v1  ;;  %v3300_v23 = vmul.f32 %v3959_v39, %v3958_v56  ;;  %v3305_v52 = vmul.f32 %v3961_v59, %v3960_v17  ;;  %v3963_v32 = vstv %s3946_s29  ;;  %v3975_v39 = vld [vmem:[#allocation10_spill] sm:$0xff]  ;;  %v3976_v59 = vld [vmem:[#allocation45_spill] sm:$0xff]  ;;  %s3593_s29 = sld [smem:[#allocation3 + $0x686]] }
 0x284   : > { %v1026_v19 = vmul.f32 %v3963_v32, %v3962_v30  ;;  %v638_v29 = vmul.f32 %v637_v61, %v3021_v9  ;;  %v630_v44 = vadd.f32 %v628_v13, %v620_v0  ;;  %v688_v21 = vadd.f32 %v3964_v16, %v641_v22  ;;  %v719_v61 = vpop.permute.xlu0 %718  ;;  %v3972_v0 = vld [vmem:[#allocation43_spill] sm:$0xff] }
 0x285   : > { %v3966_v60 = vmov %v3952_v20  ;;  %v3968_v25 = vmov %v3948_v31  ;;  %v879_v9 = vstv %s3242_s18  ;;  %v650_v15 = vadd.f32 %v3174_v33, %v586_v26  ;;  %v3969_v31 = vld [vmem:[#allocation41_spill] sm:$0xff]  ;;  %s3587_s18 = sld [smem:[#allocation3 + $0x702]] }
 0x286   : > { %v3319_v6 = vmul.f32 %v3966_v60, %v3965_v51  ;;  %v3324_v54 = vmul.f32 %v3968_v25, %v3967_v35  ;;  %v3970_v40 = vmov %v3955_v8  ;;  %v713_v20 = vmul.f32 %v711_v3, %v3971_v41  ;;  %v3974_v8 = vld [vmem:[#allocation59_spill] sm:$0xff]  ;;  %v3983_v25 = vld [vmem:[#allocation60_spill] sm:$0xff] }
 0x287   : > { %v3335_v18 = vmul.f32 %v3970_v40, %v3969_v31  ;;  %v640_v47 = vadd.f32 %v638_v29, %v630_v44  ;;  %v705_v13 = vadd.f32 %v703_v42, %v688_v21  ;;  %v3973_v22 = vstv %s2965_s5  ;;  %v3978_v29 = vld [vmem:[#allocation46_spill] sm:$0xff]  ;;  %v3980_v51 = vld [vmem:[#allocation47_spill] sm:$0xff]  ;;  %s3982_s5 = sld [smem:[#allocation98_spill]]  ;;  %v801_v31 = vpop.permute.xlu1 %800 }
 0x288   : > { %v3343_v48 = vmul.f32 %v3973_v22, %v3972_v0  ;;  %v658_v1 = vmul.f32 %v657_v34, %v3974_v8  ;;  %v909_v33 = vstv %s3255_s4  ;;  %v721_v26 = vstv %s3258_s6  ;;  %s3514_s6 = sld [smem:[#allocation3 + $0x606]]  ;;  %s1909_s4 = smov 4  }
 0x289   : > { %v1118_v2 = vstv %s3262_s11  ;;  %v723_v56 = vmul.f32 %v721_v26, %v719_v61  ;;  %v687_v17 = vadd.f32 %v3975_v39, %v640_v47  ;;  %v715_v42 = vadd.f32 %v713_v20, %v705_v13  ;;  %v3984_v20 = vld [vmem:[#allocation58_spill] sm:$0xff]  ;;  %v3987_v39 = vld [vmem:[#allocation72_spill] sm:$0xff]  ;;  %s3569_s11 = sld [smem:[#allocation3 + $0x680]] }
 0x28a   : > { %v3977_v30 = vstv %s2983_s3  ;;  %v3979_v44 = vstv %s2993_s16  ;;  %v1202_v34 = vstv %s3277_s14  ;;  %v660_v21 = vadd.f32 %v658_v1, %v650_v15  ;;  %s3383_s3 = sld [smem:[#allocation3 + $0x206]]  ;;  %s3601_s14 = sld [smem:[#allocation3 + $0x704]] }
 0x28b   : > { %v3357_v32 = vmul.f32 %v3977_v30, %v3976_v59  ;;  %v3362_v16 = vmul.f32 %v3979_v44, %v3978_v29  ;;  %v3981_v60 = vstv %s2999_s12  ;;  %v712_v61 = vmul.f32 %v711_v3, %v3983_v25  ;;  %v3396_v30 = vpop.permute.xlu0 %830 }
 0x28c   : > { %v3370_v35 = vmul.f32 %v3981_v60, %v3980_v51  ;;  %v704_v40 = vadd.f32 %v3205_v24, %v687_v17  ;;  %v725_v41 = vadd.f32 %v723_v56, %v715_v42  ;;  %v3985_v47 = vstv %s3017_s10  ;;  %v3986_v24 = vld [vmem:[#allocation20_spill] sm:$0xff]  ;;  %v1042_v29 = vpop.permute.xlu1 %1041  ;;  %v3990_v51 = vld [vmem:[#allocation49_spill] sm:$0xff] }
 0x28d   : > { %v978_v15 = vmul.f32 %v3985_v47, %v3984_v20  ;;  %v987_v13 = vstv %s3307_s13  ;;  %v668_v0 = vmul.f32 %v667_v46, %v3077_v55  ;;  %v1028_v22 = vadd.f32 %v1026_v19, %v3142_v57  ;;  %v3989_v57 = vld [vmem:[#allocation69_spill] sm:$0xff]  ;;  %s3603_s13 = sld [smem:[#allocation3 + $0x701]] }
 0x28e   : > { %v722_v8 = vmul.f32 %v721_v26, %v3127_v50  ;;  %v714_v3 = vadd.f32 %v712_v61, %v704_v40  ;;  %v1044_v1 = vstv %s3314_s28  ;;  %v772_v56 = vadd.f32 %v3986_v24, %v725_v41  ;;  %v3992_v41 = vld [vmem:[#allocation50_spill] sm:$0xff]  ;;  %s3612_s28 = sld [smem:[#allocation3 + $0x705]] }
 0x28f   : > { %v3988_v17 = vstv %s3982_s5  ;;  %v1064_v59 = vstv %s3326_s9  ;;  %v1148_v55 = vstv %s3328_s21  ;;  %v670_v46 = vadd.f32 %v668_v0, %v660_v21  ;;  %v3994_v0 = vld [vmem:[#allocation11_spill] sm:$0xff]  ;;  %s1910_s9 = smov 16   ;;  %s1911_s21 = smov 12  }
 0x290   : > { %v1036_v42 = vmul.f32 %v3988_v17, %v3987_v39  ;;  %v797_v50 = vmul.f32 %v795_v63, %v3989_v57  ;;  %v988_v19 = vmul.f32 %v987_v13, %v3031_v4  ;;  %v724_v26 = vadd.f32 %v722_v8, %v714_v3  ;;  %s1914_s5 = smov 32  }
 0x291   : > { %v789_v44 = vadd.f32 %v787_v45, %v772_v56  ;;  %v3991_v60 = vstv %s2971_s0  ;;  %v1232_v21 = vstv %s3349_s24  ;;  %v1046_v40 = vmul.f32 %v1044_v1, %v1042_v29  ;;  %v3995_v45 = vld [vmem:[#allocation62_spill] sm:$0xff]  ;;  %s3422_s0 = sld [smem:[#allocation3 + $0x601]]  ;;  %v1126_v29 = vpop.permute.xlu1 %1125  ;;  %s1912_s24 = smov 24  }
 0x292   : > { %v3407_v25 = vmul.f32 %v3991_v60, %v3990_v51  ;;  %v1038_v61 = vadd.f32 %v1036_v42, %v1028_v22  ;;  %v3993_v20 = vstv %s2993_s16  ;;  %v980_v4 = vadd.f32 %v978_v15, %v3082_v14  ;;  %v1040_v42 = vpop.permute.xlu0 %1039  ;;  %v3997_v14 = vld [vmem:[#allocation67_spill] sm:$0xff]  ;;  %v3999_v60 = vld [vmem:[#allocation17_spill] sm:$0xff]  ;;  %s3440_s16 = sld [smem:[#allocation3 + $0x286]] }
 0x293   : > { %v3413_v47 = vmul.f32 %v3993_v20, %v3992_v41  ;;  %v771_v8 = vadd.f32 %v3994_v0, %v724_v26  ;;  %v3417_v3 = vadd.f32 %v797_v50, %v789_v44  ;;  %v3996_v24 = vstv %s3017_s10  ;;  %v3998_v44 = vld [vmem:[#allocation61_spill] sm:$0xff]  ;;  %s3435_s10 = sld [smem:[#allocation3 + $0x681]] }
 0x294   : > { %v979_v56 = vmul.f32 %v3996_v24, %v3995_v45  ;;  %v734_v22 = vadd.f32 %v3231_v49, %v670_v46  ;;  %v805_v39 = vstv %s3365_s1  ;;  %v1048_v17 = vadd.f32 %v1046_v40, %v1038_v61  ;;  %v4000_v40 = vld [vmem:[#allocation102_spill] sm:$0xff]  ;;  %s1913_s1 = smov 20  }
 0x295   : > { %v796_v15 = vmul.f32 %v795_v63, %v3997_v14  ;;  %v990_v57 = vadd.f32 %v988_v19, %v980_v4  ;;  %v788_v50 = vadd.f32 %v3191_v7, %v771_v8  ;;  %v1045_v26 = vmul.f32 %v1044_v1, %v1040_v42  ;;  %v4001_v41 = vld [vmem:[#allocation73_spill] sm:$0xff]  ;;  %v3455_v24 = vpop.permute.xlu1 %884 }
 0x296   : > { %v742_v51 = vmul.f32 %v741_v62, %v3998_v44  ;;  %v989_v49 = vmul.f32 %v987_v13, %v3135_v43  ;;  %v751_v46 = vstv %s3383_s3  ;;  %v1095_v61 = vadd.f32 %v3999_v60, %v1048_v17  ;;  %v1124_v4 = vpop.permute.xlu0 %1123  ;;  %v4002_v8 = vld [vmem:[#allocation13_spill] sm:$0xff]  ;;  %s1915_s3 = smov 28  }
 0x297   : > { %v798_v63 = vadd.f32 %v796_v15, %v788_v50  ;;  %v806_v19 = vmul.f32 %v805_v39, %v801_v31  ;;  %v1047_v7 = vadd.f32 %v1045_v26, %v4000_v40  ;;  %v1128_v1 = vstv %s3388_s2  ;;  %v4006_v40 = vld [vmem:[#allocation66_spill] sm:$0xff]  ;;  %s1916_s2 = smov 40  }
 0x298   : > { %v1120_v62 = vmul.f32 %v1118_v2, %v4001_v41  ;;  %v981_v43 = vadd.f32 %v979_v56, %v3117_v11  ;;  %v744_v13 = vadd.f32 %v742_v51, %v734_v22  ;;  %v1112_v20 = vadd.f32 %v3236_v27, %v1095_v61  ;;  %v4003_v11 = vld [vmem:[#allocation74_spill] sm:$0xff]  ;;  %v4004_v56 = vld [vmem:[#allocation76_spill] sm:$0xff] }
 0x299   : > { %v1057_v31 = vadd.f32 %v3324_v54, %v990_v57  ;;  %v808_v0 = vadd.f32 %v806_v19, %v798_v63  ;;  %v1094_v45 = vadd.f32 %v4002_v8, %v1047_v7  ;;  %v1074_v17 = vstv %s3402_s8  ;;  %v4005_v22 = vld [vmem:[#allocation12_spill] sm:$0xff]  ;;  %v1208_v19 = vpop.permute.xlu1 %1207  ;;  %s1917_s8 = smov 36  }
 0x29a   : > { %v991_v42 = vadd.f32 %v989_v49, %v981_v43  ;;  %v752_v14 = vmul.f32 %v751_v46, %v3161_v53  ;;  %v1122_v15 = vadd.f32 %v1120_v62, %v1112_v20  ;;  %v1130_v50 = vmul.f32 %v1128_v1, %v1126_v29  ;;  %v1070_v49 = vpop.permute.xlu0 %1069  ;;  %v4007_v62 = vld [vmem:[#allocation18_spill] sm:$0xff] }
 0x29b   : > { %v1119_v27 = vmul.f32 %v1118_v2, %v4003_v11  ;;  %v1065_v54 = vmul.f32 %v1064_v59, %v4004_v56  ;;  %v3468_v57 = vadd.f32 %v4005_v22, %v808_v0  ;;  %v1111_v26 = vadd.f32 %v3219_v5, %v1094_v45  ;;  %v4011_v11 = vld [vmem:[#allocation14_spill] sm:$0xff] }
 0x29c   : > { %v1286_v44 = vstv %s3422_s0  ;;  %v1316_v53 = vstv %s3424_s20  ;;  %v754_v51 = vadd.f32 %v752_v14, %v744_v13  ;;  %v1132_v29 = vadd.f32 %v1130_v50, %v1122_v15  ;;  %s1918_s0 = smov 48   ;;  %s1919_s20 = smov 44  }
 0x29d   : > { %v1121_v60 = vadd.f32 %v1119_v27, %v1111_v26  ;;  %v1129_v61 = vmul.f32 %v1128_v1, %v1124_v4  ;;  %v1067_v2 = vadd.f32 %v1065_v54, %v1057_v31  ;;  %v1075_v63 = vmul.f32 %v1074_v17, %v1070_v49  ;;  %v4008_v1 = vld [vmem:[#allocation77_spill] sm:$0xff]  ;;  %v4009_v31 = vld [vmem:[#allocation80_spill] sm:$0xff]  ;;  %v1072_v54 = vpop.permute.xlu1 %1071 }
 0x29e   : > { %v826_v7 = vmul.f32 %v825_v58, %v4006_v40  ;;  %v1370_v41 = vstv %s3435_s10  ;;  %v1058_v5 = vadd.f32 %v3270_v28, %v991_v42  ;;  %v1179_v43 = vadd.f32 %v4007_v62, %v1132_v29  ;;  %v749_v15 = vpop.permute.xlu0 %748  ;;  %v4010_v42 = vld [vmem:[#allocation78_spill] sm:$0xff]  ;;  %s1920_s10 = smov 56  }
 0x29f   : > { %v835_v13 = vstv %s3440_s16  ;;  %v1131_v20 = vadd.f32 %v1129_v61, %v1121_v60  ;;  %v1077_v0 = vadd.f32 %v1075_v63, %v1067_v2  ;;  %v1212_v8 = vstv %s3446_s7  ;;  %v4013_v60 = vld [vmem:[#allocation86_spill] sm:$0xff]  ;;  %s1921_s16 = smov 52   ;;  %s1922_s7 = smov 60  }
 0x2a0   : > { %v1066_v4 = vmul.f32 %v1064_v59, %v4008_v1  ;;  %v1204_v45 = vmul.f32 %v1202_v34, %v4009_v31  ;;  %v818_v14 = vadd.f32 %v3275_v10, %v754_v51  ;;  %v1196_v28 = vadd.f32 %v3343_v48, %v1179_v43  ;;  %v4012_v48 = vld [vmem:[#allocation75_spill] sm:$0xff]  ;;  %v4014_v61 = vld [vmem:[#allocation70_spill] sm:$0xff] }
 0x2a1   : > { %v1149_v50 = vmul.f32 %v1148_v55, %v4010_v42  ;;  %v1178_v27 = vadd.f32 %v4011_v11, %v1131_v20  ;;  %v1141_v59 = vadd.f32 %v3335_v18, %v1077_v0  ;;  %v753_v56 = vmul.f32 %v751_v46, %v749_v15  ;;  %v1238_v43 = vpop.permute.xlu1 %1237  ;;  %v4015_v20 = vld [vmem:[#allocation71_spill] sm:$0xff]  ;;  %v4016_v0 = vld [vmem:[#allocation81_spill] sm:$0xff] }
 0x2a2   : > { %v1068_v22 = vadd.f32 %v1066_v4, %v1058_v5  ;;  %v1076_v26 = vmul.f32 %v1074_v17, %v1072_v54  ;;  %v1158_v10 = vstv %s3459_s22  ;;  %v1206_v51 = vadd.f32 %v1204_v45, %v1196_v28  ;;  %v1154_v5 = vpop.permute.xlu0 %1153  ;;  %v4018_v11 = vld [vmem:[#allocation83_spill] sm:$0xff]  ;;  %s4056_s22 = sld [smem:[#allocation7_spill]] }
 0x2a3   : > { %v1203_v29 = vmul.f32 %v1202_v34, %v4012_v48  ;;  %v1195_v49 = vadd.f32 %v3250_v12, %v1178_v27  ;;  %v755_v18 = vadd.f32 %v753_v56, %v3265_v37  ;;  %v1151_v46 = vadd.f32 %v1149_v50, %v1141_v59 }
 0x2a4   : > { %v827_v17 = vmul.f32 %v825_v58, %v4013_v60  ;;  %v880_v2 = vmul.f32 %v879_v9, %v4014_v61  ;;  %v828_v63 = vadd.f32 %v826_v7, %v818_v14  ;;  %v1078_v40 = vadd.f32 %v1076_v26, %v1068_v22  ;;  %v4017_v14 = vld [vmem:[#allocation79_spill] sm:$0xff] }
 0x2a5   : > { %v1205_v34 = vadd.f32 %v1203_v29, %v1195_v49  ;;  %v1213_v12 = vmul.f32 %v1212_v8, %v1208_v19  ;;  %v819_v37 = vadd.f32 %v3407_v25, %v755_v18  ;;  %v1159_v62 = vmul.f32 %v1158_v10, %v1154_v5  ;;  %v1156_v54 = vpop.permute.xlu1 %1155 }
 0x2a6   : > { %v910_v58 = vmul.f32 %v909_v33, %v4015_v20  ;;  %v1150_v7 = vmul.f32 %v1148_v55, %v4016_v0  ;;  %v836_v1 = vmul.f32 %v835_v13, %v3396_v30  ;;  %v1142_v4 = vadd.f32 %v3292_v36, %v1078_v40  ;;  %v803_v50 = vpop.permute.xlu0 %802  ;;  %v4019_v36 = vld [vmem:[#allocation15_spill] sm:$0xff] }
 0x2a7   : > { %v889_v31 = vstv %s3480_s19  ;;  %v1215_v45 = vadd.f32 %v1213_v12, %v1205_v34  ;;  %v1161_v19 = vadd.f32 %v1159_v62, %v1151_v46  ;;  %v3530_v25 = vadd.f32 %v827_v17, %v819_v37  ;;  %v4022_v37 = vld [vmem:[#allocation87_spill] sm:$0xff]  ;;  %s4057_s19 = sld [smem:[#allocation8_spill]] }
 0x2a8   : > { %v1233_v15 = vmul.f32 %v1232_v21, %v4017_v14  ;;  %v838_v28 = vadd.f32 %v836_v1, %v828_v63  ;;  %v1242_v42 = vstv %s3490_s23  ;;  %v1152_v55 = vadd.f32 %v1150_v7, %v1142_v4  ;;  %s4058_s23 = sshll.u32 %s4056_s22, 4 }
 0x2a9   : > { %v1287_v30 = vmul.f32 %v1286_v44, %v4018_v11  ;;  %v1262_v27 = vadd.f32 %v4019_v36, %v1215_v45  ;;  %v1225_v59 = vadd.f32 %v3283_v38, %v1161_v19  ;;  %v807_v56 = vmul.f32 %v805_v39, %v803_v50  ;;  %v4020_v39 = vld [vmem:[#allocation85_spill] sm:$0xff]  ;;  %v1292_v34 = vpop.permute.xlu1 %1291  ;;  %v4024_v45 = vld [vmem:[#allocation23_spill] sm:$0xff]  ;;  %v4028_v11 = vld [vmem:[#allocation82_spill] sm:$0xff] }
 0x2aa   : > { %v872_v22 = vadd.f32 %v3362_v16, %v3468_v57  ;;  %v1160_v26 = vmul.f32 %v1158_v10, %v1156_v54  ;;  %v1296_v48 = vstv %s3499_s26  ;;  %v919_v29 = vstv %s3501_s30  ;;  %v1210_v63 = vpop.permute.xlu0 %1209  ;;  %v4021_v10 = vld [vmem:[#allocation22_spill] sm:$0xff] }
 0x2ab   : > { %v1235_v49 = vadd.f32 %v1233_v15, %v1225_v59  ;;  %v1243_v18 = vmul.f32 %v1242_v42, %v1238_v43  ;;  %v809_v38 = vadd.f32 %v807_v56, %v3417_v3  ;;  %v1279_v46 = vadd.f32 %v3300_v23, %v1262_v27  ;;  %v4023_v3 = vld [vmem:[#allocation89_spill] sm:$0xff]  ;;  %v4029_v56 = vld [vmem:[#allocation42_spill] sm:$0xff] }
 0x2ac   : > { %v1317_v60 = vmul.f32 %v1316_v53, %v4020_v39  ;;  %v902_v17 = vadd.f32 %v3370_v35, %v838_v28  ;;  %v1162_v61 = vadd.f32 %v1160_v26, %v1152_v55  ;;  %v1326_v16 = vstv %s3514_s6  ;;  %v4025_v15 = vld [vmem:[#allocation40_spill] sm:$0xff]  ;;  %v4027_v55 = vld [vmem:[#allocation19_spill] sm:$0xff]  ;;  %v4031_v26 = vld [vmem:[#allocation90_spill] sm:$0xff]  ;;  %s4059_s6 = sld [smem:[#allocation107_spill]] }
 0x2ad   : > { %v1245_v57 = vadd.f32 %v1243_v18, %v1235_v49  ;;  %v856_v40 = vadd.f32 %v4021_v10, %v809_v38  ;;  %v1214_v5 = vmul.f32 %v1212_v8, %v1210_v63  ;;  %v1289_v12 = vadd.f32 %v1287_v30, %v1279_v46 }
 0x2ae   : > { %v1234_v23 = vmul.f32 %v1232_v21, %v4022_v37  ;;  %v881_v62 = vmul.f32 %v879_v9, %v4023_v3  ;;  %v1226_v35 = vadd.f32 %v3319_v6, %v1162_v61  ;;  %v1297_v43 = vmul.f32 %v1296_v48, %v1292_v34  ;;  %v915_v4 = vpop.permute.xlu0 %914  ;;  %v4033_v34 = vld [vmem:[#allocation44_spill] sm:$0xff] }
 0x2af   : > { %v882_v20 = vadd.f32 %v880_v2, %v872_v22  ;;  %v1309_v0 = vadd.f32 %v3305_v52, %v1245_v57  ;;  %v1216_v7 = vadd.f32 %v1214_v5, %v1206_v51  ;;  %v873_v8 = vadd.f32 %v3413_v47, %v856_v40  ;;  %v1322_v51 = vpop.permute.xlu1 %1321 }
 0x2b0   : > { %v890_v21 = vmul.f32 %v889_v31, %v3455_v24  ;;  %v1299_v1 = vadd.f32 %v1297_v43, %v1289_v12  ;;  %v912_v9 = vadd.f32 %v910_v58, %v902_v17  ;;  %v1236_v6 = vadd.f32 %v1234_v23, %v1226_v35  ;;  %v4032_v17 = vld [vmem:[#allocation93_spill] sm:$0xff] }
 0x2b1   : > { %v1263_v2 = vadd.f32 %v4024_v45, %v1216_v7  ;;  %v920_v52 = vmul.f32 %v919_v29, %v915_v4  ;;  %v1319_v19 = vadd.f32 %v1317_v60, %v1309_v0  ;;  %v3578_v14 = vadd.f32 %v881_v62, %v873_v8  ;;  %v4035_v62 = vld [vmem:[#allocation52_spill] sm:$0xff]  ;;  %v4039_v4 = vld [vmem:[#allocation97_spill] sm:$0xff] }
 0x2b2   : > { %v4026_v47 = vstv %s2987_s15  ;;  %v1400_v50 = vstv %s3543_s25  ;;  %v1346_v24 = vadd.f32 %v4027_v55, %v1299_v1  ;;  %v1327_v58 = vmul.f32 %v1326_v16, %v1322_v51  ;;  %v1294_v38 = vpop.permute.xlu0 %1293  ;;  %v4038_v7 = vld [vmem:[#allocation95_spill] sm:$0xff]  ;;  %s3640_s15 = sld [smem:[#allocation3 + $0x700]]  ;;  %s187_s25 = scalar_lea.vmem %s4059_s6, %s4058_s23 }
 0x2b3   : > { %v1361_v28 = vmul.f32 %v4026_v47, %v4025_v15  ;;  %v1288_v30 = vmul.f32 %v1286_v44, %v4028_v11  ;;  %v892_v36 = vadd.f32 %v890_v21, %v882_v20  ;;  %v922_v27 = vadd.f32 %v920_v52, %v912_v9  ;;  %v1240_v60 = vpop.permute.xlu1 %1239  ;;  %v4041_v11 = vld [vmem:[#allocation21_spill] sm:$0xff] }
 0x2b4   : > { %v1280_v59 = vadd.f32 %v3357_v32, %v1263_v2  ;;  %v4030_v54 = vstv %s2989_s17  ;;  %v1371_v49 = vmul.f32 %v1370_v41, %v4031_v26  ;;  %v1329_v18 = vadd.f32 %v1327_v58, %v1319_v19  ;;  %v4045_v26 = vld [vmem:[#allocation84_spill] sm:$0xff] }
 0x2b5   : > { %v1391_v22 = vmul.f32 %v4030_v54, %v4029_v56  ;;  %v1363_v46 = vadd.f32 %v1361_v28, %v1346_v24  ;;  %v3605_v44 = vadd.f32 %v922_v27, %v892_v36  ;;  %v1298_v39 = vmul.f32 %v1296_v48, %v1294_v38  ;;  %v4040_v24 = vld [vmem:[#allocation48_spill] sm:$0xff]  ;;  %v4042_v27 = vld [vmem:[#allocation55_spill] sm:$0xff] }
 0x2b6   : > { %v1290_v32 = vadd.f32 %v1288_v30, %v1280_v59  ;;  %v1401_v61 = vmul.f32 %v1400_v50, %v4032_v17  ;;  %v1244_v57 = vmul.f32 %v1242_v42, %v1240_v60  ;;  %v1380_v5 = vstv %s3569_s11  ;;  %v1460_v23 = vpop.permute.xlu0 %1459  ;;  %v4037_v42 = vld [vmem:[#allocation24_spill] sm:$0xff]  ;;  %v4047_v17 = vld [vmem:[#allocation99_spill] sm:$0xff] }
 0x2b7   : > { %v1393_v63 = vadd.f32 %v1391_v22, %v1329_v18  ;;  %v1373_v10 = vadd.f32 %v1371_v49, %v1363_v46  ;;  %v4034_v12 = vstv %s2985_s27  ;;  %v4036_v35 = vmov %v4026_v47  ;;  %v1376_v0 = vpop.permute.xlu1 %1375  ;;  %s3643_s27 = sld [smem:[#allocation3 + $0x706]]  ;;  %v4046_v46 = vld [vmem:[#allocation101_spill] sm:$0xff] }
 0x2b8   : > { %v1300_v40 = vadd.f32 %v1298_v39, %v1290_v32  ;;  %v1308_v37 = vmul.f32 %v4034_v12, %v4033_v34  ;;  %v1246_v48 = vadd.f32 %v1244_v57, %v1236_v6  ;;  %v1362_v43 = vmul.f32 %v4036_v35, %v4035_v62  ;;  %v4050_v62 = vld [vmem:[#allocation100_spill] sm:$0xff] }
 0x2b9   : > { %v1403_v3 = vadd.f32 %v1401_v61, %v1393_v63  ;;  %v1318_v8 = vmul.f32 %v1316_v53, %v4038_v7  ;;  %v1381_v1 = vmul.f32 %v1380_v5, %v1376_v0  ;;  %v1444_v9 = vstv %s3587_s18 }
 0x2ba   : > { %v1347_v20 = vadd.f32 %v4037_v42, %v1300_v40  ;;  %v1310_v21 = vadd.f32 %v1308_v37, %v1246_v48  ;;  %v1372_v6 = vmul.f32 %v1370_v41, %v4039_v4  ;;  %v1410_v45 = vstv %s3593_s29  ;;  %v833_v51 = vpop.permute.xlu0 %832  ;;  %v4048_v40 = vld [vmem:[#allocation54_spill] sm:$0xff]  ;;  %v4052_v4 = vld [vmem:[#allocation25_spill] sm:$0xff] }
 0x2bb   : > { %v1383_v52 = vadd.f32 %v1381_v1, %v1373_v10  ;;  %v1474_v15 = vstv %s3601_s14  ;;  %v1454_v47 = vstv %s3603_s13  ;;  %v837_v28 = vmul.f32 %v835_v13, %v833_v51  ;;  %v1406_v55 = vpop.permute.xlu1 %1405  ;;  %v4044_v13 = vld [vmem:[#allocation53_spill] sm:$0xff] }
 0x2bc   : > { %v1364_v2 = vadd.f32 %v1362_v43, %v1347_v20  ;;  %v1320_v19 = vadd.f32 %v1318_v8, %v1310_v21  ;;  %v1445_v58 = vmul.f32 %v1444_v9, %v4040_v24  ;;  %v1411_v36 = vmul.f32 %v1410_v45, %v1406_v55  ;;  %v4051_v8 = vld [vmem:[#allocation51_spill] sm:$0xff] }
 0x2bd   : > { %v1430_v30 = vadd.f32 %v4041_v11, %v1383_v52  ;;  %v4043_v41 = vstv %s2999_s12  ;;  %v1484_v56 = vstv %s3612_s28  ;;  %v839_v54 = vadd.f32 %v837_v28, %v3530_v25  ;;  %s3661_s12 = sld [smem:[#allocation2]]  ;;  %v4053_v52 = vld [vmem:[#allocation92_spill] sm:$0xff] }
 0x2be   : > { %v1374_v53 = vadd.f32 %v1372_v6, %v1364_v2  ;;  %v901_v59 = vmul.f32 %v4043_v41, %v4042_v27  ;;  %v1475_v22 = vmul.f32 %v1474_v15, %v4044_v13  ;;  %v1455_v49 = vmul.f32 %v1454_v47, %v4045_v26  ;;  %v887_v28 = vpop.permute.xlu0 %886 }
 0x2bf   : > { %v1447_v18 = vadd.f32 %v1445_v58, %v1430_v30  ;;  %v1413_v38 = vadd.f32 %v1411_v36, %v1403_v3  ;;  %v911_v32 = vmul.f32 %v909_v33, %v4046_v46  ;;  %v1324_v60 = vpop.permute.xlu1 %1323  ;;  %v1485_v61 = vmul.f32 %v1484_v56, %v4047_v17  ;;  %v4054_v30 = vld [vmem:[#allocation56_spill] sm:$0xff] }
 0x2c0   : > { %v903_v39 = vadd.f32 %v901_v59, %v839_v54  ;;  %v1328_v25 = vmul.f32 %v1326_v16, %v1324_v60  ;;  %v4049_v34 = vstv %s2989_s17  ;;  %v1402_v35 = vmul.f32 %v1400_v50, %v4050_v62  ;;  %v4055_v59 = vld [vmem:[#allocation104_spill] sm:$0xff]  ;;  %s1908_s17 = smov 8  }
 0x2c1   : > { %v1477_v63 = vadd.f32 %v1475_v22, %v1413_v38  ;;  %v1457_v57 = vadd.f32 %v1455_v49, %v1447_v18  ;;  %v1392_v12 = vmul.f32 %v4049_v34, %v4048_v40  ;;  %v1464_v42 = vstv %s3640_s15 }
 0x2c2   : > { %v913_v10 = vadd.f32 %v911_v32, %v903_v39  ;;  %v1330_v37 = vadd.f32 %v1328_v25, %v1320_v19  ;;  %v1494_v20 = vstv %s3643_s27  ;;  %v1446_v21 = vmul.f32 %v1444_v9, %v4051_v8  ;;  %v1462_v26 = vpop.permute.xlu0 %1461 }
 0x2c3   : > { %v1487_v48 = vadd.f32 %v1485_v61, %v1477_v63  ;;  %v1378_v3 = vpop.permute.xlu1 %1377  ;;  %v1465_v1 = vmul.f32 %v1464_v42, %v1460_v23  ;;  %v1456_v51 = vmul.f32 %v1454_v47, %v4053_v52  ;;  %v1504_v11 = vstv %s3661_s12 }
 0x2c4   : > { %v1394_v33 = vadd.f32 %v1392_v12, %v1330_v37  ;;  %v1382_v43 = vmul.f32 %v1380_v5, %v1378_v3  ;;  %v1476_v36 = vmul.f32 %v1474_v15, %v4054_v30  ;;  %v891_v9 = vmul.f32 %v889_v31, %v887_v28 }
 0x2c5   : > { %v1467_v19 = vadd.f32 %v1465_v1, %v1457_v57  ;;  %v1486_v47 = vmul.f32 %v1484_v56, %v4055_v59  ;;  %v1466_v15 = vmul.f32 %v1464_v42, %v1462_v26 }
 0x2c6   : > { %v1384_v0 = vadd.f32 %v1382_v43, %v1374_v53  ;;  %v1404_v16 = vadd.f32 %v1402_v35, %v1394_v33  ;;  %v893_v49 = vadd.f32 %v891_v9, %v3578_v14 }
 0x2c7   : > { %v1490_v7 = vpop.permute.xlu1 %1489 }
 0x2c8   : > { %v1431_v6 = vadd.f32 %v4052_v4, %v1384_v0  ;;  %v1495_v2 = vmul.f32 %v1494_v20, %v1490_v7 }
 0x2ca   : > { %v1448_v50 = vadd.f32 %v1446_v21, %v1431_v6  ;;  %v1497_v5 = vadd.f32 %v1495_v2, %v1487_v48 }
 0x2cb   : > { %v1408_v55 = vpop.permute.xlu1 %1407 }
 0x2cc   : > { %v1499_v24 = vadd.f32 %v1497_v5, %v1467_v19  ;;  %v1412_v53 = vmul.f32 %v1410_v45, %v1408_v55  ;;  %v1458_v58 = vadd.f32 %v1456_v51, %v1448_v50 }
 0x2ce   : > { %v1501_v23 = vadd.f32 %v1499_v24, %v3605_v44  ;;  %v1414_v27 = vadd.f32 %v1412_v53, %v1404_v16  ;;  %v1468_v44 = vadd.f32 %v1466_v15, %v1458_v58 }
 0x2cf   : > { %v917_v41 = vpop.permute.xlu1 %916 }
 0x2d0   : > { %v1505_v54 = vadd.f32 %v1504_v11, %v1501_v23  ;;  %v1478_v13 = vadd.f32 %v1476_v36, %v1414_v27  ;;  %v921_v22 = vmul.f32 %v919_v29, %v917_v41  ;;  %v1609_v36 = vlaneseq }
 0x2d2   : > { %v1792_v45 = vmul.f32 -1.442695, %v1505_v54  ;;  %v923_v18 = vadd.f32 %v921_v22, %v913_v10  ;;  %v1488_v38 = vadd.f32 %v1486_v47, %v1478_v13  ;;  %v1610_v59 = vshrl.u32 %v1609_v36, 7 }
 0x2d3   : > { %v1492_v46 = vpop.permute.xlu1 %1491 }
 0x2d4   : > { %1851 = vpow2.f32 %v1792_v45  ;;  %v925_v31 = vadd.f32 %v923_v18, %v893_v49  ;;  %v1496_v32 = vmul.f32 %v1494_v20, %v1492_v46  ;;  %v1611_v26 = vsub.s32 0, %v1610_v59  ;;  %v1859_v46 = vld [vmem:[%s4057_s19] sm:$0xff] }
 0x2d6   : > { %v1498_v39 = vadd.f32 %v1496_v32, %v1488_v38 }
 0x2d8   : > { %v1500_v60 = vadd.f32 %v1498_v39, %v1468_v44 }
 0x2da   : > { %v1502_v17 = vadd.f32 %v1500_v60, %v925_v31  ;;  %v1860_v31 = vld [vmem:[%s4057_s19 + $0x8] sm:$0xff] }
 0x2dc   : > { %v1506_v56 = vadd.f32 %v1504_v11, %v1502_v17 }
 0x2de   : > { %v1852_v61 = vpop.eup %1851  ;;  %v1793_v63 = vmul.f32 -1.442695, %v1506_v56 }
 0x2df   : > { %v1513_v25 = vadd.f32 1.0, %v1852_v61 }
 0x2e0   : > { %1853 = vpow2.f32 %v1793_v63 }
 0x2e1   : > { %1855 = vrcp.f32 %v1513_v25 }
 0x2ea   : > { %v1854_v29 = vpop.eup %1853 }
 0x2eb   : > { %v1856_v14 = vpop.eup %1855  ;;  %v1514_v57 = vadd.f32 1.0, %v1854_v29 }
 0x2ec   : > { %v1524_v10 = vrot.slane %v1856_v14, 2  ;;  %v1520_v40 = vrot.slane %v1856_v14, 1  ;;  %v1532_v34 = vrot.slane %v1856_v14, 4  ;;  %v1528_v12 = vrot.slane %v1856_v14, 3 }
 0x2ed   : > { %1857 = vrcp.f32 %v1514_v57  ;;  %v1540_v37 = vrot.slane %v1856_v14, 6  ;;  %v1536_v48 = vrot.slane %v1856_v14, 5  ;;  %v1544_v3 = vrot.slane %v1856_v14, 7 }
 0x2ee   : > { %1525 = vrot.lane.b32.xlu1 %v1524_v10, %s1908_s17  ;;  %1521 = vrot.lane.b32.xlu0 %v1520_v40, %s1909_s4 }
 0x2f2   : > { %1533 = vrot.lane.b32.xlu1 %v1532_v34, %s1910_s9  ;;  %1529 = vrot.lane.b32.xlu0 %v1528_v12, %s1911_s21 }
 0x2f6   : > { %1541 = vrot.lane.b32.xlu1 %v1540_v37, %s1912_s24  ;;  %1537 = vrot.lane.b32.xlu0 %v1536_v48, %s1913_s1 }
 0x2f7   : > { %v1858_v62 = vpop.eup %1857 }
 0x2f8   : > { %v1556_v35 = vrot.slane %v1858_v62, 2  ;;  %v1552_v33 = vrot.slane %v1858_v62, 1  ;;  %v1564_v43 = vrot.slane %v1858_v62, 4  ;;  %v1560_v42 = vrot.slane %v1858_v62, 3 }
 0x2f9   : > { %v1572_v20 = vrot.slane %v1858_v62, 6  ;;  %v1568_v0 = vrot.slane %v1858_v62, 5  ;;  %v1576_v16 = vrot.slane %v1858_v62, 7 }
 0x2fa   : > { %1549 = vrot.lane.b32.xlu1 %v1858_v62, %s1914_s5  ;;  %1545 = vrot.lane.b32.xlu0 %v1544_v3, %s1915_s3 }
 0x2fe   : > { %1557 = vrot.lane.b32.xlu1 %v1556_v35, %s1916_s2  ;;  %1553 = vrot.lane.b32.xlu0 %v1552_v33, %s1917_s8 }
 0x302   : > { %1565 = vrot.lane.b32.xlu1 %v1564_v43, %s1918_s0  ;;  %1561 = vrot.lane.b32.xlu0 %v1560_v42, %s1919_s20 }
 0x306   : > { %1573 = vrot.lane.b32.xlu1 %v1572_v20, %s1920_s10  ;;  %1569 = vrot.lane.b32.xlu0 %v1568_v0, %s1921_s16 }
 0x30a   : > { %1577 = vrot.lane.b32.xlu0 %v1576_v16, %s1922_s7 }
 0x360   : > { %v1526_v7 = vpop.permute.xlu1 %1525  ;;  %v1522_v8 = vpop.permute.xlu0 %1521 }
 0x361   : > { %v1580_v21 = vsel %vm281_vm7, %v1856_v14, %v1522_v8  ;;  %vm1607_vm7 = vcmask 490496  }
 0x362   : > { %v1582_v4 = vsel %vm1581_vm9, %v1580_v21, %v1526_v7 }
 0x364   : > { %v1534_v1 = vpop.permute.xlu1 %1533  ;;  %v1530_v6 = vpop.permute.xlu0 %1529 }
 0x365   : > { %v1584_v2 = vsel %vm1583_vm10, %v1582_v4, %v1530_v6 }
 0x366   : > { %v1586_v51 = vsel %vm1585_vm11, %v1584_v2, %v1534_v1 }
 0x368   : > { %v1542_v52 = vpop.permute.xlu1 %1541  ;;  %v1538_v50 = vpop.permute.xlu0 %1537 }
 0x369   : > { %v1588_v19 = vsel %vm1587_vm12, %v1586_v51, %v1538_v50 }
 0x36a   : > { %v1590_v28 = vsel %vm1589_vm13, %v1588_v19, %v1542_v52 }
 0x36c   : > { %v1550_v5 = vpop.permute.xlu1 %1549  ;;  %v1546_v55 = vpop.permute.xlu0 %1545 }
 0x36d   : > { %v1592_v24 = vsel %vm1591_vm14, %v1590_v28, %v1546_v55 }
 0x36e   : > { %v1594_v58 = vsel %vm1593_vm15, %v1592_v24, %v1550_v5 }
 0x370   : > { %v1558_v53 = vpop.permute.xlu1 %1557  ;;  %v1554_v11 = vpop.permute.xlu0 %1553 }
 0x371   : > { %v1596_v30 = vsel %vm1595_vm1, %v1594_v58, %v1554_v11 }
 0x372   : > { %v1598_v23 = vsel %vm1597_vm2, %v1596_v30, %v1558_v53 }
 0x374   : > { %v1566_v9 = vpop.permute.xlu1 %1565  ;;  %v1562_v27 = vpop.permute.xlu0 %1561 }
 0x375   : > { %v1600_v41 = vsel %vm1599_vm3, %v1598_v23, %v1562_v27 }
 0x376   : > { %v1602_v47 = vsel %vm1601_vm4, %v1600_v41, %v1566_v9 }
 0x378   : > { %v1570_v54 = vpop.permute.xlu0 %1569  ;;  %v1574_v13 = vpop.permute.xlu1 %1573 }
 0x379   : > { %v1604_v22 = vsel %vm1603_vm5, %v1602_v47, %v1570_v54 }
 0x37a   : > { %v1606_v49 = vsel %vm1605_vm6, %v1604_v22, %v1574_v13 }
 0x37c   : > { %v1578_v45 = vpop.permute.xlu0 %1577 }
 0x37d   : > { %v1608_v18 = vsel %vm1607_vm7, %v1606_v49, %v1578_v45 }
 0x37e   : > { %v1612_v38 = vrot.slane %v1608_v18, %v1611_v26 }
 0x380   : > { %v1613_v15 = vmul.f32 %v1859_v46, %v1612_v38  ;;  %v1614_v32 = vmul.f32 %v1860_v31, %v1612_v38 }
 0x382   : > { %1615 = vst.msk [vmem:[%s187_s25] sm:$0xff] %vm190_vm0, %v1613_v15  ;;  %1616 = vst.msk [vmem:[%s187_s25 + $0x8] sm:$0xff] %vm190_vm0, %v1614_v32 }
 0x383 PF: > { %s4060_s11 = sld [smem:[#allocation6_spill]] }
 0x389   : > { %s15_s14 = sadd.s32 1, %s4060_s11  }
 0x38a   : > { %p12_p1 = scmp.ge.s32.totalorder %s15_s14, 4  }
 0x38c   :  { %14 = sbr.rel (!%p12_p1) target bundleno = 6 (0x6), region = 67 }
 0x393   :  { %1638 = vsyncpa [#allocation4], 1 }
 0x394   :  { %1640 = vsyncpa [#allocation4 + $0x1], 1 }

</bundles_post_ra>
